<compile_context>
chip_gen: v7x
topology: tpu7x:2x2x1
jax: 0.10.0
libtpu: 0.0.40
codegen_flags: <defaults>
</compile_context>

<pallas_src>
import math
import jax
import jax.numpy as jnp
from jax.experimental import pallas as pl
from jax.experimental.pallas import tpu as pltpu

C = 256              # channel count fixed by the module (Conv2d(256, 256, 1))
TILE_HW_MAX = 2048   # pixels (lanes) per grid step; multiple of 256


def _fused_kernel(feat_ref, map_ref, scale_ref, shift_ref, w_ref, out_ref):
    # feat_ref  : (C, T) f32   features, channels on sublanes, pixels on lanes
    # map_ref   : (1, T) f32   per-pixel attention scalar (broadcast over C)
    # scale_ref : (C, 1) f32   folded eval-mode BN scale
    # shift_ref : (C, 1) f32   folded eval-mode BN shift
    # w_ref     : (C, C) bf16  1x1 conv weight, (out_c, in_c)
    # out_ref   : (C, T) f32
    # BatchNorm (eval-mode affine) + ReLU, cast to bf16 for the MXU.
    x = jnp.maximum(feat_ref[...] * scale_ref[...] + shift_ref[...], 0.0)
    # 1x1 conv == channel matmul on the MXU, f32 accumulation.  Contraction is
    # over sublanes only, so OOB lanes of a partial tail block stay lane-local.
    y = jnp.dot(w_ref[...], x.astype(jnp.bfloat16),
                preferred_element_type=jnp.float32)
    # Residual merge (re-reads the VMEM-resident feat tile after the matmul so
    # no tile-sized f32 copy is held live across the MXU op).
    out_ref[...] = (feat_ref[...] + y * map_ref[...]).astype(out_ref.dtype)


def _round_up(x, m):
    return ((x + m - 1) // m) * m


def _num_tensorcores():
    """Best-effort TensorCore count of one device (megacore).  v5e/v6e -> 1;
    v7x-style megacore -> 2.  Unknown chips default to 2 (conservative for the
    load-balance heuristic)."""
    try:
        kind = jax.devices()[0].device_kind.lower()
    except Exception:
        return 2
    if any(tag in kind for tag in ("v2", "v3", "v5", "v6")):
        return 1
    return 2


def _pick_tile(n, hw):
    """Largest lane-dense tile (multiple of 256 up to TILE_HW_MAX, floor 128).
    Prefers tiles that divide HW exactly (no masked tail block).  The >=4-step
    load-balance rule is applied only on multi-TensorCore chips."""
    hw_cap = _round_up(hw, 128)
    cands = list(range(TILE_HW_MAX, 255, -256)) + [128]
    multi = _num_tensorcores() > 1

    def steps(t):
        return n * pl.cdiv(hw, t)

    for t in cands:                      # exact-division tiles first
        if t <= hw_cap and hw % t == 0 and (not multi or steps(t) >= 4):
            return t
    for t in cands:                      # otherwise allow a masked tail block
        if t <= hw_cap and (not multi or steps(t) >= 4):
            return t
    return 128


def attention_operate(feat_nchw, map_nchw, conv_w, bn_gamma, bn_beta,
                      bn_mean, bn_var, eps=1e-5, alias_feat_output=False):
    """feat_nchw: (N, 256, H, W) f32; map_nchw: (N, 1, H, W) f32.  Returns NCHW.

    Fused eval-mode BN -> ReLU -> 1x1 conv -> feat + conv_out * map.
    Set alias_feat_output=True when feat is dead after this call so the output
    reuses feat's HBM buffer."""
    N, Cin, H, W = feat_nchw.shape
    assert Cin == C
    HW = H * W

    # Native NCHW layout: contiguous (N, C, H*W) views -- no transposes, no
    # padding; ragged HW is handled by the cdiv grid with a masked tail block.
    feat = feat_nchw.reshape(N, C, HW)
    amap = map_nchw.reshape(N, 1, HW)

    # Eval-mode BN folded to per-channel scale/shift, as two (C, 1) blocks.
    scale = (bn_gamma / jnp.sqrt(bn_var + eps)).astype(jnp.float32)
    shift = (bn_beta - bn_mean * scale).astype(jnp.float32)
    scale = scale.reshape(C, 1)
    shift = shift.reshape(C, 1)

    # Conv2d weight (out_c, in_c, 1, 1) -> (out_c, in_c); bf16 for the MXU.
    w = conv_w.reshape(C, C).astype(jnp.bfloat16)

    tile = _pick_tile(N, HW)
    grid = (N, pl.cdiv(HW, tile))

    # Advisory cost estimate so XLA can schedule neighbouring backbone ops
    # around this memory-bound custom call.
    cost = pl.CostEstimate(
        flops=2 * C * C * HW * N,
        transcendentals=0,
        bytes_accessed=2 * N * C * HW * 4 + N * HW * 4 + C * C * 2 + 2 * C * 4)

    def run(single_buffer_consts):
        const_kwargs = (
            dict(pipeline_mode=pl.Buffered(1)) if single_buffer_consts else {})

        def const_spec(shape):
            return pl.BlockSpec(shape, lambda n, t: (0,) * len(shape),
                                **const_kwargs)

        extra = {"input_output_aliases": {0: 0}} if alias_feat_output else {}
        return pl.pallas_call(
            _fused_kernel,
            out_shape=jax.ShapeDtypeStruct((N, C, HW), feat_nchw.dtype),
            grid_spec=pltpu.PrefetchScalarGridSpec(
                num_scalar_prefetch=0,
                grid=grid,
                in_specs=[
                    pl.BlockSpec((None, C, tile), lambda n, t: (n, 0, t)),  # feat
                    pl.BlockSpec((None, 1, tile), lambda n, t: (n, 0, t)),  # map
                    const_spec((C, 1)),       # BN scale
                    const_spec((C, 1)),       # BN shift
                    const_spec((C, C)),       # conv weight (bf16)
                ],
                out_specs=pl.BlockSpec((None, C, tile), lambda n, t: (n, 0, t)),
            ),
            compiler_params=pltpu.CompilerParams(
                dimension_semantics=("parallel", "parallel"),
                vmem_limit_bytes=32 * 1024 * 1024),
            cost_estimate=cost,
            **extra,
        )(feat, amap, scale, shift, w)

    try:
        out = run(True)
    except Exception:
        # pipeline_mode=pl.Buffered(1) on grid-invariant operands not supported
        # by this JAX build; fall back to default double buffering (correctness
        # unaffected, ~260 KiB extra VMEM).
        out = run(False)

    return out.reshape(N, C, H, W)


def _reference(feat, amap, conv_w, gamma, beta, mean, var, eps=1e-5):
    # plain-JAX f32 reference of the fused forward (eval-mode BN)
    scale = gamma / jnp.sqrt(var + eps)
    shift = beta - mean * scale
    x = feat * scale[None, :, None, None] + shift[None, :, None, None]
    x = jnp.maximum(x, 0.0)
    y = jnp.einsum("oc,nchw->nohw", conv_w.reshape(C, C), x)
    return feat + y * amap


if __name__ == "__main__":
    key = jax.random.PRNGKey(0)
    k_feat, k_map, k_w, k_g, k_b, k_m, k_v = jax.random.split(key, 7)

    N, H, W = 2, 32, 32   # H*W = 1024 pixels per image

    feat = jax.random.normal(k_feat, (N, C, H, W), dtype=jnp.float32)
    amap = jax.random.uniform(k_map, (N, 1, H, W), dtype=jnp.float32)

    # Conv2d(256, 256, 1, bias=False) weight, init normal(0, sqrt(2/n))
    n_fan = 1 * 1 * C
    conv_w = jax.random.normal(k_w, (C, C, 1, 1), dtype=jnp.float32) \
        * math.sqrt(2.0 / n_fan)

    # BatchNorm2d(256) parameters / running stats (deterministic)
    bn_gamma = 1.0 + 0.1 * jax.random.normal(k_g, (C,), dtype=jnp.float32)
    bn_beta = 0.1 * jax.random.normal(k_b, (C,), dtype=jnp.float32)
    bn_mean = 0.1 * jax.random.normal(k_m, (C,), dtype=jnp.float32)
    bn_var = 1.0 + 0.1 * jax.random.uniform(k_v, (C,), dtype=jnp.float32)

    out = attention_operate(feat, amap, conv_w, bn_gamma, bn_beta,
                            bn_mean, bn_var)
    out = jax.block_until_ready(out)

    ref = _reference(feat, amap, conv_w, bn_gamma, bn_beta, bn_mean, bn_var)
    assert out.shape == (N, C, H, W)
    # bf16 matmul inputs (f32 accumulation) -> relaxed tolerance vs f32 ref
    assert jnp.allclose(out, ref, atol=5e-2, rtol=5e-2), "mismatch vs reference"

    print("KERNEL_OK")
</pallas_src>

<mosaic_0001>
module attributes {stable_mosaic.version = 11 : i64} {
  func.func @_fused_kernel(%arg0: i32, %arg1: i32, %arg2: memref<1x256x512xf32, #tpu.memory_space<vmem>>, %arg3: memref<1x1x512xf32, #tpu.memory_space<vmem>>, %arg4: memref<256x1xf32, #tpu.memory_space<vmem>>, %arg5: memref<256x1xf32, #tpu.memory_space<vmem>>, %arg6: memref<256x256xbf16, #tpu.memory_space<vmem>>, %arg7: memref<1x256x512xf32, #tpu.memory_space<vmem>>) attributes {dimension_semantics = [#tpu.dimension_semantics<parallel>, #tpu.dimension_semantics<parallel>], iteration_bounds = array<i64: 2, 2>, scalar_prefetch = 0 : i64, scratch_operands = 0 : i64, tpu.core_type = #tpu.core_type<tc>, window_params = [{transform_indices = @transform_0, window_bounds = array<i64: 1, 256, 512>}, {transform_indices = @transform_1, window_bounds = array<i64: 1, 1, 512>}, {pipeline_mode = #tpu.pipeline_mode<synchronous>, transform_indices = @transform_2, window_bounds = array<i64: 256, 1>}, {pipeline_mode = #tpu.pipeline_mode<synchronous>, transform_indices = @transform_3, window_bounds = array<i64: 256, 1>}, {pipeline_mode = #tpu.pipeline_mode<synchronous>, transform_indices = @transform_4, window_bounds = array<i64: 256, 256>}, {transform_indices = @transform_5, window_bounds = array<i64: 1, 256, 512>}]} {
    %c0 = arith.constant 0 : index
    %c0_0 = arith.constant 0 : index
    %c0_1 = arith.constant 0 : index
    %0 = vector.load %arg2[%c0, %c0_0, %c0_1] : memref<1x256x512xf32, #tpu.memory_space<vmem>>, vector<1x256x512xf32>
    %1 = vector.shape_cast %0 : vector<1x256x512xf32> to vector<256x512xf32>
    %c0_2 = arith.constant 0 : index
    %c0_3 = arith.constant 0 : index
    %2 = vector.load %arg4[%c0_2, %c0_3] : memref<256x1xf32, #tpu.memory_space<vmem>>, vector<256x1xf32>
    %3 = vector.broadcast %2 : vector<256x1xf32> to vector<256x512xf32>
    %4 = arith.mulf %1, %3 : vector<256x512xf32>
    %c0_4 = arith.constant 0 : index
    %c0_5 = arith.constant 0 : index
    %5 = vector.load %arg5[%c0_4, %c0_5] : memref<256x1xf32, #tpu.memory_space<vmem>>, vector<256x1xf32>
    %6 = vector.broadcast %5 : vector<256x1xf32> to vector<256x512xf32>
    %7 = arith.addf %4, %6 : vector<256x512xf32>
    %cst = arith.constant 0.000000e+00 : f32
    %8 = vector.broadcast %cst : f32 to vector<256x512xf32>
    %9 = arith.maximumf %7, %8 : vector<256x512xf32>
    %c0_6 = arith.constant 0 : index
    %c0_7 = arith.constant 0 : index
    %10 = vector.load %arg6[%c0_6, %c0_7] : memref<256x256xbf16, #tpu.memory_space<vmem>>, vector<256x256xbf16>
    %11 = arith.truncf %9 : vector<256x512xf32> to vector<256x512xbf16>
    %cst_8 = arith.constant dense<0.000000e+00> : vector<256x512xf32>
    %12 = tpu.matmul %10, %11, %cst_8 {dimension_numbers = #tpu.dot_dimension_numbers<[1], [0], [0], [1], [0, 0, 1, 1], [], []>} : vector<256x256xbf16>, vector<256x512xbf16>, vector<256x512xf32> -> vector<256x512xf32>
    %c0_9 = arith.constant 0 : index
    %c0_10 = arith.constant 0 : index
    %c0_11 = arith.constant 0 : index
    %13 = vector.load %arg2[%c0_9, %c0_10, %c0_11] : memref<1x256x512xf32, #tpu.memory_space<vmem>>, vector<1x256x512xf32>
    %14 = vector.shape_cast %13 : vector<1x256x512xf32> to vector<256x512xf32>
    %c0_12 = arith.constant 0 : index
    %c0_13 = arith.constant 0 : index
    %c0_14 = arith.constant 0 : index
    %15 = vector.load %arg3[%c0_12, %c0_13, %c0_14] : memref<1x1x512xf32, #tpu.memory_space<vmem>>, vector<1x1x512xf32>
    %16 = vector.shape_cast %15 : vector<1x1x512xf32> to vector<1x512xf32>
    %17 = vector.broadcast %16 : vector<1x512xf32> to vector<256x512xf32>
    %18 = arith.mulf %12, %17 : vector<256x512xf32>
    %19 = arith.addf %14, %18 : vector<256x512xf32>
    %c0_15 = arith.constant 0 : index
    %c0_16 = arith.constant 0 : index
    %c0_17 = arith.constant 0 : index
    %20 = vector.load %arg7[%c0_15, %c0_16, %c0_17] : memref<1x256x512xf32, #tpu.memory_space<vmem>>, vector<1x256x512xf32>
    %21 = vector.shape_cast %20 : vector<1x256x512xf32> to vector<256x512xf32>
    %22 = vector.shape_cast %19 : vector<256x512xf32> to vector<1x256x512xf32>
    tpu.vector_store %arg7[%c0_15, %c0_16, %c0_17], %22 {strides = array<i32>} : memref<1x256x512xf32, #tpu.memory_space<vmem>>, vector<1x256x512xf32>,
    return
  }
  func.func @transform_0(%arg0: i32, %arg1: i32) -> (i32, i32, i32) {
    %c0_i32 = arith.constant 0 : i32
    %c0_i32_0 = arith.constant 0 : i32
    return %arg0, %c0_i32, %arg1 : i32, i32, i32
  }
  func.func @transform_1(%arg0: i32, %arg1: i32) -> (i32, i32, i32) {
    %c0_i32 = arith.constant 0 : i32
    %c0_i32_0 = arith.constant 0 : i32
    return %arg0, %c0_i32, %arg1 : i32, i32, i32
  }
  func.func @transform_2(%arg0: i32, %arg1: i32) -> (i32, i32) {
    %c0_i32 = arith.constant 0 : i32
    %c0_i32_0 = arith.constant 0 : i32
    %c0_i32_1 = arith.constant 0 : i32
    return %c0_i32, %c0_i32_0 : i32, i32
  }
  func.func @transform_3(%arg0: i32, %arg1: i32) -> (i32, i32) {
    %c0_i32 = arith.constant 0 : i32
    %c0_i32_0 = arith.constant 0 : i32
    %c0_i32_1 = arith.constant 0 : i32
    return %c0_i32, %c0_i32_0 : i32, i32
  }
  func.func @transform_4(%arg0: i32, %arg1: i32) -> (i32, i32) {
    %c0_i32 = arith.constant 0 : i32
    %c0_i32_0 = arith.constant 0 : i32
    %c0_i32_1 = arith.constant 0 : i32
    return %c0_i32, %c0_i32_0 : i32, i32
  }
  func.func @transform_5(%arg0: i32, %arg1: i32) -> (i32, i32, i32) {
    %c0_i32 = arith.constant 0 : i32
    %c0_i32_0 = arith.constant 0 : i32
    return %arg0, %c0_i32, %arg1 : i32, i32, i32
  }
}

module attributes {stable_mosaic.version = 11 : i64} {
  func.func @_fused_kernel(%arg0: i32, %arg1: i32, %arg2: memref<1x256x512xf32, #tpu.memory_space<vmem>>, %arg3: memref<1x1x512xf32, #tpu.memory_space<vmem>>, %arg4: memref<256x1xf32, #tpu.memory_space<vmem>>, %arg5: memref<256x1xf32, #tpu.memory_space<vmem>>, %arg6: memref<256x256xbf16, #tpu.memory_space<vmem>>, %arg7: memref<1x256x512xf32, #tpu.memory_space<vmem>>) attributes {dimension_semantics = [#tpu.dimension_semantics<parallel>, #tpu.dimension_semantics<parallel>], iteration_bounds = array<i64: 2, 2>, scalar_prefetch = 0 : i64, scratch_operands = 0 : i64, tpu.core_type = #tpu.core_type<tc>, window_params = [{transform_indices = @transform_0, window_bounds = array<i64: 1, 256, 512>}, {transform_indices = @transform_1, window_bounds = array<i64: 1, 1, 512>}, {pipeline_mode = #tpu.pipeline_mode<synchronous>, transform_indices = @transform_2, window_bounds = array<i64: 256, 1>}, {pipeline_mode = #tpu.pipeline_mode<synchronous>, transform_indices = @transform_3, window_bounds = array<i64: 256, 1>}, {pipeline_mode = #tpu.pipeline_mode<synchronous>, transform_indices = @transform_4, window_bounds = array<i64: 256, 256>}, {transform_indices = @transform_5, window_bounds = array<i64: 1, 256, 512>}]} {
    %c0 = arith.constant 0 : index
    %c0_0 = arith.constant 0 : index
    %c0_1 = arith.constant 0 : index
    %0 = vector.load %arg2[%c0, %c0_0, %c0_1] : memref<1x256x512xf32, #tpu.memory_space<vmem>>, vector<1x256x512xf32>
    %1 = vector.shape_cast %0 : vector<1x256x512xf32> to vector<256x512xf32>
    %c0_2 = arith.constant 0 : index
    %c0_3 = arith.constant 0 : index
    %2 = vector.load %arg4[%c0_2, %c0_3] : memref<256x1xf32, #tpu.memory_space<vmem>>, vector<256x1xf32>
    %3 = vector.broadcast %2 : vector<256x1xf32> to vector<256x512xf32>
    %4 = arith.mulf %1, %3 : vector<256x512xf32>
    %c0_4 = arith.constant 0 : index
    %c0_5 = arith.constant 0 : index
    %5 = vector.load %arg5[%c0_4, %c0_5] : memref<256x1xf32, #tpu.memory_space<vmem>>, vector<256x1xf32>
    %6 = vector.broadcast %5 : vector<256x1xf32> to vector<256x512xf32>
    %7 = arith.addf %4, %6 : vector<256x512xf32>
    %cst = arith.constant 0.000000e+00 : f32
    %8 = vector.broadcast %cst : f32 to vector<256x512xf32>
    %9 = arith.maximumf %7, %8 : vector<256x512xf32>
    %c0_6 = arith.constant 0 : index
    %c0_7 = arith.constant 0 : index
    %10 = vector.load %arg6[%c0_6, %c0_7] : memref<256x256xbf16, #tpu.memory_space<vmem>>, vector<256x256xbf16>
    %11 = arith.truncf %9 : vector<256x512xf32> to vector<256x512xbf16>
    %cst_8 = arith.constant dense<0.000000e+00> : vector<256x512xf32>
    %12 = tpu.matmul %10, %11, %cst_8 {dimension_numbers = #tpu.dot_dimension_numbers<[1], [0], [0], [1], [0, 0, 1, 1], [], []>} : vector<256x256xbf16>, vector<256x512xbf16>, vector<256x512xf32> -> vector<256x512xf32>
    %c0_9 = arith.constant 0 : index
    %c0_10 = arith.constant 0 : index
    %c0_11 = arith.constant 0 : index
    %13 = vector.load %arg2[%c0_9, %c0_10, %c0_11] : memref<1x256x512xf32, #tpu.memory_space<vmem>>, vector<1x256x512xf32>
    %14 = vector.shape_cast %13 : vector<1x256x512xf32> to vector<256x512xf32>
    %c0_12 = arith.constant 0 : index
    %c0_13 = arith.constant 0 : index
    %c0_14 = arith.constant 0 : index
    %15 = vector.load %arg3[%c0_12, %c0_13, %c0_14] : memref<1x1x512xf32, #tpu.memory_space<vmem>>, vector<1x1x512xf32>
    %16 = vector.shape_cast %15 : vector<1x1x512xf32> to vector<1x512xf32>
    %17 = vector.broadcast %16 : vector<1x512xf32> to vector<256x512xf32>
    %18 = arith.mulf %12, %17 : vector<256x512xf32>
    %19 = arith.addf %14, %18 : vector<256x512xf32>
    %c0_15 = arith.constant 0 : index
    %c0_16 = arith.constant 0 : index
    %c0_17 = arith.constant 0 : index
    %20 = vector.load %arg7[%c0_15, %c0_16, %c0_17] : memref<1x256x512xf32, #tpu.memory_space<vmem>>, vector<1x256x512xf32>
    %21 = vector.shape_cast %20 : vector<1x256x512xf32> to vector<256x512xf32>
    %22 = vector.shape_cast %19 : vector<256x512xf32> to vector<1x256x512xf32>
    tpu.vector_store %arg7[%c0_15, %c0_16, %c0_17], %22 {strides = array<i32>} : memref<1x256x512xf32, #tpu.memory_space<vmem>>, vector<1x256x512xf32>,
    return
  }
  func.func @transform_0(%arg0: i32, %arg1: i32) -> (i32, i32, i32) {
    %c0_i32 = arith.constant 0 : i32
    %c0_i32_0 = arith.constant 0 : i32
    return %arg0, %c0_i32, %arg1 : i32, i32, i32
  }
  func.func @transform_1(%arg0: i32, %arg1: i32) -> (i32, i32, i32) {
    %c0_i32 = arith.constant 0 : i32
    %c0_i32_0 = arith.constant 0 : i32
    return %arg0, %c0_i32, %arg1 : i32, i32, i32
  }
  func.func @transform_2(%arg0: i32, %arg1: i32) -> (i32, i32) {
    %c0_i32 = arith.constant 0 : i32
    %c0_i32_0 = arith.constant 0 : i32
    %c0_i32_1 = arith.constant 0 : i32
    return %c0_i32, %c0_i32_0 : i32, i32
  }
  func.func @transform_3(%arg0: i32, %arg1: i32) -> (i32, i32) {
    %c0_i32 = arith.constant 0 : i32
    %c0_i32_0 = arith.constant 0 : i32
    %c0_i32_1 = arith.constant 0 : i32
    return %c0_i32, %c0_i32_0 : i32, i32
  }
  func.func @transform_4(%arg0: i32, %arg1: i32) -> (i32, i32) {
    %c0_i32 = arith.constant 0 : i32
    %c0_i32_0 = arith.constant 0 : i32
    %c0_i32_1 = arith.constant 0 : i32
    return %c0_i32, %c0_i32_0 : i32, i32
  }
  func.func @transform_5(%arg0: i32, %arg1: i32) -> (i32, i32, i32) {
    %c0_i32 = arith.constant 0 : i32
    %c0_i32_0 = arith.constant 0 : i32
    return %arg0, %c0_i32, %arg1 : i32, i32, i32
  }
}

</mosaic_0001>

<bundles_post_ra>
// kernel: tpu_custom_call.1
= control target key start
LH: loop header
LB: loop body
LE: loop exit
PB: predicated region body
PF: predicated region fallthrough
CT: control target
= control target key end

     0   :  { %s3986_s0 = inlined_call_operand.hbm [shape: f32[2,256,1024], index: 0, kind: input, shape index: {}]   ;;  %s3987_s1 = inlined_call_operand.hbm [shape: f32[2,1,1024], index: 1, kind: input, shape index: {}]   ;;  %s3988_s2 = inlined_call_operand.vmem [shape: f32[256,1], index: 2, kind: input, shape index: {}]   ;;  %s3989_s3 = inlined_call_operand.vmem [shape: f32[256,1], index: 3, kind: input, shape index: {}]   ;;  %s3990_s4 = inlined_call_operand.hbm [shape: bf16[256,256], index: 4, kind: input, shape index: {}]   ;;  %s3991_s5 = inlined_call_operand.hbm [shape: f32[2,256,1024], index: 5, kind: output, shape index: {}]  }
   0x1   :  { %4005 = sst [smem:[#allocation22_spill]] %s3986_s0 }
   0x2   :  { %4006 = sst [smem:[#allocation23_spill]] %s3990_s4 }
   0x3   :  { %4007 = sst [smem:[#allocation24_spill]] %s3991_s5 }
   0x4   :  { %10 = vsyncpa [#allocation3], 0 }
   0x5   :  { %12 = vsyncpa [#allocation3 + $0x1], 0 }
   0x6   :  { %13 = vsyncpa [#allocation6], 0 }
   0x7   :  { %15 = vsyncpa [#allocation6 + $0x1], 0 }
   0x8   :  { %16 = vsyncpa [#allocation4], 0 }
   0x9   :  { %18 = vsyncpa [#allocation4 + $0x1], 0  ;;  %s2981_s18 = smov 0   ;;  %s2983_s19 = smov 0  }
   0xa   :  { %s2985_s20 = smov 0   ;;  %s2987_s21 = smov 0  }
   0xb   :  { %s2989_s22 = smov 0   ;;  %s2991_s23 = smov 0  }
   0xc   :  { %s2993_s24 = smov 0   ;;  %s2995_s25 = smov 0  }
   0xd LB: > { %4008 = sst [smem:[#allocation13_spill]] %s2908_s18  ;;  %s3022_s26 = sadd.s32 4294967295, %s2936_s25   ;;  %s2936_s25 = sphi %s2995_s25, %s24_s25   ;;  %s2932_s24 = sphi %s2993_s24, %s4052_s24   ;;  %s2928_s23 = sphi %s2991_s23, %s4051_s23   ;;  %s2924_s22 = sphi %s2989_s22, %s4050_s22   ;;  %s2920_s21 = sphi %s2987_s21, %s4049_s21   ;;  %s2916_s20 = sphi %s2985_s20, %s4048_s20   ;;  %s2912_s19 = sphi %s2983_s19, %s4047_s19   ;;  %s2908_s18 = sphi %s2981_s18, %s4046_s18  }
   0xe   : > { %4009 = sst [smem:[#allocation14_spill]] %s2916_s20  ;;  %s2406_s27 = sadd.s32 4294967294, %s2936_s25  }
   0xf   : > { %4010 = sst [smem:[#allocation15_spill]] %s2920_s21  ;;  %p52_p0 = scmp.ne.s32.totalorder %s2916_s20, %s2912_s19 }
  0x10   : > { %4011 = sst [smem:[#allocation16_spill]] %s2924_s22  ;;  %p53_p1 = scmp.eq.s32.totalorder %s2936_s25, 0 }
  0x11   : > { %p58_p2 = scmp.ne.s32.totalorder %s2912_s19, %s2908_s18  ;;  %p3992_p3 = scmp.eq.s32.totalorder %s3022_s26, 0 }
  0x12   : > { %p175_p4 = scmp.eq.s32.totalorder %s3022_s26, 3  ;;  %p3033_p5 = por %p53_p1, %p52_p0 }
  0x13   : > { %p181_p6 = scmp.eq.s32.totalorder %s2406_s27, 3  ;;  %p3039_p7 = por %p3992_p3, %p58_p2 }
  0x14   : > { %p3043_p8 = por %p175_p4, %p52_p0  ;;  %p2407_p10 = scmp.ge.s32.totalorder %s2936_s25, 1 }
  0x15   : > { %s4013_s30 = scalar_select %p3039_p7, 1, 0 }
  0x16   : > { %s4014_s6 = scalar_select %p3043_p8, 1, 0 }
  0x17   : > { %p3047_p9 = por %p181_p6, %p58_p2  ;;  %p188_p11 = scmp.lt.s32.totalorder %s2936_s25, 5 }
  0x18   : > { %4015 = sst [smem:[#allocation17_spill]] %s4014_s6  ;;  %s2938_s9 = smov [#allocation7]  }
  0x19   : > { %s4016_s7 = scalar_select %p3047_p9, 1, 0 }
  0x1a   : > { %p3053_p12 = pnand %p2407_p10, %p188_p11  ;;  %s206_s10 = sshll.u32 %s2938_s9, 4  ;;  %s207_s10 = int_to_ptr.vmem [resolvable:$true] %s206_s10 }
  0x1b   : > { %4017 = sst [smem:[#allocation18_spill]] %s4016_s7  ;;  %p2487_p0 = scmp.lt.s32.totalorder %s2936_s25, 4 }
  0x1c   : > { %s4018_s8 = scalar_select %p3053_p12, 1, 0 }
  0x1d   : > { %p2471_p13 = pneg %p3053_p12  ;;  %p3068_p2 = pnand %p2487_p0, %p3033_p5 }
  0x1e   : > { %s4021_s4 = sld [smem:[#allocation23_spill]] }
  0x1f   : > { %p3062_p1 = pnand %p2471_p13, %p3992_p3 }
  0x20   : > { %s4020_s12 = scalar_select %p3068_p2, 1, 0 }
  0x21   : > { %p2744_p6 = pneg %p3062_p1 }
  0x24   : > { %s2742_s15 = scalar_lea.hbm %s4021_s4, 4096 }
  0x25   : > { %p2743_p4 = scmp.ne.s32.totalorder %s4021_s4, %s2742_s15  ;;  %p2749_p13 = scmp.lt.u32.totalorder %s2742_s15, %s4021_s4 }
  0x27   : > { %p2745_p10 = pnand %p2744_p6, %p2743_p4 }
  0x29   : > { %p2746_p11 = pneg %p2745_p10 }
  0x2b   : > { %p2751_p5 = pnand %p2749_p13, %p2746_p11 }
  0x2d   : > { %2754 = shalt.err (!%p2751_p5)
}
  0x2e   : > { %s2755_s29 = scalar_lea.vmem %s207_s10, 4096  ;;  %p2763_p8 = scmp.lt.s32.totalorder %s207_s10, %s207_s10 }
  0x2f   : > { %p2756_p0 = scmp.ne.s32.totalorder %s207_s10, %s2755_s29  ;;  %p2764_p7 = scmp.lt.s32.totalorder %s2755_s29, %s2755_s29 }
  0x31   : > { %p2758_p3 = pnand %p2756_p0, %p2744_p6  ;;  %p2765_p12 = por %p2764_p7, %p2763_p8 }
  0x33   : > { %p2759_p9 = pneg %p2758_p3 }
  0x35   : > { %p2766_p2 = pnand %p2765_p12, %p2759_p9 }
  0x37   : > { %2769 = shalt.err (!%p2766_p2)
}
  0x38   : > { %s2939_s13 = smov 128   ;;  %s2940_s14 = smov 8  }
  0x39   : > { %2474 = dma.hbm_to_vmem [thread:$0]  (!%p3062_p1), %s4021_s4, 4096, %s207_s10, [#allocation6], %s2939_s13, %s2939_s13, %s2940_s14  }
  0x3a   : > { %s33_s17 = sadd.s32 1, %s2928_s23  ;;  %s36_s27 = sadd.s32 1, %s2932_s24 }
  0x3b   : > { %p34_p3 = scmp.ge.s32.totalorder %s33_s17, 2  ;;  %s3091_s9 = sand.u32 1, %s2916_s20  }
  0x3c   : > { %s2411_s29 = sshll.u32 %s2928_s23, 2  ;;  %s2410_s15 = sshll.u32 %s3091_s9, 10 }
  0x3d   : > { %s4054_s17 = smov (%p34_p3, %s33_s17), 0  ;;  %s4056_s27 = smov (!%p34_p3, %s36_s27), %s2932_s24 }
  0x3e   : > { %4022 = sst [smem:[#allocation19_spill]] %s4054_s17  ;;  %s41_s11 = ssub.s32 %s2928_s23, %s4054_s17 }
  0x3f   : > { %p38_p7 = scmp.ge.s32.totalorder %s4056_s27, 2  ;;  %s2412_s10 = sshll.u32 %s2932_s24, 8 }
  0x40   : > { %s230_s13 = sadd.s32 %s2412_s10, %s2411_s29  ;;  %s224_s14 = scalar_lea.vmem [#allocation2], %s2410_s15 }
  0x41   : > { %s4058_s27 = smov (%p38_p7, %s4056_s27), 0  ;;  %s233_s16 = sshll.u32 %s224_s14, 4  ;;  %s3112_s16 = int_to_ptr.vmem [resolvable:$true] %s233_s16 }
  0x42   : > { %4023 = sst [smem:[#allocation20_spill]] %s4058_s27  ;;  %s40_s28 = ssub.s32 %s2932_s24, %s4058_s27 }
  0x43   : > { %s2413_s4 = sshll.u32 %s230_s13, 7  ;;  %s42_s7 = sor.u32 %s41_s11, %s40_s28 }
  0x44   : > { %s4024_s0 = sld [smem:[#allocation22_spill]]  ;;  %p43_p8 = scmp.eq.s32.totalorder %s42_s7, 0 }
  0x45   : > { %s4025_s6 = sadd.s32 1, %s2916_s20  ;;  %s221_s10 = scalar_lea.sflag [#allocation3], %s3091_s9 }
  0x46   : > { %s3117_s22 = scalar_select %p43_p8, %s2916_s20, %s4025_s6  }
  0x47   : > { %p4027_p12 = scmp.ne.s32.totalorder %s4020_s12, 0 }
  0x48   : > { %4026 = sst [smem:[#allocation21_spill]] %s3117_s22 }
  0x49   : > { %p2772_p1 = pneg %p4027_p12 }
  0x4a   : > { %s3110_s17 = scalar_lea.hbm %s4024_s0, %s2413_s4  ;;  %s2775_s18 = scalar_lea.hbm %s4024_s0, 65536 }
  0x4b   : > { %s2770_s14 = scalar_lea.hbm %s3110_s17, 16384  ;;  %p2776_p6 = scmp.lt.u32.totalorder %s3110_s17, %s4024_s0 }
  0x4c   : > { %p2771_p9 = scmp.ne.s32.totalorder %s3110_s17, %s2770_s14  ;;  %p2777_p10 = scmp.lt.u32.totalorder %s2775_s18, %s2770_s14 }
  0x4d   : > { %p2779_p13 = scmp.lt.u32.totalorder %s2770_s14, %s3110_s17 }
  0x4e   : > { %p2773_p2 = pnand %p2772_p1, %p2771_p9  ;;  %p2778_p11 = por %p2777_p10, %p2776_p6 }
  0x50   : > { %p2774_p4 = pneg %p2773_p2  ;;  %p2780_p5 = por %p2779_p13, %p2778_p11 }
  0x52   : > { %p2781_p0 = pnand %p2780_p5, %p2774_p4 }
  0x54   : > { %2784 = shalt.err (!%p2781_p0)
}
  0x55   : > { %s2785_s6 = scalar_lea.vmem %s3112_s16, 16384  ;;  %s2941_s11 = smov [#allocation2]  }
  0x56   : > { %p2786_p3 = scmp.ne.s32.totalorder %s3112_s16, %s2785_s6  ;;  %s2790_s13 = sshll.u32 %s2941_s11, 4  ;;  %s2791_s13 = int_to_ptr.vmem [resolvable:$false] %s2790_s13 }
  0x57   : > { %s2792_s4 = scalar_lea.vmem %s2791_s13, 32768  ;;  %p2793_p9 = scmp.lt.s32.totalorder %s3112_s16, %s2791_s13 }
  0x58   : > { %p2788_p7 = pnand %p2786_p3, %p2772_p1  ;;  %p2794_p2 = scmp.lt.s32.totalorder %s2792_s4, %s2785_s6 }
  0x5a   : > { %p2789_p8 = pneg %p2788_p7  ;;  %p2795_p6 = por %p2794_p2, %p2793_p9 }
  0x5c   : > { %p2796_p10 = pnand %p2795_p6, %p2789_p8 }
  0x5e   : > { %2799 = shalt.err (!%p2796_p10)
}
  0x5f   : > { %s2942_s14 = smov 1024   ;;  %s2943_s5 = smov 512  }
  0x60   : > { %s2944_s18 = smov 32   ;;  %s2414_s28 = sshll.u32 %s3091_s9, 2 }
  0x61   : > { %2478 = dma.hbm_to_vmem [thread:$0]  (!%p4027_p12), %s3110_s17, 16384, %s3112_s16, %s221_s10, %s2942_s14, %s2943_s5, %s2944_s18  }
  0x62   : > { %s2416_s7 = sshll.u32 %s2932_s24, 3  ;;  %s247_s11 = scalar_lea.vmem [#allocation5], %s2414_s28 }
  0x63   : > { %s253_s6 = sadd.s32 %s2416_s7, %s2411_s29  ;;  %s257_s13 = sshll.u32 %s247_s11, 4  ;;  %s3152_s13 = int_to_ptr.vmem [resolvable:$true] %s257_s13 }
  0x64   : > { %s2417_s4 = sshll.u32 %s253_s6, 4  ;;  %s4028_s22 = sand.u32 1, %s2936_s25  }
  0x65   : > { %s255_s27 = scalar_lea.hbm %s3987_s1, %s2417_s4  ;;  %s244_s20 = scalar_lea.sflag [#allocation6], %s4028_s22 }
  0x66   : > { %s2800_s21 = scalar_lea.hbm %s255_s27, 64  ;;  %s2805_s29 = scalar_lea.hbm %s3987_s1, 256 }
  0x67   : > { %p2801_p4 = scmp.ne.s32.totalorder %s255_s27, %s2800_s21  ;;  %p2806_p5 = scmp.lt.u32.totalorder %s255_s27, %s3987_s1 }
  0x68   : > { %p2807_p0 = scmp.lt.u32.totalorder %s2805_s29, %s2800_s21  ;;  %p2809_p7 = scmp.lt.u32.totalorder %s2800_s21, %s255_s27 }
  0x69   : > { %p2803_p11 = pnand %p2801_p4, %p2772_p1 }
  0x6a   : > { %p2808_p3 = por %p2807_p0, %p2806_p5 }
  0x6b   : > { %p2804_p13 = pneg %p2803_p11 }
  0x6c   : > { %p2810_p8 = por %p2809_p7, %p2808_p3 }
  0x6e   : > { %p2811_p9 = pnand %p2810_p8, %p2804_p13 }
  0x70   : > { %2814 = shalt.err (!%p2811_p9)
}
  0x71   : > { %s2815_s0 = scalar_lea.vmem %s3152_s13, 64  ;;  %s2945_s22 = smov [#allocation5]  }
  0x72   : > { %p2816_p2 = scmp.ne.s32.totalorder %s3152_s13, %s2815_s0  ;;  %s2820_s15 = sshll.u32 %s2945_s22, 4  ;;  %s2821_s15 = int_to_ptr.vmem [resolvable:$false] %s2820_s15 }
  0x73   : > { %s2822_s14 = scalar_lea.vmem %s2821_s15, 128  ;;  %p2823_p4 = scmp.lt.s32.totalorder %s3152_s13, %s2821_s15 }
  0x74   : > { %p2818_p6 = pnand %p2816_p2, %p2772_p1  ;;  %p2824_p11 = scmp.lt.s32.totalorder %s2822_s14, %s2815_s0 }
  0x76   : > { %p2819_p10 = pneg %p2818_p6  ;;  %p2825_p5 = por %p2824_p11, %p2823_p4 }
  0x78   : > { %p2826_p0 = pnand %p2825_p5, %p2819_p10 }
  0x7a   : > { %2829 = shalt.err (!%p2826_p0)
}
  0x7b   : > { %2481 = dma.hbm_to_vmem [thread:$0]  (!%p4027_p12), %s255_s27, 64, %s3152_s13, %s244_s20  }
  0x7c   : > { %p4029_p13 = scmp.ne.s32.totalorder %s4018_s8, 0 }
  0x7d   : > { %s3180_s21 = sand.u32 (!%p4029_p13), 1, %s2912_s19   ;;  %p4030_p1 = scmp.ne.s32.totalorder (!%p4029_p13), %s4013_s30, 0 }
  0x7e   : > { %266 = sbr.rel (%p4029_p13) target bundleno = 760 (0x2f8), region = 40  ;;  %s2419_s5 = sshll.u32 (!%p4029_p13), %s3180_s21, 10 }
  0x7f   : > { %s269_s18 = scalar_lea.sflag (!%p4029_p13), [#allocation3], %s3180_s21  ;;  %s3186_s28 = scalar_lea.vmem (!%p4029_p13), [#allocation2], %s2419_s5 }
  0x85   : > { %2891 = dma.done.wait (%p4030_p1), %s269_s18, 16384  }
  0x86   : > { %2893 = vsyncadd (%p4030_p1), %s269_s18, 4294950912  ;;  %s277_s20 = sand.u32 1, %s3022_s26   ;;  %s2420_s8 = sshll.u32 %s3180_s21, 2 }
  0x87   : > { %s278_s12 = scalar_lea.sflag [#allocation6], %s277_s20  ;;  %s3194_s27 = scalar_lea.vmem [#allocation5], %s2420_s8 }
  0x88   : > { %2895 = dma.done.wait (%p4030_p1), %s278_s12, 64  }
  0x89   : > { %2897 = vsyncadd (%p4030_p1), %s278_s12, 4294967232  ;;  %p4031_p12 = scmp.eq.s32.totalorder %s3022_s26, 0 }
  0x8b   : > { %2899 = dma.done.wait (%p4031_p12), [#allocation6], 4096   ;;  %p4032_p3 = pmov %p4031_p12 }
  0x8c   : > { %v2946_v0 = vmov 0   ;;  %v768_v1 = vld [vmem:[%s3989_s3] sm:$0xff]  ;;  %v769_v3 = vld [vmem:[%s3989_s3 + $0x8] sm:$0xff]  ;;  %v451_v5 = vld [vmem:[%s3988_s2 + $0x18] sm:$0xff]  ;;  %s4034_s9 = sld [smem:[#allocation16_spill]]  ;;  %s4035_s15 = sld [smem:[#allocation17_spill]] }
  0x8d   : > { %2901 = vsyncadd (%p4032_p3), [#allocation6], 4294963200  ;;  %2565 = vset.pattern.permute.xlu1 %v2946_v0  ;;  %2564 = vset.pattern.permute.xlu0 %v2946_v0  ;;  %v448_v2 = vld [vmem:[%s3988_s2] sm:$0xff]  ;;  %v449_v4 = vld [vmem:[%s3988_s2 + $0x8] sm:$0xff]  ;;  %s4036_s20 = sld [smem:[#allocation24_spill]]  ;;  %s2265_s7 = scalar_lea.sflag [#allocation4], %s3180_s21 }
  0x8e   : > { %802 = vperm.xlu1 %2565, %v768_v1   ;;  %482 = vperm.xlu0 %2564, %v448_v2   ;;  %v450_v6 = vld [vmem:[%s3988_s2 + $0x10] sm:$0xff]  ;;  %v771_v7 = vld [vmem:[%s3989_s3 + $0x18] sm:$0xff]  ;;  %v453_v9 = vld [vmem:[%s3988_s2 + $0x28] sm:$0xff]  ;;  %s2947_s11 = smov [#allocation8]  }
  0x8f   : > { %v770_v8 = vld [vmem:[%s3989_s3 + $0x10] sm:$0xff]  ;;  %v452_v10 = vld [vmem:[%s3988_s2 + $0x20] sm:$0xff]  ;;  %v773_v11 = vld [vmem:[%s3989_s3 + $0x28] sm:$0xff]  ;;  %s2834_s13 = sshll.u32 %s2947_s11, 4  ;;  %s2835_s13 = int_to_ptr.vmem [resolvable:$false] %s2834_s13 }
  0x90   : > { %v772_v12 = vld [vmem:[%s3989_s3 + $0x20] sm:$0xff]  ;;  %v455_v13 = vld [vmem:[%s3988_s2 + $0x38] sm:$0xff]  ;;  %v454_v14 = vld [vmem:[%s3988_s2 + $0x30] sm:$0xff]  ;;  %s2836_s30 = scalar_lea.vmem %s2835_s13, 32768 }
  0x91   : > { %v775_v15 = vld [vmem:[%s3989_s3 + $0x38] sm:$0xff]  ;;  %v774_v16 = vld [vmem:[%s3989_s3 + $0x30] sm:$0xff]  ;;  %v457_v17 = vld [vmem:[%s3988_s2 + $0x48] sm:$0xff] }
  0x92   : > { %807 = vperm.xlu1 %2565, %v769_v3   ;;  %487 = vperm.xlu0 %2564, %v449_v4   ;;  %v456_v18 = vld [vmem:[%s3988_s2 + $0x40] sm:$0xff]  ;;  %v777_v19 = vld [vmem:[%s3989_s3 + $0x48] sm:$0xff]  ;;  %v459_v21 = vld [vmem:[%s3988_s2 + $0x58] sm:$0xff]  ;;  %s2457_s16 = sshll.u32 %s4034_s9, 8  ;;  %p4038_p8 = scmp.ne.s32.totalorder %s4035_s15, 0 }
  0x93   : > { %v776_v20 = vld [vmem:[%s3989_s3 + $0x40] sm:$0xff]  ;;  %v458_v22 = vld [vmem:[%s3988_s2 + $0x50] sm:$0xff]  ;;  %v779_v23 = vld [vmem:[%s3989_s3 + $0x58] sm:$0xff]  ;;  %s4037_s8 = smov %s4036_s20 }
  0x94   : > { %v778_v24 = vld [vmem:[%s3989_s3 + $0x50] sm:$0xff]  ;;  %v461_v25 = vld [vmem:[%s3988_s2 + $0x68] sm:$0xff]  ;;  %v460_v26 = vld [vmem:[%s3988_s2 + $0x60] sm:$0xff] }
  0x95   : > { %v781_v27 = vld [vmem:[%s3989_s3 + $0x68] sm:$0xff]  ;;  %v780_v28 = vld [vmem:[%s3989_s3 + $0x60] sm:$0xff]  ;;  %v463_v29 = vld [vmem:[%s3988_s2 + $0x78] sm:$0xff] }
  0x96   : > { %497 = vperm.xlu1 %2565, %v451_v5   ;;  %492 = vperm.xlu0 %2564, %v450_v6   ;;  %v462_v30 = vld [vmem:[%s3988_s2 + $0x70] sm:$0xff]  ;;  %v783_v31 = vld [vmem:[%s3989_s3 + $0x78] sm:$0xff]  ;;  %v465_v33 = vld [vmem:[%s3988_s2 + $0x88] sm:$0xff] }
  0x97   : > { %v782_v32 = vld [vmem:[%s3989_s3 + $0x70] sm:$0xff]  ;;  %v464_v34 = vld [vmem:[%s3988_s2 + $0x80] sm:$0xff]  ;;  %v785_v35 = vld [vmem:[%s3989_s3 + $0x88] sm:$0xff] }
  0x98   : > { %v784_v36 = vld [vmem:[%s3989_s3 + $0x80] sm:$0xff]  ;;  %v467_v37 = vld [vmem:[%s3988_s2 + $0x98] sm:$0xff]  ;;  %v466_v38 = vld [vmem:[%s3988_s2 + $0x90] sm:$0xff] }
  0x99   : > { %v787_v39 = vld [vmem:[%s3989_s3 + $0x98] sm:$0xff]  ;;  %v786_v40 = vld [vmem:[%s3989_s3 + $0x90] sm:$0xff]  ;;  %v469_v41 = vld [vmem:[%s3988_s2 + $0xa8] sm:$0xff] }
  0x9a   : > { %817 = vperm.xlu1 %2565, %v771_v7   ;;  %812 = vperm.xlu0 %2564, %v770_v8   ;;  %v468_v42 = vld [vmem:[%s3988_s2 + $0xa0] sm:$0xff]  ;;  %v789_v43 = vld [vmem:[%s3989_s3 + $0xa8] sm:$0xff]  ;;  %v471_v45 = vld [vmem:[%s3988_s2 + $0xb8] sm:$0xff] }
  0x9b   : > { %v788_v44 = vld [vmem:[%s3989_s3 + $0xa0] sm:$0xff]  ;;  %v470_v46 = vld [vmem:[%s3988_s2 + $0xb0] sm:$0xff]  ;;  %v791_v47 = vld [vmem:[%s3989_s3 + $0xb8] sm:$0xff] }
  0x9c   : > { %v790_v48 = vld [vmem:[%s3989_s3 + $0xb0] sm:$0xff]  ;;  %v473_v49 = vld [vmem:[%s3988_s2 + $0xc8] sm:$0xff]  ;;  %v472_v50 = vld [vmem:[%s3988_s2 + $0xc0] sm:$0xff] }
  0x9d   : > { %v793_v51 = vld [vmem:[%s3989_s3 + $0xc8] sm:$0xff]  ;;  %v792_v52 = vld [vmem:[%s3989_s3 + $0xc0] sm:$0xff]  ;;  %v475_v53 = vld [vmem:[%s3988_s2 + $0xd8] sm:$0xff] }
  0x9e   : > { %507 = vperm.xlu1 %2565, %v453_v9   ;;  %502 = vperm.xlu0 %2564, %v452_v10   ;;  %v474_v54 = vld [vmem:[%s3988_s2 + $0xd0] sm:$0xff]  ;;  %v795_v55 = vld [vmem:[%s3989_s3 + $0xd8] sm:$0xff]  ;;  %v477_v57 = vld [vmem:[%s3988_s2 + $0xe8] sm:$0xff] }
  0x9f   : > { %v794_v56 = vld [vmem:[%s3989_s3 + $0xd0] sm:$0xff]  ;;  %v476_v58 = vld [vmem:[%s3988_s2 + $0xe0] sm:$0xff]  ;;  %v797_v59 = vld [vmem:[%s3989_s3 + $0xe8] sm:$0xff] }
  0xa0   : > { %v796_v60 = vld [vmem:[%s3989_s3 + $0xe0] sm:$0xff]  ;;  %v479_v61 = vld [vmem:[%s3988_s2 + $0xf8] sm:$0xff]  ;;  %v478_v62 = vld [vmem:[%s3988_s2 + $0xf0] sm:$0xff] }
  0xa1   : > { %v799_v63 = vld [vmem:[%s3989_s3 + $0xf8] sm:$0xff]  ;;  %v798_v0 = vld [vmem:[%s3989_s3 + $0xf0] sm:$0xff]  ;;  %v320_v1 = vld [vmem:[%s3186_s28] sm:$0xff] }
  0xa2   : > { %827 = vperm.xlu1 %2565, %v773_v11   ;;  %822 = vperm.xlu0 %2564, %v772_v12   ;;  %v322_v2 = vld [vmem:[%s3186_s28 + $0x10] sm:$0xff]  ;;  %v321_v3 = vld [vmem:[%s3186_s28 + $0x8] sm:$0xff]  ;;  %v323_v4 = vld [vmem:[%s3186_s28 + $0x18] sm:$0xff] }
  0xa3   : > { %v324_v11 = vld [vmem:[%s3186_s28 + $0x20] sm:$0xff]  ;;  %v326_v12 = vld [vmem:[%s3186_s28 + $0x30] sm:$0xff] }
  0xa6   : > { %517 = vperm.xlu1 %2565, %v455_v13   ;;  %512 = vperm.xlu0 %2564, %v454_v14   ;;  %v325_v13 = vld [vmem:[%s3186_s28 + $0x28] sm:$0xff]  ;;  %v327_v14 = vld [vmem:[%s3186_s28 + $0x38] sm:$0xff] }
  0xaa   : > { %837 = vperm.xlu1 %2565, %v775_v15   ;;  %832 = vperm.xlu0 %2564, %v774_v16  }
  0xae   : > { %527 = vperm.xlu1 %2565, %v457_v17   ;;  %522 = vperm.xlu0 %2564, %v456_v18  }
  0xb2   : > { %847 = vperm.xlu1 %2565, %v777_v19   ;;  %842 = vperm.xlu0 %2564, %v776_v20  }
  0xb6   : > { %537 = vperm.xlu1 %2565, %v459_v21   ;;  %532 = vperm.xlu0 %2564, %v458_v22  }
  0xba   : > { %857 = vperm.xlu1 %2565, %v779_v23   ;;  %852 = vperm.xlu0 %2564, %v778_v24   ;;  %v332_v24 = vld [vmem:[%s3186_s28 + $0x60] sm:$0xff] }
  0xbe   : > { %547 = vperm.xlu1 %2565, %v461_v25   ;;  %542 = vperm.xlu0 %2564, %v460_v26   ;;  %v333_v25 = vld [vmem:[%s3186_s28 + $0x68] sm:$0xff] }
  0xc2   : > { %867 = vperm.xlu1 %2565, %v781_v27   ;;  %862 = vperm.xlu0 %2564, %v780_v28   ;;  %v334_v27 = vld [vmem:[%s3186_s28 + $0x70] sm:$0xff]  ;;  %v335_v28 = vld [vmem:[%s3186_s28 + $0x78] sm:$0xff] }
  0xc6   : > { %557 = vperm.xlu1 %2565, %v463_v29   ;;  %552 = vperm.xlu0 %2564, %v462_v30  }
  0xca   : > { %877 = vperm.xlu1 %2565, %v783_v31   ;;  %872 = vperm.xlu0 %2564, %v782_v32   ;;  %v2568_v32 = vld [vmem:[#allocation7 + $0x4] ss:$8 sps:$4 sm:$0xff]  }
  0xcb   : > { %1504 = vmatprep.mubr.bf16.mxu0 %v2568_v32  ;;  %1697 = vmatprep.mubr.bf16.mxu1 %v2568_v32 }
  0xce   : > { %567 = vperm.xlu1 %2565, %v465_v33   ;;  %562 = vperm.xlu0 %2564, %v464_v34  }
  0xd2   : > { %887 = vperm.xlu1 %2565, %v785_v35   ;;  %882 = vperm.xlu0 %2564, %v784_v36   ;;  %v328_v35 = vld [vmem:[%s3186_s28 + $0x40] sm:$0xff]  ;;  %v329_v36 = vld [vmem:[%s3186_s28 + $0x48] sm:$0xff] }
  0xd6   : > { %577 = vperm.xlu1 %2565, %v467_v37   ;;  %572 = vperm.xlu0 %2564, %v466_v38   ;;  %v330_v38 = vld [vmem:[%s3186_s28 + $0x50] sm:$0xff] }
  0xda   : > { %897 = vperm.xlu1 %2565, %v787_v39   ;;  %892 = vperm.xlu0 %2564, %v786_v40   ;;  %v331_v39 = vld [vmem:[%s3186_s28 + $0x58] sm:$0xff] }
  0xde   : > { %587 = vperm.xlu1 %2565, %v469_v41   ;;  %582 = vperm.xlu0 %2564, %v468_v42  }
  0xe2   : > { %907 = vperm.xlu1 %2565, %v789_v43   ;;  %902 = vperm.xlu0 %2564, %v788_v44  }
  0xe6   : > { %597 = vperm.xlu1 %2565, %v471_v45   ;;  %592 = vperm.xlu0 %2564, %v470_v46  }
  0xea   : > { %917 = vperm.xlu1 %2565, %v791_v47   ;;  %912 = vperm.xlu0 %2564, %v790_v48  }
  0xee   : > { %607 = vperm.xlu1 %2565, %v473_v49   ;;  %602 = vperm.xlu0 %2564, %v472_v50  }
  0xf2   : > { %927 = vperm.xlu1 %2565, %v793_v51   ;;  %922 = vperm.xlu0 %2564, %v792_v52  }
  0xf6   : > { %617 = vperm.xlu1 %2565, %v475_v53   ;;  %612 = vperm.xlu0 %2564, %v474_v54  }
  0xfa   : > { %937 = vperm.xlu1 %2565, %v795_v55   ;;  %932 = vperm.xlu0 %2564, %v794_v56  }
  0xfe   : > { %627 = vperm.xlu1 %2565, %v477_v57   ;;  %622 = vperm.xlu0 %2564, %v476_v58  }
 0x102   : > { %947 = vperm.xlu1 %2565, %v797_v59   ;;  %942 = vperm.xlu0 %2564, %v796_v60  }
 0x106   : > { %637 = vperm.xlu1 %2565, %v479_v61   ;;  %632 = vperm.xlu0 %2564, %v478_v62  }
 0x10a   : > { %957 = vperm.xlu1 %2565, %v799_v63   ;;  %952 = vperm.xlu0 %2564, %v798_v0  }
 0x10d   : > { %v803_v5 = vpop.permute.xlu1 %802  ;;  %v483_v6 = vpop.permute.xlu0 %482 }
 0x10e   : > { %v640_v7 = vmul.f32 %v483_v6, %v320_v1  ;;  %v642_v8 = vmul.f32 %v483_v6, %v322_v2  ;;  %v641_v9 = vmul.f32 %v483_v6, %v321_v3  ;;  %v643_v10 = vmul.f32 %v483_v6, %v323_v4  ;;  %v340_v2 = vld [vmem:[%s3186_s28 + $0xa0] sm:$0xff]  ;;  %v341_v3 = vld [vmem:[%s3186_s28 + $0xa8] sm:$0xff] }
 0x110   : > { %v961_v17 = vadd.f32 %v803_v5, %v641_v9  ;;  %v963_v18 = vadd.f32 %v803_v5, %v643_v10  ;;  %v960_v19 = vadd.f32 %v803_v5, %v640_v7  ;;  %v962_v23 = vadd.f32 %v803_v5, %v642_v8  ;;  %v342_v8 = vld [vmem:[%s3186_s28 + $0xb0] sm:$0xff]  ;;  %v343_v9 = vld [vmem:[%s3186_s28 + $0xb8] sm:$0xff]  ;;  %v336_v10 = vld [vmem:[%s3186_s28 + $0x80] sm:$0xff] }
 0x111   : > { %v808_v15 = vpop.permute.xlu1 %807  ;;  %v488_v16 = vpop.permute.xlu0 %487 }
 0x112   : > { %v644_v20 = vmul.f32 %v488_v16, %v324_v11  ;;  %v646_v21 = vmul.f32 %v488_v16, %v326_v12  ;;  %v645_v22 = vmul.f32 %v488_v16, %v325_v13  ;;  %v647_v26 = vmul.f32 %v488_v16, %v327_v14  ;;  %v337_v13 = vld [vmem:[%s3186_s28 + $0x88] sm:$0xff]  ;;  %v338_v14 = vld [vmem:[%s3186_s28 + $0x90] sm:$0xff] }
 0x113   : > { %v1089_v40 = vmax.f32 %v961_v17, 0.0  ;;  %v1091_v41 = vmax.f32 %v963_v18, 0.0  ;;  %v1088_v42 = vmax.f32 %v960_v19, 0.0  ;;  %v1090_v43 = vmax.f32 %v962_v23, 0.0 }
 0x114   : > { %v965_v29 = vadd.f32 %v808_v15, %v645_v22  ;;  %v964_v30 = vadd.f32 %v808_v15, %v644_v20  ;;  %v966_v31 = vadd.f32 %v808_v15, %v646_v21  ;;  %v967_v37 = vadd.f32 %v808_v15, %v647_v26  ;;  %v339_v21 = vld [vmem:[%s3186_s28 + $0x98] sm:$0xff] }
 0x115   : > { %v498_v33 = vpop.permute.xlu1 %497  ;;  %v493_v34 = vpop.permute.xlu0 %492 }
 0x116   : > { %v652_v44 = vmul.f32 %v498_v33, %v332_v24  ;;  %v653_v45 = vmul.f32 %v498_v33, %v333_v25  ;;  %v654_v46 = vmul.f32 %v498_v33, %v334_v27  ;;  %v655_v47 = vmul.f32 %v498_v33, %v335_v28 }
 0x117   : > { %v1093_v48 = vmax.f32 %v965_v29, 0.0  ;;  %v1095_v49 = vmax.f32 %v967_v37, 0.0  ;;  %v1092_v50 = vmax.f32 %v964_v30, 0.0  ;;  %v1094_v51 = vmax.f32 %v966_v31, 0.0 }
 0x118   : > { %v648_v52 = vmul.f32 %v493_v34, %v328_v35  ;;  %v649_v53 = vmul.f32 %v493_v34, %v329_v36  ;;  %v650_v54 = vmul.f32 %v493_v34, %v330_v38  ;;  %v651_v55 = vmul.f32 %v493_v34, %v331_v39 }
 0x119   : > { %v818_v56 = vpop.permute.xlu1 %817  ;;  %v813_v57 = vpop.permute.xlu0 %812  ;;  %v1249_v4 = vpack.c.bf16 %v1093_v48, %v1089_v40  ;;  %v1251_v5 = vpack.c.bf16 %v1095_v49, %v1091_v41  ;;  %v1248_v6 = vpack.c.bf16 %v1092_v50, %v1088_v42  ;;  %v1250_v7 = vpack.c.bf16 %v1094_v51, %v1090_v43  ;;  %v350_v48 = vld [vmem:[%s3186_s28 + $0xf0] sm:$0xff]  ;;  %v351_v49 = vld [vmem:[%s3186_s28 + $0xf8] sm:$0xff] }
 0x11a   : > { %v972_v58 = vadd.f32 %v818_v56, %v652_v44  ;;  %v973_v59 = vadd.f32 %v818_v56, %v653_v45  ;;  %v974_v60 = vadd.f32 %v818_v56, %v654_v46  ;;  %v975_v61 = vadd.f32 %v818_v56, %v655_v47  ;;  %v348_v44 = vld [vmem:[%s3186_s28 + $0xe0] sm:$0xff]  ;;  %v349_v47 = vld [vmem:[%s3186_s28 + $0xe8] sm:$0xff] }
 0x11b   : > { %v968_v62 = vadd.f32 %v813_v57, %v648_v52  ;;  %v969_v63 = vadd.f32 %v813_v57, %v649_v53  ;;  %v970_v0 = vadd.f32 %v813_v57, %v650_v54  ;;  %v971_v1 = vadd.f32 %v813_v57, %v651_v55  ;;  %1472 = vmatprep.subr.bf16.mxu0 %v1249_v4  ;;  %v344_v54 = vld [vmem:[%s3186_s28 + $0xc0] sm:$0xff]  ;;  %v345_v57 = vld [vmem:[%s3186_s28 + $0xc8] sm:$0xff] }
 0x11c   : > { %v1101_v16 = vmax.f32 %v973_v59, 0.0  ;;  %v1103_v18 = vmax.f32 %v975_v61, 0.0  ;;  %1665 = vmatprep.subr.bf16.mxu1 %v1251_v5  ;;  %1473 = vmatpush1.bf16.msra.mxu0 %v1248_v6  ;;  %v1100_v26 = vmax.f32 %v972_v58, 0.0  ;;  %v1102_v36 = vmax.f32 %v974_v60, 0.0  ;;  %v346_v58 = vld [vmem:[%s3186_s28 + $0xd0] sm:$0xff]  ;;  %v347_v59 = vld [vmem:[%s3186_s28 + $0xd8] sm:$0xff] }
 0x11d   : > { %v508_v11 = vpop.permute.xlu1 %507  ;;  %v503_v12 = vpop.permute.xlu0 %502  ;;  %v1097_v15 = vmax.f32 %v969_v63, 0.0  ;;  %v1099_v17 = vmax.f32 %v971_v1, 0.0  ;;  %v1096_v22 = vmax.f32 %v968_v62, 0.0  ;;  %1666 = vmatpush1.bf16.msra.mxu1 %v1250_v7  ;;  %v1098_v35 = vmax.f32 %v970_v0, 0.0 }
 0x11e   : > { %v660_v19 = vmul.f32 %v508_v11, %v340_v2  ;;  %v661_v20 = vmul.f32 %v508_v11, %v341_v3  ;;  %v662_v23 = vmul.f32 %v508_v11, %v342_v8  ;;  %v663_v24 = vmul.f32 %v508_v11, %v343_v9 }
 0x11f   : > { %v656_v25 = vmul.f32 %v503_v12, %v336_v10  ;;  %v657_v27 = vmul.f32 %v503_v12, %v337_v13  ;;  %v658_v28 = vmul.f32 %v503_v12, %v338_v14  ;;  %v1253_v29 = vpack.c.bf16 %v1101_v16, %v1097_v15 }
 0x120   : > { %v1255_v30 = vpack.c.bf16 %v1103_v18, %v1099_v17  ;;  %v659_v31 = vmul.f32 %v503_v12, %v339_v21  ;;  %v1252_v34 = vpack.c.bf16 %v1100_v26, %v1096_v22  ;;  %v1254_v46 = vpack.c.bf16 %v1102_v36, %v1098_v35  ;;  %v355_v35 = vld [vmem:[%s3186_s28 + $0x118] sm:$0xff] }
 0x121   : > { %v828_v32 = vpop.permute.xlu1 %827  ;;  %v823_v33 = vpop.permute.xlu0 %822  ;;  %1474 = vmatprep.subr.bf16.mxu0 %v1253_v29 }
 0x122   : > { %1667 = vmatprep.subr.bf16.mxu1 %v1255_v30  ;;  %v980_v37 = vadd.f32 %v828_v32, %v660_v19  ;;  %v981_v38 = vadd.f32 %v828_v32, %v661_v20  ;;  %v982_v39 = vadd.f32 %v828_v32, %v662_v23  ;;  %v983_v40 = vadd.f32 %v828_v32, %v663_v24  ;;  %v356_v20 = vld [vmem:[%s3186_s28 + $0x120] sm:$0xff]  ;;  %v357_v23 = vld [vmem:[%s3186_s28 + $0x128] sm:$0xff]  ;;  %v358_v24 = vld [vmem:[%s3186_s28 + $0x130] sm:$0xff] }
 0x123   : > { %v976_v41 = vadd.f32 %v823_v33, %v656_v25  ;;  %v977_v42 = vadd.f32 %v823_v33, %v657_v27  ;;  %v978_v43 = vadd.f32 %v823_v33, %v658_v28  ;;  %1475 = vmatpush1.bf16.msra.mxu0 %v1252_v34  ;;  %v979_v45 = vadd.f32 %v823_v33, %v659_v31  ;;  %v359_v25 = vld [vmem:[%s3186_s28 + $0x138] sm:$0xff]  ;;  %v352_v30 = vld [vmem:[%s3186_s28 + $0x100] sm:$0xff]  ;;  %v353_v33 = vld [vmem:[%s3186_s28 + $0x108] sm:$0xff] }
 0x124   : > { %v1109_v50 = vmax.f32 %v981_v38, 0.0  ;;  %v1108_v51 = vmax.f32 %v980_v37, 0.0  ;;  %1668 = vmatpush1.bf16.msra.mxu1 %v1254_v46  ;;  %v1111_v60 = vmax.f32 %v983_v40, 0.0  ;;  %v1110_v5 = vmax.f32 %v982_v39, 0.0  ;;  %v354_v34 = vld [vmem:[%s3186_s28 + $0x110] sm:$0xff] }
 0x125   : > { %v518_v52 = vpop.permute.xlu1 %517  ;;  %v513_v53 = vpop.permute.xlu0 %512  ;;  %v1105_v55 = vmax.f32 %v977_v42, 0.0  ;;  %v1104_v56 = vmax.f32 %v976_v41, 0.0  ;;  %v1106_v61 = vmax.f32 %v978_v43, 0.0  ;;  %v1107_v3 = vmax.f32 %v979_v45, 0.0 }
 0x126   : > { %v668_v62 = vmul.f32 %v518_v52, %v348_v44  ;;  %v669_v63 = vmul.f32 %v518_v52, %v349_v47  ;;  %v670_v0 = vmul.f32 %v518_v52, %v350_v48  ;;  %v671_v1 = vmul.f32 %v518_v52, %v351_v49 }
 0x127   : > { %v1257_v2 = vpack.c.bf16 %v1109_v50, %v1105_v55  ;;  %v1256_v4 = vpack.c.bf16 %v1108_v51, %v1104_v56  ;;  %v664_v6 = vmul.f32 %v513_v53, %v344_v54  ;;  %v665_v7 = vmul.f32 %v513_v53, %v345_v57 }
 0x128   : > { %v666_v8 = vmul.f32 %v513_v53, %v346_v58  ;;  %v667_v9 = vmul.f32 %v513_v53, %v347_v59  ;;  %v1259_v12 = vpack.c.bf16 %v1111_v60, %v1107_v3  ;;  %v1258_v22 = vpack.c.bf16 %v1110_v5, %v1106_v61  ;;  %v364_v60 = vld [vmem:[%s3186_s28 + $0x160] sm:$0xff] }
 0x129   : > { %v838_v10 = vpop.permute.xlu1 %837  ;;  %v833_v11 = vpop.permute.xlu0 %832  ;;  %1476 = vmatprep.subr.bf16.mxu0 %v1257_v2 }
 0x12a   : > { %v988_v13 = vadd.f32 %v838_v10, %v668_v62  ;;  %v989_v14 = vadd.f32 %v838_v10, %v669_v63  ;;  %v990_v15 = vadd.f32 %v838_v10, %v670_v0  ;;  %v991_v16 = vadd.f32 %v838_v10, %v671_v1  ;;  %1477 = vmatpush1.bf16.msra.mxu0 %v1256_v4  ;;  %v365_v63 = vld [vmem:[%s3186_s28 + $0x168] sm:$0xff]  ;;  %v366_v0 = vld [vmem:[%s3186_s28 + $0x170] sm:$0xff]  ;;  %v367_v1 = vld [vmem:[%s3186_s28 + $0x178] sm:$0xff] }
 0x12b   : > { %v984_v17 = vadd.f32 %v833_v11, %v664_v6  ;;  %v985_v18 = vadd.f32 %v833_v11, %v665_v7  ;;  %v986_v19 = vadd.f32 %v833_v11, %v666_v8  ;;  %1669 = vmatprep.subr.bf16.mxu1 %v1259_v12  ;;  %v987_v21 = vadd.f32 %v833_v11, %v667_v9  ;;  %v360_v6 = vld [vmem:[%s3186_s28 + $0x140] sm:$0xff]  ;;  %v361_v9 = vld [vmem:[%s3186_s28 + $0x148] sm:$0xff]  ;;  %v362_v10 = vld [vmem:[%s3186_s28 + $0x150] sm:$0xff] }
 0x12c   : > { %v1117_v26 = vmax.f32 %v989_v14, 0.0  ;;  %v1116_v27 = vmax.f32 %v988_v13, 0.0  ;;  %1670 = vmatpush1.bf16.msra.mxu1 %v1258_v22  ;;  %v1119_v36 = vmax.f32 %v991_v16, 0.0  ;;  %v1118_v45 = vmax.f32 %v990_v15, 0.0  ;;  %v363_v11 = vld [vmem:[%s3186_s28 + $0x158] sm:$0xff] }
 0x12d   : > { %v528_v28 = vpop.permute.xlu1 %527  ;;  %v523_v29 = vpop.permute.xlu0 %522  ;;  %v1113_v31 = vmax.f32 %v985_v18, 0.0  ;;  %v1112_v32 = vmax.f32 %v984_v17, 0.0  ;;  %v1114_v37 = vmax.f32 %v986_v19, 0.0  ;;  %v1115_v43 = vmax.f32 %v987_v21, 0.0 }
 0x12e   : > { %v676_v38 = vmul.f32 %v528_v28, %v356_v20  ;;  %v677_v39 = vmul.f32 %v528_v28, %v357_v23  ;;  %v678_v40 = vmul.f32 %v528_v28, %v358_v24  ;;  %v679_v41 = vmul.f32 %v528_v28, %v359_v25 }
 0x12f   : > { %v1261_v42 = vpack.c.bf16 %v1117_v26, %v1113_v31  ;;  %v1260_v44 = vpack.c.bf16 %v1116_v27, %v1112_v32  ;;  %v672_v46 = vmul.f32 %v523_v29, %v352_v30  ;;  %v673_v47 = vmul.f32 %v523_v29, %v353_v33 }
 0x130   : > { %v674_v48 = vmul.f32 %v523_v29, %v354_v34  ;;  %v675_v49 = vmul.f32 %v523_v29, %v355_v35  ;;  %v1263_v52 = vpack.c.bf16 %v1119_v36, %v1115_v43  ;;  %v1262_v62 = vpack.c.bf16 %v1118_v45, %v1114_v37  ;;  %v372_v36 = vld [vmem:[%s3186_s28 + $0x1a0] sm:$0xff] }
 0x131   : > { %v848_v50 = vpop.permute.xlu1 %847  ;;  %v843_v51 = vpop.permute.xlu0 %842  ;;  %1478 = vmatprep.subr.bf16.mxu0 %v1261_v42 }
 0x132   : > { %v996_v53 = vadd.f32 %v848_v50, %v676_v38  ;;  %v997_v54 = vadd.f32 %v848_v50, %v677_v39  ;;  %v998_v55 = vadd.f32 %v848_v50, %v678_v40  ;;  %v999_v56 = vadd.f32 %v848_v50, %v679_v41  ;;  %1479 = vmatpush1.bf16.msra.mxu0 %v1260_v44  ;;  %v373_v39 = vld [vmem:[%s3186_s28 + $0x1a8] sm:$0xff]  ;;  %v374_v40 = vld [vmem:[%s3186_s28 + $0x1b0] sm:$0xff]  ;;  %v375_v41 = vld [vmem:[%s3186_s28 + $0x1b8] sm:$0xff] }
 0x133   : > { %v992_v57 = vadd.f32 %v843_v51, %v672_v46  ;;  %v993_v58 = vadd.f32 %v843_v51, %v673_v47  ;;  %v994_v59 = vadd.f32 %v843_v51, %v674_v48  ;;  %1671 = vmatprep.subr.bf16.mxu1 %v1263_v52  ;;  %v995_v61 = vadd.f32 %v843_v51, %v675_v49  ;;  %v368_v46 = vld [vmem:[%s3186_s28 + $0x180] sm:$0xff]  ;;  %v369_v49 = vld [vmem:[%s3186_s28 + $0x188] sm:$0xff]  ;;  %v370_v50 = vld [vmem:[%s3186_s28 + $0x190] sm:$0xff] }
 0x134   : > { %v1125_v2 = vmax.f32 %v997_v54, 0.0  ;;  %v1124_v3 = vmax.f32 %v996_v53, 0.0  ;;  %1672 = vmatpush1.bf16.msra.mxu1 %v1262_v62  ;;  %v1127_v12 = vmax.f32 %v999_v56, 0.0  ;;  %v1126_v21 = vmax.f32 %v998_v55, 0.0  ;;  %v371_v51 = vld [vmem:[%s3186_s28 + $0x198] sm:$0xff] }
 0x135   : > { %v538_v4 = vpop.permute.xlu1 %537  ;;  %v533_v5 = vpop.permute.xlu0 %532  ;;  %v1121_v7 = vmax.f32 %v993_v58, 0.0  ;;  %v1120_v8 = vmax.f32 %v992_v57, 0.0  ;;  %v1122_v13 = vmax.f32 %v994_v59, 0.0  ;;  %v1123_v19 = vmax.f32 %v995_v61, 0.0 }
 0x136   : > { %v684_v14 = vmul.f32 %v538_v4, %v364_v60  ;;  %v685_v15 = vmul.f32 %v538_v4, %v365_v63  ;;  %v686_v16 = vmul.f32 %v538_v4, %v366_v0  ;;  %v687_v17 = vmul.f32 %v538_v4, %v367_v1 }
 0x137   : > { %v1265_v18 = vpack.c.bf16 %v1125_v2, %v1121_v7  ;;  %v1264_v20 = vpack.c.bf16 %v1124_v3, %v1120_v8  ;;  %v680_v22 = vmul.f32 %v533_v5, %v360_v6  ;;  %v681_v23 = vmul.f32 %v533_v5, %v361_v9 }
 0x138   : > { %v682_v24 = vmul.f32 %v533_v5, %v362_v10  ;;  %v683_v25 = vmul.f32 %v533_v5, %v363_v11  ;;  %v1267_v28 = vpack.c.bf16 %v1127_v12, %v1123_v19  ;;  %v1266_v38 = vpack.c.bf16 %v1126_v21, %v1122_v13  ;;  %v380_v12 = vld [vmem:[%s3186_s28 + $0x1e0] sm:$0xff] }
 0x139   : > { %v858_v26 = vpop.permute.xlu1 %857  ;;  %v853_v27 = vpop.permute.xlu0 %852  ;;  %1480 = vmatprep.subr.bf16.mxu0 %v1265_v18 }
 0x13a   : > { %v1004_v29 = vadd.f32 %v858_v26, %v684_v14  ;;  %v1005_v30 = vadd.f32 %v858_v26, %v685_v15  ;;  %v1006_v31 = vadd.f32 %v858_v26, %v686_v16  ;;  %v1007_v32 = vadd.f32 %v858_v26, %v687_v17  ;;  %1481 = vmatpush1.bf16.msra.mxu0 %v1264_v20  ;;  %v381_v15 = vld [vmem:[%s3186_s28 + $0x1e8] sm:$0xff]  ;;  %v382_v16 = vld [vmem:[%s3186_s28 + $0x1f0] sm:$0xff]  ;;  %v383_v17 = vld [vmem:[%s3186_s28 + $0x1f8] sm:$0xff] }
 0x13b   : > { %v1000_v33 = vadd.f32 %v853_v27, %v680_v22  ;;  %v1001_v34 = vadd.f32 %v853_v27, %v681_v23  ;;  %v1002_v35 = vadd.f32 %v853_v27, %v682_v24  ;;  %1673 = vmatprep.subr.bf16.mxu1 %v1267_v28  ;;  %v1003_v37 = vadd.f32 %v853_v27, %v683_v25  ;;  %v376_v22 = vld [vmem:[%s3186_s28 + $0x1c0] sm:$0xff]  ;;  %v377_v25 = vld [vmem:[%s3186_s28 + $0x1c8] sm:$0xff]  ;;  %v378_v26 = vld [vmem:[%s3186_s28 + $0x1d0] sm:$0xff] }
 0x13c   : > { %v1133_v42 = vmax.f32 %v1005_v30, 0.0  ;;  %v1132_v43 = vmax.f32 %v1004_v29, 0.0  ;;  %1674 = vmatpush1.bf16.msra.mxu1 %v1266_v38  ;;  %v1135_v52 = vmax.f32 %v1007_v32, 0.0  ;;  %v1134_v61 = vmax.f32 %v1006_v31, 0.0  ;;  %v379_v27 = vld [vmem:[%s3186_s28 + $0x1d8] sm:$0xff] }
 0x13d   : > { %v548_v44 = vpop.permute.xlu1 %547  ;;  %v543_v45 = vpop.permute.xlu0 %542  ;;  %v1129_v47 = vmax.f32 %v1001_v34, 0.0  ;;  %v1128_v48 = vmax.f32 %v1000_v33, 0.0  ;;  %v1130_v53 = vmax.f32 %v1002_v35, 0.0  ;;  %v1131_v59 = vmax.f32 %v1003_v37, 0.0 }
 0x13e   : > { %v692_v54 = vmul.f32 %v548_v44, %v372_v36  ;;  %v693_v55 = vmul.f32 %v548_v44, %v373_v39  ;;  %v694_v56 = vmul.f32 %v548_v44, %v374_v40  ;;  %v695_v57 = vmul.f32 %v548_v44, %v375_v41 }
 0x13f   : > { %v1269_v58 = vpack.c.bf16 %v1133_v42, %v1129_v47  ;;  %v1268_v60 = vpack.c.bf16 %v1132_v43, %v1128_v48  ;;  %v688_v62 = vmul.f32 %v543_v45, %v368_v46  ;;  %v689_v63 = vmul.f32 %v543_v45, %v369_v49 }
 0x140   : > { %v690_v0 = vmul.f32 %v543_v45, %v370_v50  ;;  %v691_v1 = vmul.f32 %v543_v45, %v371_v51  ;;  %v1271_v4 = vpack.c.bf16 %v1135_v52, %v1131_v59  ;;  %v1270_v14 = vpack.c.bf16 %v1134_v61, %v1130_v53  ;;  %v388_v52 = vld [vmem:[%s3186_s28 + $0x220] sm:$0xff] }
 0x141   : > { %v868_v2 = vpop.permute.xlu1 %867  ;;  %v863_v3 = vpop.permute.xlu0 %862  ;;  %1482 = vmatprep.subr.bf16.mxu0 %v1269_v58 }
 0x142   : > { %v1012_v5 = vadd.f32 %v868_v2, %v692_v54  ;;  %v1013_v6 = vadd.f32 %v868_v2, %v693_v55  ;;  %v1014_v7 = vadd.f32 %v868_v2, %v694_v56  ;;  %v1015_v8 = vadd.f32 %v868_v2, %v695_v57  ;;  %1483 = vmatpush1.bf16.msra.mxu0 %v1268_v60  ;;  %v389_v55 = vld [vmem:[%s3186_s28 + $0x228] sm:$0xff]  ;;  %v390_v56 = vld [vmem:[%s3186_s28 + $0x230] sm:$0xff]  ;;  %v391_v57 = vld [vmem:[%s3186_s28 + $0x238] sm:$0xff] }
 0x143   : > { %v1008_v9 = vadd.f32 %v863_v3, %v688_v62  ;;  %v1009_v10 = vadd.f32 %v863_v3, %v689_v63  ;;  %v1010_v11 = vadd.f32 %v863_v3, %v690_v0  ;;  %1675 = vmatprep.subr.bf16.mxu1 %v1271_v4  ;;  %v1011_v13 = vadd.f32 %v863_v3, %v691_v1  ;;  %v384_v62 = vld [vmem:[%s3186_s28 + $0x200] sm:$0xff]  ;;  %v385_v1 = vld [vmem:[%s3186_s28 + $0x208] sm:$0xff]  ;;  %v386_v2 = vld [vmem:[%s3186_s28 + $0x210] sm:$0xff] }
 0x144   : > { %v1141_v18 = vmax.f32 %v1013_v6, 0.0  ;;  %v1140_v19 = vmax.f32 %v1012_v5, 0.0  ;;  %1676 = vmatpush1.bf16.msra.mxu1 %v1270_v14  ;;  %v1143_v28 = vmax.f32 %v1015_v8, 0.0  ;;  %v1142_v37 = vmax.f32 %v1014_v7, 0.0  ;;  %v387_v3 = vld [vmem:[%s3186_s28 + $0x218] sm:$0xff] }
 0x145   : > { %v558_v20 = vpop.permute.xlu1 %557  ;;  %v553_v21 = vpop.permute.xlu0 %552  ;;  %v1137_v23 = vmax.f32 %v1009_v10, 0.0  ;;  %v1136_v24 = vmax.f32 %v1008_v9, 0.0  ;;  %v1138_v29 = vmax.f32 %v1010_v11, 0.0  ;;  %v1139_v35 = vmax.f32 %v1011_v13, 0.0 }
 0x146   : > { %v700_v30 = vmul.f32 %v558_v20, %v380_v12  ;;  %v701_v31 = vmul.f32 %v558_v20, %v381_v15  ;;  %v702_v32 = vmul.f32 %v558_v20, %v382_v16  ;;  %v703_v33 = vmul.f32 %v558_v20, %v383_v17 }
 0x147   : > { %v1273_v34 = vpack.c.bf16 %v1141_v18, %v1137_v23  ;;  %v1272_v36 = vpack.c.bf16 %v1140_v19, %v1136_v24  ;;  %v696_v38 = vmul.f32 %v553_v21, %v376_v22  ;;  %v697_v39 = vmul.f32 %v553_v21, %v377_v25 }
 0x148   : > { %v698_v40 = vmul.f32 %v553_v21, %v378_v26  ;;  %v699_v41 = vmul.f32 %v553_v21, %v379_v27  ;;  %v1275_v44 = vpack.c.bf16 %v1143_v28, %v1139_v35  ;;  %v1274_v54 = vpack.c.bf16 %v1142_v37, %v1138_v29  ;;  %v396_v28 = vld [vmem:[%s3186_s28 + $0x260] sm:$0xff] }
 0x149   : > { %v878_v42 = vpop.permute.xlu1 %877  ;;  %v873_v43 = vpop.permute.xlu0 %872  ;;  %1484 = vmatprep.subr.bf16.mxu0 %v1273_v34 }
 0x14a   : > { %v1020_v45 = vadd.f32 %v878_v42, %v700_v30  ;;  %v1021_v46 = vadd.f32 %v878_v42, %v701_v31  ;;  %v1022_v47 = vadd.f32 %v878_v42, %v702_v32  ;;  %v1023_v48 = vadd.f32 %v878_v42, %v703_v33  ;;  %1485 = vmatpush1.bf16.msra.mxu0 %v1272_v36  ;;  %v397_v31 = vld [vmem:[%s3186_s28 + $0x268] sm:$0xff]  ;;  %v398_v32 = vld [vmem:[%s3186_s28 + $0x270] sm:$0xff]  ;;  %v399_v33 = vld [vmem:[%s3186_s28 + $0x278] sm:$0xff] }
 0x14b   : > { %v1016_v49 = vadd.f32 %v873_v43, %v696_v38  ;;  %v1017_v50 = vadd.f32 %v873_v43, %v697_v39  ;;  %v1018_v51 = vadd.f32 %v873_v43, %v698_v40  ;;  %1677 = vmatprep.subr.bf16.mxu1 %v1275_v44  ;;  %v1019_v53 = vadd.f32 %v873_v43, %v699_v41  ;;  %v392_v38 = vld [vmem:[%s3186_s28 + $0x240] sm:$0xff]  ;;  %v393_v41 = vld [vmem:[%s3186_s28 + $0x248] sm:$0xff]  ;;  %v394_v42 = vld [vmem:[%s3186_s28 + $0x250] sm:$0xff] }
 0x14c   : > { %v1149_v58 = vmax.f32 %v1021_v46, 0.0  ;;  %v1148_v59 = vmax.f32 %v1020_v45, 0.0  ;;  %1678 = vmatpush1.bf16.msra.mxu1 %v1274_v54  ;;  %v1151_v4 = vmax.f32 %v1023_v48, 0.0  ;;  %v1150_v13 = vmax.f32 %v1022_v47, 0.0  ;;  %v395_v43 = vld [vmem:[%s3186_s28 + $0x258] sm:$0xff] }
 0x14d   : > { %v568_v60 = vpop.permute.xlu1 %567  ;;  %v563_v61 = vpop.permute.xlu0 %562  ;;  %v1145_v63 = vmax.f32 %v1017_v50, 0.0  ;;  %v1144_v0 = vmax.f32 %v1016_v49, 0.0  ;;  %v1146_v5 = vmax.f32 %v1018_v51, 0.0  ;;  %v1147_v11 = vmax.f32 %v1019_v53, 0.0 }
 0x14e   : > { %v708_v6 = vmul.f32 %v568_v60, %v388_v52  ;;  %v709_v7 = vmul.f32 %v568_v60, %v389_v55  ;;  %v710_v8 = vmul.f32 %v568_v60, %v390_v56  ;;  %v711_v9 = vmul.f32 %v568_v60, %v391_v57 }
 0x14f   : > { %v1277_v10 = vpack.c.bf16 %v1149_v58, %v1145_v63  ;;  %v1276_v12 = vpack.c.bf16 %v1148_v59, %v1144_v0  ;;  %v704_v14 = vmul.f32 %v563_v61, %v384_v62  ;;  %v705_v15 = vmul.f32 %v563_v61, %v385_v1 }
 0x150   : > { %v706_v16 = vmul.f32 %v563_v61, %v386_v2  ;;  %v707_v17 = vmul.f32 %v563_v61, %v387_v3  ;;  %v1279_v20 = vpack.c.bf16 %v1151_v4, %v1147_v11  ;;  %v1278_v30 = vpack.c.bf16 %v1150_v13, %v1146_v5  ;;  %v404_v4 = vld [vmem:[%s3186_s28 + $0x2a0] sm:$0xff] }
 0x151   : > { %v888_v18 = vpop.permute.xlu1 %887  ;;  %v883_v19 = vpop.permute.xlu0 %882  ;;  %1486 = vmatprep.subr.bf16.mxu0 %v1277_v10 }
 0x152   : > { %v1028_v21 = vadd.f32 %v888_v18, %v708_v6  ;;  %v1029_v22 = vadd.f32 %v888_v18, %v709_v7  ;;  %v1030_v23 = vadd.f32 %v888_v18, %v710_v8  ;;  %v1031_v24 = vadd.f32 %v888_v18, %v711_v9  ;;  %1487 = vmatpush1.bf16.msra.mxu0 %v1276_v12  ;;  %v405_v7 = vld [vmem:[%s3186_s28 + $0x2a8] sm:$0xff]  ;;  %v406_v8 = vld [vmem:[%s3186_s28 + $0x2b0] sm:$0xff]  ;;  %v407_v9 = vld [vmem:[%s3186_s28 + $0x2b8] sm:$0xff] }
 0x153   : > { %v1024_v25 = vadd.f32 %v883_v19, %v704_v14  ;;  %v1025_v26 = vadd.f32 %v883_v19, %v705_v15  ;;  %v1026_v27 = vadd.f32 %v883_v19, %v706_v16  ;;  %1679 = vmatprep.subr.bf16.mxu1 %v1279_v20  ;;  %v1027_v29 = vadd.f32 %v883_v19, %v707_v17  ;;  %v400_v14 = vld [vmem:[%s3186_s28 + $0x280] sm:$0xff]  ;;  %v401_v17 = vld [vmem:[%s3186_s28 + $0x288] sm:$0xff]  ;;  %v402_v18 = vld [vmem:[%s3186_s28 + $0x290] sm:$0xff] }
 0x154   : > { %v1157_v34 = vmax.f32 %v1029_v22, 0.0  ;;  %v1156_v35 = vmax.f32 %v1028_v21, 0.0  ;;  %1680 = vmatpush1.bf16.msra.mxu1 %v1278_v30  ;;  %v1159_v44 = vmax.f32 %v1031_v24, 0.0  ;;  %v1158_v53 = vmax.f32 %v1030_v23, 0.0  ;;  %v403_v19 = vld [vmem:[%s3186_s28 + $0x298] sm:$0xff] }
 0x155   : > { %v578_v36 = vpop.permute.xlu1 %577  ;;  %v573_v37 = vpop.permute.xlu0 %572  ;;  %v1153_v39 = vmax.f32 %v1025_v26, 0.0  ;;  %v1152_v40 = vmax.f32 %v1024_v25, 0.0  ;;  %v1154_v45 = vmax.f32 %v1026_v27, 0.0  ;;  %v1155_v51 = vmax.f32 %v1027_v29, 0.0 }
 0x156   : > { %v716_v46 = vmul.f32 %v578_v36, %v396_v28  ;;  %v717_v47 = vmul.f32 %v578_v36, %v397_v31  ;;  %v718_v48 = vmul.f32 %v578_v36, %v398_v32  ;;  %v719_v49 = vmul.f32 %v578_v36, %v399_v33 }
 0x157   : > { %v1281_v50 = vpack.c.bf16 %v1157_v34, %v1153_v39  ;;  %v1280_v52 = vpack.c.bf16 %v1156_v35, %v1152_v40  ;;  %v712_v54 = vmul.f32 %v573_v37, %v392_v38  ;;  %v713_v55 = vmul.f32 %v573_v37, %v393_v41 }
 0x158   : > { %v714_v56 = vmul.f32 %v573_v37, %v394_v42  ;;  %v715_v57 = vmul.f32 %v573_v37, %v395_v43  ;;  %v1283_v60 = vpack.c.bf16 %v1159_v44, %v1155_v51  ;;  %v1282_v6 = vpack.c.bf16 %v1158_v53, %v1154_v45  ;;  %v412_v44 = vld [vmem:[%s3186_s28 + $0x2e0] sm:$0xff] }
 0x159   : > { %v898_v58 = vpop.permute.xlu1 %897  ;;  %v893_v59 = vpop.permute.xlu0 %892  ;;  %1488 = vmatprep.subr.bf16.mxu0 %v1281_v50 }
 0x15a   : > { %v1036_v61 = vadd.f32 %v898_v58, %v716_v46  ;;  %v1037_v62 = vadd.f32 %v898_v58, %v717_v47  ;;  %v1038_v63 = vadd.f32 %v898_v58, %v718_v48  ;;  %v1039_v0 = vadd.f32 %v898_v58, %v719_v49  ;;  %1489 = vmatpush1.bf16.msra.mxu0 %v1280_v52  ;;  %v413_v47 = vld [vmem:[%s3186_s28 + $0x2e8] sm:$0xff]  ;;  %v414_v48 = vld [vmem:[%s3186_s28 + $0x2f0] sm:$0xff]  ;;  %v415_v49 = vld [vmem:[%s3186_s28 + $0x2f8] sm:$0xff] }
 0x15b   : > { %v1032_v1 = vadd.f32 %v893_v59, %v712_v54  ;;  %v1033_v2 = vadd.f32 %v893_v59, %v713_v55  ;;  %v1034_v3 = vadd.f32 %v893_v59, %v714_v56  ;;  %1681 = vmatprep.subr.bf16.mxu1 %v1283_v60  ;;  %v1035_v5 = vadd.f32 %v893_v59, %v715_v57  ;;  %v408_v54 = vld [vmem:[%s3186_s28 + $0x2c0] sm:$0xff]  ;;  %v409_v57 = vld [vmem:[%s3186_s28 + $0x2c8] sm:$0xff]  ;;  %v410_v58 = vld [vmem:[%s3186_s28 + $0x2d0] sm:$0xff] }
 0x15c   : > { %v1165_v10 = vmax.f32 %v1037_v62, 0.0  ;;  %v1164_v11 = vmax.f32 %v1036_v61, 0.0  ;;  %1682 = vmatpush1.bf16.msra.mxu1 %v1282_v6  ;;  %v1167_v20 = vmax.f32 %v1039_v0, 0.0  ;;  %v1166_v29 = vmax.f32 %v1038_v63, 0.0  ;;  %v411_v59 = vld [vmem:[%s3186_s28 + $0x2d8] sm:$0xff] }
 0x15d   : > { %v588_v12 = vpop.permute.xlu1 %587  ;;  %v583_v13 = vpop.permute.xlu0 %582  ;;  %v1161_v15 = vmax.f32 %v1033_v2, 0.0  ;;  %v1160_v16 = vmax.f32 %v1032_v1, 0.0  ;;  %v1162_v21 = vmax.f32 %v1034_v3, 0.0  ;;  %v1163_v27 = vmax.f32 %v1035_v5, 0.0 }
 0x15e   : > { %v724_v22 = vmul.f32 %v588_v12, %v404_v4  ;;  %v725_v23 = vmul.f32 %v588_v12, %v405_v7  ;;  %v726_v24 = vmul.f32 %v588_v12, %v406_v8  ;;  %v727_v25 = vmul.f32 %v588_v12, %v407_v9 }
 0x15f   : > { %v1285_v26 = vpack.c.bf16 %v1165_v10, %v1161_v15  ;;  %v1284_v28 = vpack.c.bf16 %v1164_v11, %v1160_v16  ;;  %v720_v30 = vmul.f32 %v583_v13, %v400_v14  ;;  %v721_v31 = vmul.f32 %v583_v13, %v401_v17 }
 0x160   : > { %v722_v32 = vmul.f32 %v583_v13, %v402_v18  ;;  %v723_v33 = vmul.f32 %v583_v13, %v403_v19  ;;  %v1287_v36 = vpack.c.bf16 %v1167_v20, %v1163_v27  ;;  %v1286_v46 = vpack.c.bf16 %v1166_v29, %v1162_v21  ;;  %v420_v20 = vld [vmem:[%s3186_s28 + $0x320] sm:$0xff] }
 0x161   : > { %v908_v34 = vpop.permute.xlu1 %907  ;;  %v903_v35 = vpop.permute.xlu0 %902  ;;  %1490 = vmatprep.subr.bf16.mxu0 %v1285_v26 }
 0x162   : > { %v1044_v37 = vadd.f32 %v908_v34, %v724_v22  ;;  %v1045_v38 = vadd.f32 %v908_v34, %v725_v23  ;;  %v1046_v39 = vadd.f32 %v908_v34, %v726_v24  ;;  %v1047_v40 = vadd.f32 %v908_v34, %v727_v25  ;;  %1491 = vmatpush1.bf16.msra.mxu0 %v1284_v28  ;;  %v421_v23 = vld [vmem:[%s3186_s28 + $0x328] sm:$0xff]  ;;  %v422_v24 = vld [vmem:[%s3186_s28 + $0x330] sm:$0xff]  ;;  %v423_v25 = vld [vmem:[%s3186_s28 + $0x338] sm:$0xff] }
 0x163   : > { %v1040_v41 = vadd.f32 %v903_v35, %v720_v30  ;;  %v1041_v42 = vadd.f32 %v903_v35, %v721_v31  ;;  %v1042_v43 = vadd.f32 %v903_v35, %v722_v32  ;;  %1683 = vmatprep.subr.bf16.mxu1 %v1287_v36  ;;  %v1043_v45 = vadd.f32 %v903_v35, %v723_v33  ;;  %v416_v30 = vld [vmem:[%s3186_s28 + $0x300] sm:$0xff]  ;;  %v417_v33 = vld [vmem:[%s3186_s28 + $0x308] sm:$0xff]  ;;  %v418_v34 = vld [vmem:[%s3186_s28 + $0x310] sm:$0xff] }
 0x164   : > { %v1173_v50 = vmax.f32 %v1045_v38, 0.0  ;;  %v1172_v51 = vmax.f32 %v1044_v37, 0.0  ;;  %1684 = vmatpush1.bf16.msra.mxu1 %v1286_v46  ;;  %v1175_v60 = vmax.f32 %v1047_v40, 0.0  ;;  %v1174_v5 = vmax.f32 %v1046_v39, 0.0  ;;  %v419_v35 = vld [vmem:[%s3186_s28 + $0x318] sm:$0xff] }
 0x165   : > { %v598_v52 = vpop.permute.xlu1 %597  ;;  %v593_v53 = vpop.permute.xlu0 %592  ;;  %v1169_v55 = vmax.f32 %v1041_v42, 0.0  ;;  %v1168_v56 = vmax.f32 %v1040_v41, 0.0  ;;  %v1170_v61 = vmax.f32 %v1042_v43, 0.0  ;;  %v1171_v3 = vmax.f32 %v1043_v45, 0.0 }
 0x166   : > { %v732_v62 = vmul.f32 %v598_v52, %v412_v44  ;;  %v733_v63 = vmul.f32 %v598_v52, %v413_v47  ;;  %v734_v0 = vmul.f32 %v598_v52, %v414_v48  ;;  %v735_v1 = vmul.f32 %v598_v52, %v415_v49 }
 0x167   : > { %v1289_v2 = vpack.c.bf16 %v1173_v50, %v1169_v55  ;;  %v1288_v4 = vpack.c.bf16 %v1172_v51, %v1168_v56  ;;  %v728_v6 = vmul.f32 %v593_v53, %v408_v54  ;;  %v729_v7 = vmul.f32 %v593_v53, %v409_v57 }
 0x168   : > { %v730_v8 = vmul.f32 %v593_v53, %v410_v58  ;;  %v731_v9 = vmul.f32 %v593_v53, %v411_v59  ;;  %v1291_v12 = vpack.c.bf16 %v1175_v60, %v1171_v3  ;;  %v1290_v22 = vpack.c.bf16 %v1174_v5, %v1170_v61  ;;  %v428_v60 = vld [vmem:[%s3186_s28 + $0x360] sm:$0xff] }
 0x169   : > { %v918_v10 = vpop.permute.xlu1 %917  ;;  %v913_v11 = vpop.permute.xlu0 %912  ;;  %1492 = vmatprep.subr.bf16.mxu0 %v1289_v2 }
 0x16a   : > { %v1052_v13 = vadd.f32 %v918_v10, %v732_v62  ;;  %v1053_v14 = vadd.f32 %v918_v10, %v733_v63  ;;  %v1054_v15 = vadd.f32 %v918_v10, %v734_v0  ;;  %v1055_v16 = vadd.f32 %v918_v10, %v735_v1  ;;  %1493 = vmatpush1.bf16.msra.mxu0 %v1288_v4  ;;  %v429_v63 = vld [vmem:[%s3186_s28 + $0x368] sm:$0xff]  ;;  %v430_v0 = vld [vmem:[%s3186_s28 + $0x370] sm:$0xff]  ;;  %v431_v1 = vld [vmem:[%s3186_s28 + $0x378] sm:$0xff] }
 0x16b   : > { %v1048_v17 = vadd.f32 %v913_v11, %v728_v6  ;;  %v1049_v18 = vadd.f32 %v913_v11, %v729_v7  ;;  %v1050_v19 = vadd.f32 %v913_v11, %v730_v8  ;;  %1685 = vmatprep.subr.bf16.mxu1 %v1291_v12  ;;  %v1051_v21 = vadd.f32 %v913_v11, %v731_v9  ;;  %v424_v6 = vld [vmem:[%s3186_s28 + $0x340] sm:$0xff]  ;;  %v425_v9 = vld [vmem:[%s3186_s28 + $0x348] sm:$0xff]  ;;  %v426_v10 = vld [vmem:[%s3186_s28 + $0x350] sm:$0xff] }
 0x16c   : > { %v1181_v26 = vmax.f32 %v1053_v14, 0.0  ;;  %v1180_v27 = vmax.f32 %v1052_v13, 0.0  ;;  %1686 = vmatpush1.bf16.msra.mxu1 %v1290_v22  ;;  %v1183_v36 = vmax.f32 %v1055_v16, 0.0  ;;  %v1182_v45 = vmax.f32 %v1054_v15, 0.0  ;;  %v427_v11 = vld [vmem:[%s3186_s28 + $0x358] sm:$0xff] }
 0x16d   : > { %v608_v28 = vpop.permute.xlu1 %607  ;;  %v603_v29 = vpop.permute.xlu0 %602  ;;  %v1177_v31 = vmax.f32 %v1049_v18, 0.0  ;;  %v1176_v32 = vmax.f32 %v1048_v17, 0.0  ;;  %v1178_v37 = vmax.f32 %v1050_v19, 0.0  ;;  %v1179_v43 = vmax.f32 %v1051_v21, 0.0 }
 0x16e   : > { %v740_v38 = vmul.f32 %v608_v28, %v420_v20  ;;  %v741_v39 = vmul.f32 %v608_v28, %v421_v23  ;;  %v742_v40 = vmul.f32 %v608_v28, %v422_v24  ;;  %v743_v41 = vmul.f32 %v608_v28, %v423_v25 }
 0x16f   : > { %v1293_v42 = vpack.c.bf16 %v1181_v26, %v1177_v31  ;;  %v1292_v44 = vpack.c.bf16 %v1180_v27, %v1176_v32  ;;  %v736_v46 = vmul.f32 %v603_v29, %v416_v30  ;;  %v737_v47 = vmul.f32 %v603_v29, %v417_v33 }
 0x170   : > { %v738_v48 = vmul.f32 %v603_v29, %v418_v34  ;;  %v739_v49 = vmul.f32 %v603_v29, %v419_v35  ;;  %v1295_v52 = vpack.c.bf16 %v1183_v36, %v1179_v43  ;;  %v1294_v62 = vpack.c.bf16 %v1182_v45, %v1178_v37 }
 0x171   : > { %v928_v50 = vpop.permute.xlu1 %927  ;;  %v923_v51 = vpop.permute.xlu0 %922  ;;  %1494 = vmatprep.subr.bf16.mxu0 %v1293_v42 }
 0x172   : > { %v1060_v53 = vadd.f32 %v928_v50, %v740_v38  ;;  %v1061_v54 = vadd.f32 %v928_v50, %v741_v39  ;;  %v1062_v55 = vadd.f32 %v928_v50, %v742_v40  ;;  %v1063_v56 = vadd.f32 %v928_v50, %v743_v41  ;;  %1495 = vmatpush1.bf16.msra.mxu0 %v1292_v44  ;;  %v436_v38 = vld [vmem:[%s3186_s28 + $0x3a0] sm:$0xff]  ;;  %v437_v39 = vld [vmem:[%s3186_s28 + $0x3a8] sm:$0xff]  ;;  %v438_v40 = vld [vmem:[%s3186_s28 + $0x3b0] sm:$0xff] }
 0x173   : > { %v1056_v57 = vadd.f32 %v923_v51, %v736_v46  ;;  %v1057_v58 = vadd.f32 %v923_v51, %v737_v47  ;;  %v1058_v59 = vadd.f32 %v923_v51, %v738_v48  ;;  %1687 = vmatprep.subr.bf16.mxu1 %v1295_v52  ;;  %v1059_v61 = vadd.f32 %v923_v51, %v739_v49  ;;  %v439_v44 = vld [vmem:[%s3186_s28 + $0x3b8] sm:$0xff]  ;;  %v432_v48 = vld [vmem:[%s3186_s28 + $0x380] sm:$0xff]  ;;  %v433_v49 = vld [vmem:[%s3186_s28 + $0x388] sm:$0xff] }
 0x174   : > { %v1189_v2 = vmax.f32 %v1061_v54, 0.0  ;;  %v1188_v3 = vmax.f32 %v1060_v53, 0.0  ;;  %1688 = vmatpush1.bf16.msra.mxu1 %v1294_v62  ;;  %v1191_v12 = vmax.f32 %v1063_v56, 0.0  ;;  %v1190_v21 = vmax.f32 %v1062_v55, 0.0  ;;  %v434_v50 = vld [vmem:[%s3186_s28 + $0x390] sm:$0xff]  ;;  %v435_v55 = vld [vmem:[%s3186_s28 + $0x398] sm:$0xff] }
 0x175   : > { %v618_v4 = vpop.permute.xlu1 %617  ;;  %v613_v5 = vpop.permute.xlu0 %612  ;;  %v1185_v7 = vmax.f32 %v1057_v58, 0.0  ;;  %v1184_v8 = vmax.f32 %v1056_v57, 0.0  ;;  %v1186_v13 = vmax.f32 %v1058_v59, 0.0  ;;  %v1187_v19 = vmax.f32 %v1059_v61, 0.0 }
 0x176   : > { %v748_v14 = vmul.f32 %v618_v4, %v428_v60  ;;  %v749_v15 = vmul.f32 %v618_v4, %v429_v63  ;;  %v750_v16 = vmul.f32 %v618_v4, %v430_v0  ;;  %v751_v17 = vmul.f32 %v618_v4, %v431_v1 }
 0x177   : > { %v1297_v18 = vpack.c.bf16 %v1189_v2, %v1185_v7  ;;  %v1296_v20 = vpack.c.bf16 %v1188_v3, %v1184_v8  ;;  %v744_v22 = vmul.f32 %v613_v5, %v424_v6  ;;  %v745_v23 = vmul.f32 %v613_v5, %v425_v9 }
 0x178   : > { %v746_v24 = vmul.f32 %v613_v5, %v426_v10  ;;  %v747_v25 = vmul.f32 %v613_v5, %v427_v11  ;;  %v1299_v28 = vpack.c.bf16 %v1191_v12, %v1187_v19  ;;  %v1298_v37 = vpack.c.bf16 %v1190_v21, %v1186_v13 }
 0x179   : > { %v938_v26 = vpop.permute.xlu1 %937  ;;  %v933_v27 = vpop.permute.xlu0 %932  ;;  %1496 = vmatprep.subr.bf16.mxu0 %v1297_v18 }
 0x17a   : > { %v1068_v29 = vadd.f32 %v938_v26, %v748_v14  ;;  %v1069_v30 = vadd.f32 %v938_v26, %v749_v15  ;;  %v1070_v31 = vadd.f32 %v938_v26, %v750_v16  ;;  %v1071_v32 = vadd.f32 %v938_v26, %v751_v17  ;;  %1497 = vmatpush1.bf16.msra.mxu0 %v1296_v20  ;;  %v444_v14 = vld [vmem:[%s3186_s28 + $0x3e0] sm:$0xff]  ;;  %v445_v15 = vld [vmem:[%s3186_s28 + $0x3e8] sm:$0xff]  ;;  %v446_v16 = vld [vmem:[%s3186_s28 + $0x3f0] sm:$0xff] }
 0x17b   : > { %v1064_v33 = vadd.f32 %v933_v27, %v744_v22  ;;  %v1065_v34 = vadd.f32 %v933_v27, %v745_v23  ;;  %v1066_v35 = vadd.f32 %v933_v27, %v746_v24  ;;  %1689 = vmatprep.subr.bf16.mxu1 %v1299_v28  ;;  %v1067_v36 = vadd.f32 %v933_v27, %v747_v25  ;;  %v447_v23 = vld [vmem:[%s3186_s28 + $0x3f8] sm:$0xff]  ;;  %v440_v24 = vld [vmem:[%s3186_s28 + $0x3c0] sm:$0xff]  ;;  %v441_v27 = vld [vmem:[%s3186_s28 + $0x3c8] sm:$0xff] }
 0x17c   : > { %v1197_v41 = vmax.f32 %v1069_v30, 0.0  ;;  %v1196_v42 = vmax.f32 %v1068_v29, 0.0  ;;  %1690 = vmatpush1.bf16.msra.mxu1 %v1298_v37  ;;  %v1199_v51 = vmax.f32 %v1071_v32, 0.0  ;;  %v1198_v60 = vmax.f32 %v1070_v31, 0.0  ;;  %v442_v28 = vld [vmem:[%s3186_s28 + $0x3d0] sm:$0xff]  ;;  %v443_v29 = vld [vmem:[%s3186_s28 + $0x3d8] sm:$0xff] }
 0x17d   : > { %v628_v43 = vpop.permute.xlu1 %627  ;;  %v623_v45 = vpop.permute.xlu0 %622  ;;  %v1193_v46 = vmax.f32 %v1065_v34, 0.0  ;;  %v1192_v47 = vmax.f32 %v1064_v33, 0.0  ;;  %v1194_v56 = vmax.f32 %v1066_v35, 0.0  ;;  %v1195_v58 = vmax.f32 %v1067_v36, 0.0 }
 0x17e   : > { %v756_v52 = vmul.f32 %v628_v43, %v436_v38  ;;  %v757_v53 = vmul.f32 %v628_v43, %v437_v39  ;;  %v758_v54 = vmul.f32 %v628_v43, %v438_v40  ;;  %v759_v61 = vmul.f32 %v628_v43, %v439_v44 }
 0x17f   : > { %v1301_v57 = vpack.c.bf16 %v1197_v41, %v1193_v46  ;;  %v1300_v59 = vpack.c.bf16 %v1196_v42, %v1192_v47  ;;  %v752_v62 = vmul.f32 %v623_v45, %v432_v48  ;;  %v753_v63 = vmul.f32 %v623_v45, %v433_v49 }
 0x180   : > { %v754_v0 = vmul.f32 %v623_v45, %v434_v50  ;;  %v755_v3 = vmul.f32 %v623_v45, %v435_v55  ;;  %v1303_v4 = vpack.c.bf16 %v1199_v51, %v1195_v58  ;;  %v1302_v12 = vpack.c.bf16 %v1198_v60, %v1194_v56 }
 0x181   : > { %v948_v1 = vpop.permute.xlu1 %947  ;;  %v943_v2 = vpop.permute.xlu0 %942  ;;  %1498 = vmatprep.subr.bf16.mxu0 %v1301_v57 }
 0x182   : > { %v1076_v5 = vadd.f32 %v948_v1, %v756_v52  ;;  %v1077_v6 = vadd.f32 %v948_v1, %v757_v53  ;;  %v1079_v7 = vadd.f32 %v948_v1, %v759_v61  ;;  %v1072_v8 = vadd.f32 %v943_v2, %v752_v62  ;;  %1499 = vmatpush1.bf16.msra.mxu0 %v1300_v59 }
 0x183   : > { %v1073_v9 = vadd.f32 %v943_v2, %v753_v63  ;;  %v1074_v10 = vadd.f32 %v943_v2, %v754_v0  ;;  %1691 = vmatprep.subr.bf16.mxu1 %v1303_v4  ;;  %v1075_v11 = vadd.f32 %v943_v2, %v755_v3  ;;  %v1078_v18 = vadd.f32 %v948_v1, %v758_v54  ;;  %v2566_v2 = vld [vmem:[#allocation7] ss:$8 sps:$4 sm:$0xff]   ;;  %v2569_v3 = vld [vmem:[#allocation7 + $0x14] ss:$8 sps:$4 sm:$0xff]   ;;  %v2571_v4 = vld [vmem:[#allocation7 + $0x10] ss:$8 sps:$4 sm:$0xff]  }
 0x184   : > { %v1205_v13 = vmax.f32 %v1077_v6, 0.0  ;;  %v1204_v17 = vmax.f32 %v1076_v5, 0.0  ;;  %v1207_v22 = vmax.f32 %v1079_v7, 0.0  ;;  %v1200_v25 = vmax.f32 %v1072_v8, 0.0  ;;  %1692 = vmatpush1.bf16.msra.mxu1 %v1302_v12  ;;  %v2572_v5 = vld [vmem:[#allocation7 + $0x24] ss:$8 sps:$4 sm:$0xff]  }
 0x185   : > { %v638_v19 = vpop.permute.xlu1 %637  ;;  %v633_v20 = vpop.permute.xlu0 %632  ;;  %v1201_v21 = vmax.f32 %v1073_v9, 0.0  ;;  %v1203_v26 = vmax.f32 %v1075_v11, 0.0  ;;  %v1202_v30 = vmax.f32 %v1074_v10, 0.0  ;;  %v1206_v44 = vmax.f32 %v1078_v18, 0.0  ;;  %v2574_v6 = vld [vmem:[#allocation7 + $0x20] ss:$8 sps:$4 sm:$0xff]  }
 0x186   : > { %v764_v32 = vmul.f32 %v638_v19, %v444_v14  ;;  %v765_v33 = vmul.f32 %v638_v19, %v445_v15  ;;  %v766_v34 = vmul.f32 %v638_v19, %v446_v16  ;;  %v767_v36 = vmul.f32 %v638_v19, %v447_v23  ;;  %v2575_v7 = vld [vmem:[#allocation7 + $0x34] ss:$8 sps:$4 sm:$0xff]   ;;  %v2577_v8 = vld [vmem:[#allocation7 + $0x30] ss:$8 sps:$4 sm:$0xff]   ;;  %v2578_v9 = vld [vmem:[#allocation7 + $0x44] ss:$8 sps:$4 sm:$0xff]  }
 0x187   : > { %v1305_v31 = vpack.c.bf16 %v1205_v13, %v1201_v21  ;;  %v1307_v35 = vpack.c.bf16 %v1207_v22, %v1203_v26  ;;  %v760_v37 = vmul.f32 %v633_v20, %v440_v24  ;;  %v1304_v38 = vpack.c.bf16 %v1204_v17, %v1200_v25  ;;  %v2580_v10 = vld [vmem:[#allocation7 + $0x40] ss:$8 sps:$4 sm:$0xff]   ;;  %v2581_v11 = vld [vmem:[#allocation7 + $0x54] ss:$8 sps:$4 sm:$0xff]   ;;  %v2583_v12 = vld [vmem:[#allocation7 + $0x50] ss:$8 sps:$4 sm:$0xff]  }
 0x188   : > { %v761_v41 = vmul.f32 %v633_v20, %v441_v27  ;;  %v762_v42 = vmul.f32 %v633_v20, %v442_v28  ;;  %v763_v43 = vmul.f32 %v633_v20, %v443_v29  ;;  %v1306_v61 = vpack.c.bf16 %v1206_v44, %v1202_v30  ;;  %v2584_v13 = vld [vmem:[#allocation7 + $0x64] ss:$8 sps:$4 sm:$0xff]   ;;  %v2586_v14 = vld [vmem:[#allocation7 + $0x60] ss:$8 sps:$4 sm:$0xff]   ;;  %v2587_v15 = vld [vmem:[#allocation7 + $0x74] ss:$8 sps:$4 sm:$0xff]  }
 0x189   : > { %1500 = vmatprep.subr.bf16.mxu0 %v1305_v31  ;;  %v958_v39 = vpop.permute.xlu1 %957  ;;  %v953_v40 = vpop.permute.xlu0 %952  ;;  %1693 = vmatprep.subr.bf16.mxu1 %v1307_v35  ;;  %v2589_v16 = vld [vmem:[#allocation7 + $0x70] ss:$8 sps:$4 sm:$0xff]   ;;  %v2590_v17 = vld [vmem:[#allocation7 + $0x84] ss:$8 sps:$4 sm:$0xff]   ;;  %v2592_v18 = vld [vmem:[#allocation7 + $0x80] ss:$8 sps:$4 sm:$0xff]  }
 0x18a   : > { %v1084_v45 = vadd.f32 %v958_v39, %v764_v32  ;;  %v1085_v46 = vadd.f32 %v958_v39, %v765_v33  ;;  %v1086_v47 = vadd.f32 %v958_v39, %v766_v34  ;;  %v1087_v48 = vadd.f32 %v958_v39, %v767_v36  ;;  %1501 = vmatpush1.bf16.msra.mxu0 %v1304_v38  ;;  %v2593_v19 = vld [vmem:[#allocation7 + $0x94] ss:$8 sps:$4 sm:$0xff]   ;;  %v2595_v20 = vld [vmem:[#allocation7 + $0x90] ss:$8 sps:$4 sm:$0xff]   ;;  %v2596_v21 = vld [vmem:[#allocation7 + $0xa4] ss:$8 sps:$4 sm:$0xff]  }
 0x18b   : > { %v1080_v49 = vadd.f32 %v953_v40, %v760_v37  ;;  %v1081_v50 = vadd.f32 %v953_v40, %v761_v41  ;;  %v1082_v51 = vadd.f32 %v953_v40, %v762_v42  ;;  %v1083_v52 = vadd.f32 %v953_v40, %v763_v43  ;;  %1694 = vmatpush1.bf16.msra.mxu1 %v1306_v61  ;;  %v2598_v22 = vld [vmem:[#allocation7 + $0xa0] ss:$8 sps:$4 sm:$0xff]   ;;  %v2599_v23 = vld [vmem:[#allocation7 + $0xb4] ss:$8 sps:$4 sm:$0xff]   ;;  %v2601_v24 = vld [vmem:[#allocation7 + $0xb0] ss:$8 sps:$4 sm:$0xff]  }
 0x18c   : > { %v1212_v53 = vmax.f32 %v1084_v45, 0.0  ;;  %v1213_v54 = vmax.f32 %v1085_v46, 0.0  ;;  %v1214_v55 = vmax.f32 %v1086_v47, 0.0  ;;  %v1215_v56 = vmax.f32 %v1087_v48, 0.0  ;;  %v2602_v25 = vld [vmem:[#allocation7 + $0xc4] ss:$8 sps:$4 sm:$0xff]  }
 0x18d   : > { %v1208_v57 = vmax.f32 %v1080_v49, 0.0  ;;  %v1209_v58 = vmax.f32 %v1081_v50, 0.0  ;;  %v1210_v59 = vmax.f32 %v1082_v51, 0.0  ;;  %v1211_v60 = vmax.f32 %v1083_v52, 0.0  ;;  %v2604_v26 = vld [vmem:[#allocation7 + $0xc0] ss:$8 sps:$4 sm:$0xff]  }
 0x18e   : > { %v2605_v27 = vld [vmem:[#allocation7 + $0xd4] ss:$8 sps:$4 sm:$0xff]   ;;  %v2607_v28 = vld [vmem:[#allocation7 + $0xd0] ss:$8 sps:$4 sm:$0xff]   ;;  %v2608_v29 = vld [vmem:[#allocation7 + $0xe4] ss:$8 sps:$4 sm:$0xff]   ;;  %v1860_v33 = vlaneseq }
 0x18f   : > { %v1309_v62 = vpack.c.bf16 %v1213_v54, %v1209_v58  ;;  %v1311_v63 = vpack.c.bf16 %v1215_v56, %v1211_v60  ;;  %v1308_v0 = vpack.c.bf16 %v1212_v53, %v1208_v57  ;;  %v1310_v1 = vpack.c.bf16 %v1214_v55, %v1210_v59  ;;  %v2610_v30 = vld [vmem:[#allocation7 + $0xe0] ss:$8 sps:$4 sm:$0xff]   ;;  %v2611_v31 = vld [vmem:[#allocation7 + $0xf4] ss:$8 sps:$4 sm:$0xff]   ;;  %v2613_v32 = vld [vmem:[#allocation7 + $0xf0] ss:$8 sps:$4 sm:$0xff]  }
 0x190   : > { %v1861_v34 = vshrl.u32 %v1860_v33, 7  ;;  %v1858_v36 = vld [vmem:[%s3194_s27] sm:$0xf]  ;;  %v2615_v56 = vld [vmem:[%s3186_s28 + $0x8] sm:$0xff]  ;;  %s3543_s27 = scalar_lea.vmem [#allocation8], %s2419_s5  ;;  %v2616_v61 = vld [vmem:[%s3186_s28 + $0x10] sm:$0xff] }
 0x191   : > { %1502 = vmatprep.subr.bf16.mxu0 %v1309_v62  ;;  %1695 = vmatprep.subr.bf16.mxu1 %v1311_v63  ;;  %v2614_v50 = vld [vmem:[%s3186_s28] sm:$0xff]  ;;  %s4033_s5 = sld [smem:[#allocation15_spill]]  ;;  %s2280_s0 = sshll.u32 %s3543_s27, 4  ;;  %s3919_s0 = int_to_ptr.vmem [resolvable:$true] %s2280_s0 }
 0x192   : > { %1503 = vmatpush1.bf16.msra.mxu0 %v1308_v0  ;;  %1696 = vmatpush1.bf16.msra.mxu1 %v1310_v1  ;;  %v1862_v35 = vsub.s32 0, %v1861_v34  ;;  %v1866_v37 = vsub.s32 1, %v1861_v34  ;;  %v1870_v38 = vsub.s32 2, %v1861_v34  ;;  %v1874_v39 = vsub.s32 3, %v1861_v34  ;;  %v2617_v63 = vld [vmem:[%s3186_s28 + $0x20] sm:$0xff]  ;;  %s2830_s6 = scalar_lea.vmem %s3919_s0, 16384  ;;  %p2837_p6 = scmp.lt.s32.totalorder %s3919_s0, %s2835_s13 }
 0x193   : > { %p2831_p7 = scmp.ne.s32.totalorder %s3919_s0, %s2830_s6  ;;  %p2838_p10 = scmp.lt.s32.totalorder %s2836_s30, %s2830_s6 }
 0x194   : > { %v3525_v40 = vrot.slane %v1858_v36, %v1862_v35  ;;  %v3527_v41 = vrot.slane %v1858_v36, %v1866_v37  ;;  %v3529_v42 = vrot.slane %v1858_v36, %v1870_v38  ;;  %v3531_v44 = vrot.slane %v1858_v36, %v1874_v39  ;;  %v2626_v35 = vld [vmem:[%s3186_s28 + $0x58] sm:$0xff]  ;;  %v2627_v37 = vld [vmem:[%s3186_s28 + $0x68] sm:$0xff] }
 0x195   : > { %1505 = vmatmul.mubr.bf16.vlgmr.msra.gmra.mrb[0].mxu0 %v2566_v2  ;;  %1698 = vmatmul.mubr.bf16.vlgmr.msra.gmra.mrb[0].mxu1 %v2566_v2  ;;  %p2832_p9 = pnand %p2831_p7, %p4038_p8  ;;  %p2839_p4 = por %p2838_p10, %p2837_p6 }
 0x196   : > { %1514 = vmatprep.mubr.bf16.mxu0 %v2569_v3  ;;  %1707 = vmatprep.mubr.bf16.mxu1 %v2569_v3  ;;  %v2618_v3 = vld [vmem:[%s3186_s28 + $0x18] sm:$0xff] }
 0x197   : > { %s2456_s29 = sshll.u32 %s4033_s5, 2  ;;  %p2833_p2 = pneg %p2832_p9 }
 0x198   : > { %s3899_s10 = sadd.s32 %s2457_s16, %s2456_s29 }
 0x199   : > { %s2458_s22 = sshll.u32 %s3899_s10, 7  ;;  %p2840_p11 = pnand %p2839_p4, %p2833_p2 }
 0x19a   : > { %s3927_s12 = scalar_lea.hbm %s4036_s20, %s2458_s22 }
 0x19d   : > { %1515 = vmatmul.mubr.bf16.gmra.mrb[4].mxu0 %v2571_v4  ;;  %1708 = vmatmul.mubr.bf16.gmra.mrb[4].mxu1 %v2571_v4 }
 0x19e   : > { %1524 = vmatprep.mubr.bf16.mxu0 %v2572_v5  ;;  %1717 = vmatprep.mubr.bf16.mxu1 %v2572_v5  ;;  %v2619_v5 = vld [vmem:[%s3186_s28 + $0x28] sm:$0xff] }
 0x1a5   : > { %1525 = vmatmul.mubr.bf16.gmra.mrb[8].mxu0 %v2574_v6  ;;  %1718 = vmatmul.mubr.bf16.gmra.mrb[8].mxu1 %v2574_v6 }
 0x1a6   : > { %1534 = vmatprep.mubr.bf16.mxu0 %v2575_v7  ;;  %1727 = vmatprep.mubr.bf16.mxu1 %v2575_v7 }
 0x1ad   : > { %1535 = vmatmul.mubr.bf16.gmra.mrb[12].mxu0 %v2577_v8  ;;  %1728 = vmatmul.mubr.bf16.gmra.mrb[12].mxu1 %v2577_v8  ;;  %v2620_v8 = vld [vmem:[%s3186_s28 + $0x30] sm:$0xff] }
 0x1ae   : > { %1544 = vmatprep.mubr.bf16.mxu0 %v2578_v9  ;;  %1737 = vmatprep.mubr.bf16.mxu1 %v2578_v9 }
 0x1b5   : > { %1545 = vmatmul.mubr.bf16.gmra.mrb[16].mxu0 %v2580_v10  ;;  %1738 = vmatmul.mubr.bf16.gmra.mrb[16].mxu1 %v2580_v10  ;;  %v2621_v10 = vld [vmem:[%s3186_s28 + $0x38] sm:$0xff] }
 0x1b6   : > { %1554 = vmatprep.mubr.bf16.mxu0 %v2581_v11  ;;  %1747 = vmatprep.mubr.bf16.mxu1 %v2581_v11 }
 0x1bd   : > { %1555 = vmatmul.mubr.bf16.gmra.mrb[20].mxu0 %v2583_v12  ;;  %1748 = vmatmul.mubr.bf16.gmra.mrb[20].mxu1 %v2583_v12 }
 0x1be   : > { %1564 = vmatprep.mubr.bf16.mxu0 %v2584_v13  ;;  %1757 = vmatprep.mubr.bf16.mxu1 %v2584_v13 }
 0x1c5   : > { %1565 = vmatmul.mubr.bf16.gmra.mrb[24].mxu0 %v2586_v14  ;;  %1758 = vmatmul.mubr.bf16.gmra.mrb[24].mxu1 %v2586_v14 }
 0x1c6   : > { %1574 = vmatprep.mubr.bf16.mxu0 %v2587_v15  ;;  %1767 = vmatprep.mubr.bf16.mxu1 %v2587_v15 }
 0x1cd   : > { %1575 = vmatmul.mubr.bf16.gmra.mrb[28].mxu0 %v2589_v16  ;;  %1768 = vmatmul.mubr.bf16.gmra.mrb[28].mxu1 %v2589_v16 }
 0x1ce   : > { %1584 = vmatprep.mubr.bf16.mxu0 %v2590_v17  ;;  %1777 = vmatprep.mubr.bf16.mxu1 %v2590_v17 }
 0x1d5   : > { %1585 = vmatmul.mubr.bf16.gmra.mrb[32].mxu0 %v2592_v18  ;;  %1778 = vmatmul.mubr.bf16.gmra.mrb[32].mxu1 %v2592_v18  ;;  %v2622_v18 = vld [vmem:[%s3186_s28 + $0x40] sm:$0xff] }
 0x1d6   : > { %1594 = vmatprep.mubr.bf16.mxu0 %v2593_v19  ;;  %1787 = vmatprep.mubr.bf16.mxu1 %v2593_v19 }
 0x1dd   : > { %1595 = vmatmul.mubr.bf16.gmra.mrb[36].mxu0 %v2595_v20  ;;  %1788 = vmatmul.mubr.bf16.gmra.mrb[36].mxu1 %v2595_v20 }
 0x1de   : > { %1604 = vmatprep.mubr.bf16.mxu0 %v2596_v21  ;;  %1797 = vmatprep.mubr.bf16.mxu1 %v2596_v21 }
 0x1e5   : > { %1605 = vmatmul.mubr.bf16.gmra.mrb[40].mxu0 %v2598_v22  ;;  %1798 = vmatmul.mubr.bf16.gmra.mrb[40].mxu1 %v2598_v22 }
 0x1e6   : > { %1614 = vmatprep.mubr.bf16.mxu0 %v2599_v23  ;;  %1807 = vmatprep.mubr.bf16.mxu1 %v2599_v23 }
 0x1ed   : > { %1615 = vmatmul.mubr.bf16.gmra.mrb[44].mxu0 %v2601_v24  ;;  %1808 = vmatmul.mubr.bf16.gmra.mrb[44].mxu1 %v2601_v24  ;;  %v2623_v24 = vld [vmem:[%s3186_s28 + $0x48] sm:$0xff] }
 0x1ee   : > { %1624 = vmatprep.mubr.bf16.mxu0 %v2602_v25  ;;  %1817 = vmatprep.mubr.bf16.mxu1 %v2602_v25 }
 0x1f5   : > { %1625 = vmatmul.mubr.bf16.gmra.mrb[48].mxu0 %v2604_v26  ;;  %1818 = vmatmul.mubr.bf16.gmra.mrb[48].mxu1 %v2604_v26 }
 0x1f6   : > { %1634 = vmatprep.mubr.bf16.mxu0 %v2605_v27  ;;  %1827 = vmatprep.mubr.bf16.mxu1 %v2605_v27 }
 0x1fd   : > { %1635 = vmatmul.mubr.bf16.gmra.mrb[52].mxu0 %v2607_v28  ;;  %1828 = vmatmul.mubr.bf16.gmra.mrb[52].mxu1 %v2607_v28 }
 0x1fe   : > { %1644 = vmatprep.mubr.bf16.mxu0 %v2608_v29  ;;  %1837 = vmatprep.mubr.bf16.mxu1 %v2608_v29  ;;  %v2624_v29 = vld [vmem:[%s3186_s28 + $0x50] sm:$0xff] }
 0x205   : > { %1645 = vmatmul.mubr.bf16.gmra.mrb[56].mxu0 %v2610_v30  ;;  %1838 = vmatmul.mubr.bf16.gmra.mrb[56].mxu1 %v2610_v30 }
 0x206   : > { %1654 = vmatprep.mubr.bf16.mxu0 %v2611_v31  ;;  %1847 = vmatprep.mubr.bf16.mxu1 %v2611_v31  ;;  %v2625_v31 = vld [vmem:[%s3186_s28 + $0x60] sm:$0xff] }
 0x20d   : > { %1655 = vmatmul.mubr.bf16.gmra.mrb[60].mxu0 %v2613_v32  ;;  %1848 = vmatmul.mubr.bf16.gmra.mrb[60].mxu1 %v2613_v32 }
 0x268   : > { %v1506_v43 = vpop.f32.mrb[0].mxu0  ;;  %v1699_v47 = vpop.f32.mrb[0].mxu1 }
 0x269   : > { %v1880_v45 = vmul.f32 %v3525_v40, %v1506_v43  ;;  %v1508_v46 = vpop.f32.mrb[1].mxu0  ;;  %v1882_v52 = vmul.f32 %v3529_v42, %v1699_v47  ;;  %v1701_v53 = vpop.f32.mrb[1].mxu1  ;;  %v2628_v43 = vld [vmem:[%s3186_s28 + $0x70] sm:$0xff] }
 0x26a   : > { %v1881_v48 = vmul.f32 %v3527_v41, %v1508_v46  ;;  %v1510_v49 = vpop.f32.mrb[2].mxu0  ;;  %v1883_v58 = vmul.f32 %v3531_v44, %v1701_v53  ;;  %v1703_v59 = vpop.f32.mrb[2].mxu1  ;;  %v2629_v46 = vld [vmem:[%s3186_s28 + $0x78] sm:$0xff] }
 0x26b   : > { %v2008_v51 = vadd.f32 %v2614_v50, %v1880_v45  ;;  %v1884_v54 = vmul.f32 %v3525_v40, %v1510_v49  ;;  %v1512_v55 = vpop.f32.mrb[3].mxu0  ;;  %v2010_v62 = vadd.f32 %v2616_v61, %v1882_v52  ;;  %v1886_v1 = vmul.f32 %v3529_v42, %v1703_v59  ;;  %v1705_v2 = vpop.f32.mrb[3].mxu1 }
 0x26c   : > { %v2009_v57 = vadd.f32 %v2615_v56, %v1881_v48  ;;  %v1885_v60 = vmul.f32 %v3527_v41, %v1512_v55  ;;  %v2011_v4 = vadd.f32 %v2618_v3, %v1883_v58  ;;  %v1887_v7 = vmul.f32 %v3531_v44, %v1705_v2  ;;  %v2633_v3 = vld [vmem:[%s3186_s28 + $0xa0] sm:$0xff] }
 0x26d   : > { %2136 = vst [vmem:[%s3543_s27] sm:$0xff] %v2008_v51  ;;  %v2012_v0 = vadd.f32 %v2617_v63, %v1884_v54  ;;  %2138 = vst [vmem:[%s3543_s27 + $0x10] sm:$0xff] %v2010_v62  ;;  %v2014_v9 = vadd.f32 %v2620_v8, %v1886_v1  ;;  %v2630_v54 = vld [vmem:[%s3186_s28 + $0x80] sm:$0xff]  ;;  %v2632_v1 = vld [vmem:[%s3186_s28 + $0x90] sm:$0xff] }
 0x26e   : > { %2137 = vst [vmem:[%s3543_s27 + $0x8] sm:$0xff] %v2009_v57  ;;  %v2013_v6 = vadd.f32 %v2619_v5, %v1885_v60  ;;  %2139 = vst [vmem:[%s3543_s27 + $0x18] sm:$0xff] %v2011_v4  ;;  %v2015_v11 = vadd.f32 %v2621_v10, %v1887_v7  ;;  %v2631_v60 = vld [vmem:[%s3186_s28 + $0x88] sm:$0xff]  ;;  %v2634_v7 = vld [vmem:[%s3186_s28 + $0x98] sm:$0xff] }
 0x26f   : > { %2140 = vst [vmem:[%s3543_s27 + $0x20] sm:$0xff] %v2012_v0  ;;  %2142 = vst [vmem:[%s3543_s27 + $0x30] sm:$0xff] %v2014_v9  ;;  %v2635_v9 = vld [vmem:[%s3186_s28 + $0xa8] sm:$0xff] }
 0x270   : > { %2141 = vst [vmem:[%s3543_s27 + $0x28] sm:$0xff] %v2013_v6  ;;  %v1516_v12 = vpop.f32.mrb[4].mxu0  ;;  %2143 = vst [vmem:[%s3543_s27 + $0x38] sm:$0xff] %v2015_v11  ;;  %v1709_v15 = vpop.f32.mrb[4].mxu1 }
 0x271   : > { %v1888_v13 = vmul.f32 %v3525_v40, %v1516_v12  ;;  %v1518_v14 = vpop.f32.mrb[5].mxu0  ;;  %v1890_v20 = vmul.f32 %v3529_v42, %v1709_v15  ;;  %v1711_v21 = vpop.f32.mrb[5].mxu1  ;;  %v2636_v12 = vld [vmem:[%s3186_s28 + $0xb0] sm:$0xff] }
 0x272   : > { %v1889_v16 = vmul.f32 %v3527_v41, %v1518_v14  ;;  %v1520_v17 = vpop.f32.mrb[6].mxu0  ;;  %v1891_v26 = vmul.f32 %v3531_v44, %v1711_v21  ;;  %v1713_v27 = vpop.f32.mrb[6].mxu1  ;;  %v2637_v14 = vld [vmem:[%s3186_s28 + $0xb8] sm:$0xff] }
 0x273   : > { %v2016_v19 = vadd.f32 %v2622_v18, %v1888_v13  ;;  %v1892_v22 = vmul.f32 %v3525_v40, %v1520_v17  ;;  %v1522_v23 = vpop.f32.mrb[7].mxu0  ;;  %v2018_v30 = vadd.f32 %v2624_v29, %v1890_v20  ;;  %v1894_v33 = vmul.f32 %v3529_v42, %v1713_v27  ;;  %v1715_v34 = vpop.f32.mrb[7].mxu1 }
 0x274   : > { %v2017_v25 = vadd.f32 %v2623_v24, %v1889_v16  ;;  %v1893_v28 = vmul.f32 %v3527_v41, %v1522_v23  ;;  %v2019_v36 = vadd.f32 %v2626_v35, %v1891_v26  ;;  %v1895_v39 = vmul.f32 %v3531_v44, %v1715_v34  ;;  %v2641_v35 = vld [vmem:[%s3186_s28 + $0xe0] sm:$0xff] }
 0x275   : > { %2144 = vst [vmem:[%s3543_s27 + $0x40] sm:$0xff] %v2016_v19  ;;  %v2020_v32 = vadd.f32 %v2625_v31, %v1892_v22  ;;  %2146 = vst [vmem:[%s3543_s27 + $0x50] sm:$0xff] %v2018_v30  ;;  %v2022_v45 = vadd.f32 %v2628_v43, %v1894_v33  ;;  %v2638_v22 = vld [vmem:[%s3186_s28 + $0xc0] sm:$0xff]  ;;  %v2640_v33 = vld [vmem:[%s3186_s28 + $0xd0] sm:$0xff] }
 0x276   : > { %2145 = vst [vmem:[%s3543_s27 + $0x48] sm:$0xff] %v2017_v25  ;;  %v2021_v38 = vadd.f32 %v2627_v37, %v1893_v28  ;;  %2147 = vst [vmem:[%s3543_s27 + $0x58] sm:$0xff] %v2019_v36  ;;  %v2023_v47 = vadd.f32 %v2629_v46, %v1895_v39  ;;  %v2639_v28 = vld [vmem:[%s3186_s28 + $0xc8] sm:$0xff]  ;;  %v2642_v39 = vld [vmem:[%s3186_s28 + $0xd8] sm:$0xff] }
 0x277   : > { %2148 = vst [vmem:[%s3543_s27 + $0x60] sm:$0xff] %v2020_v32  ;;  %2150 = vst [vmem:[%s3543_s27 + $0x70] sm:$0xff] %v2022_v45  ;;  %v2643_v45 = vld [vmem:[%s3186_s28 + $0xe8] sm:$0xff] }
 0x278   : > { %2149 = vst [vmem:[%s3543_s27 + $0x68] sm:$0xff] %v2021_v38  ;;  %v1526_v48 = vpop.f32.mrb[8].mxu0  ;;  %2151 = vst [vmem:[%s3543_s27 + $0x78] sm:$0xff] %v2023_v47  ;;  %v1719_v51 = vpop.f32.mrb[8].mxu1 }
 0x279   : > { %v1896_v49 = vmul.f32 %v3525_v40, %v1526_v48  ;;  %v1528_v50 = vpop.f32.mrb[9].mxu0  ;;  %v1898_v56 = vmul.f32 %v3529_v42, %v1719_v51  ;;  %v1721_v57 = vpop.f32.mrb[9].mxu1  ;;  %v2644_v48 = vld [vmem:[%s3186_s28 + $0xf0] sm:$0xff] }
 0x27a   : > { %v1897_v52 = vmul.f32 %v3527_v41, %v1528_v50  ;;  %v1530_v53 = vpop.f32.mrb[10].mxu0  ;;  %v1899_v62 = vmul.f32 %v3531_v44, %v1721_v57  ;;  %v1723_v63 = vpop.f32.mrb[10].mxu1  ;;  %v2645_v50 = vld [vmem:[%s3186_s28 + $0xf8] sm:$0xff] }
 0x27b   : > { %v2024_v55 = vadd.f32 %v2630_v54, %v1896_v49  ;;  %v1900_v58 = vmul.f32 %v3525_v40, %v1530_v53  ;;  %v1532_v59 = vpop.f32.mrb[11].mxu0  ;;  %v2026_v2 = vadd.f32 %v2632_v1, %v1898_v56  ;;  %v1902_v5 = vmul.f32 %v3529_v42, %v1723_v63  ;;  %v1725_v6 = vpop.f32.mrb[11].mxu1 }
 0x27c   : > { %v2025_v61 = vadd.f32 %v2631_v60, %v1897_v52  ;;  %v1901_v0 = vmul.f32 %v3527_v41, %v1532_v59  ;;  %v2027_v8 = vadd.f32 %v2634_v7, %v1899_v62  ;;  %v1903_v11 = vmul.f32 %v3531_v44, %v1725_v6  ;;  %v2649_v7 = vld [vmem:[%s3186_s28 + $0x120] sm:$0xff] }
 0x27d   : > { %2152 = vst [vmem:[%s3543_s27 + $0x80] sm:$0xff] %v2024_v55  ;;  %v2028_v4 = vadd.f32 %v2633_v3, %v1900_v58  ;;  %2154 = vst [vmem:[%s3543_s27 + $0x90] sm:$0xff] %v2026_v2  ;;  %v2030_v13 = vadd.f32 %v2636_v12, %v1902_v5  ;;  %v2646_v58 = vld [vmem:[%s3186_s28 + $0x100] sm:$0xff]  ;;  %v2648_v5 = vld [vmem:[%s3186_s28 + $0x110] sm:$0xff] }
 0x27e   : > { %2153 = vst [vmem:[%s3543_s27 + $0x88] sm:$0xff] %v2025_v61  ;;  %v2029_v10 = vadd.f32 %v2635_v9, %v1901_v0  ;;  %2155 = vst [vmem:[%s3543_s27 + $0x98] sm:$0xff] %v2027_v8  ;;  %v2031_v15 = vadd.f32 %v2637_v14, %v1903_v11  ;;  %v2647_v0 = vld [vmem:[%s3186_s28 + $0x108] sm:$0xff]  ;;  %v2650_v11 = vld [vmem:[%s3186_s28 + $0x118] sm:$0xff] }
 0x27f   : > { %2156 = vst [vmem:[%s3543_s27 + $0xa0] sm:$0xff] %v2028_v4  ;;  %2158 = vst [vmem:[%s3543_s27 + $0xb0] sm:$0xff] %v2030_v13  ;;  %v2651_v13 = vld [vmem:[%s3186_s28 + $0x128] sm:$0xff] }
 0x280   : > { %2157 = vst [vmem:[%s3543_s27 + $0xa8] sm:$0xff] %v2029_v10  ;;  %v1536_v16 = vpop.f32.mrb[12].mxu0  ;;  %2159 = vst [vmem:[%s3543_s27 + $0xb8] sm:$0xff] %v2031_v15  ;;  %v1729_v19 = vpop.f32.mrb[12].mxu1 }
 0x281   : > { %v1904_v17 = vmul.f32 %v3525_v40, %v1536_v16  ;;  %v1538_v18 = vpop.f32.mrb[13].mxu0  ;;  %v1906_v24 = vmul.f32 %v3529_v42, %v1729_v19  ;;  %v1731_v25 = vpop.f32.mrb[13].mxu1  ;;  %v2652_v16 = vld [vmem:[%s3186_s28 + $0x130] sm:$0xff] }
 0x282   : > { %v1905_v20 = vmul.f32 %v3527_v41, %v1538_v18  ;;  %v1540_v21 = vpop.f32.mrb[14].mxu0  ;;  %v1907_v30 = vmul.f32 %v3531_v44, %v1731_v25  ;;  %v1733_v31 = vpop.f32.mrb[14].mxu1  ;;  %v2653_v18 = vld [vmem:[%s3186_s28 + $0x138] sm:$0xff] }
 0x283   : > { %v2032_v23 = vadd.f32 %v2638_v22, %v1904_v17  ;;  %v1908_v26 = vmul.f32 %v3525_v40, %v1540_v21  ;;  %v1542_v27 = vpop.f32.mrb[15].mxu0  ;;  %v2034_v34 = vadd.f32 %v2640_v33, %v1906_v24  ;;  %v1910_v37 = vmul.f32 %v3529_v42, %v1733_v31  ;;  %v1735_v38 = vpop.f32.mrb[15].mxu1 }
 0x284   : > { %v2033_v29 = vadd.f32 %v2639_v28, %v1905_v20  ;;  %v1909_v32 = vmul.f32 %v3527_v41, %v1542_v27  ;;  %v2035_v43 = vadd.f32 %v2642_v39, %v1907_v30  ;;  %v1911_v47 = vmul.f32 %v3531_v44, %v1735_v38  ;;  %v2657_v39 = vld [vmem:[%s3186_s28 + $0x160] sm:$0xff] }
 0x285   : > { %2160 = vst [vmem:[%s3543_s27 + $0xc0] sm:$0xff] %v2032_v23  ;;  %v2036_v36 = vadd.f32 %v2641_v35, %v1908_v26  ;;  %2162 = vst [vmem:[%s3543_s27 + $0xd0] sm:$0xff] %v2034_v34  ;;  %v2038_v49 = vadd.f32 %v2644_v48, %v1910_v37  ;;  %v2654_v26 = vld [vmem:[%s3186_s28 + $0x140] sm:$0xff]  ;;  %v2656_v37 = vld [vmem:[%s3186_s28 + $0x150] sm:$0xff] }
 0x286   : > { %2161 = vst [vmem:[%s3543_s27 + $0xc8] sm:$0xff] %v2033_v29  ;;  %v2037_v46 = vadd.f32 %v2643_v45, %v1909_v32  ;;  %2163 = vst [vmem:[%s3543_s27 + $0xd8] sm:$0xff] %v2035_v43  ;;  %v2039_v51 = vadd.f32 %v2645_v50, %v1911_v47  ;;  %v2655_v32 = vld [vmem:[%s3186_s28 + $0x148] sm:$0xff]  ;;  %v2658_v47 = vld [vmem:[%s3186_s28 + $0x158] sm:$0xff] }
 0x287   : > { %2164 = vst [vmem:[%s3543_s27 + $0xe0] sm:$0xff] %v2036_v36  ;;  %2166 = vst [vmem:[%s3543_s27 + $0xf0] sm:$0xff] %v2038_v49  ;;  %v2659_v49 = vld [vmem:[%s3186_s28 + $0x168] sm:$0xff] }
 0x288   : > { %2165 = vst [vmem:[%s3543_s27 + $0xe8] sm:$0xff] %v2037_v46  ;;  %v1546_v52 = vpop.f32.mrb[16].mxu0  ;;  %2167 = vst [vmem:[%s3543_s27 + $0xf8] sm:$0xff] %v2039_v51  ;;  %v1739_v55 = vpop.f32.mrb[16].mxu1 }
 0x289   : > { %v1912_v53 = vmul.f32 %v3525_v40, %v1546_v52  ;;  %v1548_v54 = vpop.f32.mrb[17].mxu0  ;;  %v1914_v60 = vmul.f32 %v3529_v42, %v1739_v55  ;;  %v1741_v61 = vpop.f32.mrb[17].mxu1  ;;  %v2660_v52 = vld [vmem:[%s3186_s28 + $0x170] sm:$0xff] }
 0x28a   : > { %v1913_v56 = vmul.f32 %v3527_v41, %v1548_v54  ;;  %v1550_v57 = vpop.f32.mrb[18].mxu0  ;;  %v1915_v2 = vmul.f32 %v3531_v44, %v1741_v61  ;;  %v1743_v3 = vpop.f32.mrb[18].mxu1  ;;  %v2661_v54 = vld [vmem:[%s3186_s28 + $0x178] sm:$0xff] }
 0x28b   : > { %v2040_v59 = vadd.f32 %v2646_v58, %v1912_v53  ;;  %v1916_v62 = vmul.f32 %v3525_v40, %v1550_v57  ;;  %v1552_v63 = vpop.f32.mrb[19].mxu0  ;;  %v2042_v6 = vadd.f32 %v2648_v5, %v1914_v60  ;;  %v1918_v9 = vmul.f32 %v3529_v42, %v1743_v3  ;;  %v1745_v10 = vpop.f32.mrb[19].mxu1 }
 0x28c   : > { %v2041_v1 = vadd.f32 %v2647_v0, %v1913_v56  ;;  %v1917_v4 = vmul.f32 %v3527_v41, %v1552_v63  ;;  %v2043_v12 = vadd.f32 %v2650_v11, %v1915_v2  ;;  %v1919_v15 = vmul.f32 %v3531_v44, %v1745_v10  ;;  %v2665_v11 = vld [vmem:[%s3186_s28 + $0x1a0] sm:$0xff] }
 0x28d   : > { %2168 = vst [vmem:[%s3543_s27 + $0x100] sm:$0xff] %v2040_v59  ;;  %v2044_v8 = vadd.f32 %v2649_v7, %v1916_v62  ;;  %2170 = vst [vmem:[%s3543_s27 + $0x110] sm:$0xff] %v2042_v6  ;;  %v2046_v17 = vadd.f32 %v2652_v16, %v1918_v9  ;;  %v2662_v62 = vld [vmem:[%s3186_s28 + $0x180] sm:$0xff]  ;;  %v2664_v9 = vld [vmem:[%s3186_s28 + $0x190] sm:$0xff] }
 0x28e   : > { %2169 = vst [vmem:[%s3543_s27 + $0x108] sm:$0xff] %v2041_v1  ;;  %v2045_v14 = vadd.f32 %v2651_v13, %v1917_v4  ;;  %2171 = vst [vmem:[%s3543_s27 + $0x118] sm:$0xff] %v2043_v12  ;;  %v2047_v19 = vadd.f32 %v2653_v18, %v1919_v15  ;;  %v2663_v4 = vld [vmem:[%s3186_s28 + $0x188] sm:$0xff]  ;;  %v2666_v15 = vld [vmem:[%s3186_s28 + $0x198] sm:$0xff] }
 0x28f   : > { %2172 = vst [vmem:[%s3543_s27 + $0x120] sm:$0xff] %v2044_v8  ;;  %2174 = vst [vmem:[%s3543_s27 + $0x130] sm:$0xff] %v2046_v17  ;;  %v2667_v17 = vld [vmem:[%s3186_s28 + $0x1a8] sm:$0xff] }
 0x290   : > { %2173 = vst [vmem:[%s3543_s27 + $0x128] sm:$0xff] %v2045_v14  ;;  %v1556_v20 = vpop.f32.mrb[20].mxu0  ;;  %2175 = vst [vmem:[%s3543_s27 + $0x138] sm:$0xff] %v2047_v19  ;;  %v1749_v23 = vpop.f32.mrb[20].mxu1 }
 0x291   : > { %v1920_v21 = vmul.f32 %v3525_v40, %v1556_v20  ;;  %v1558_v22 = vpop.f32.mrb[21].mxu0  ;;  %v1922_v28 = vmul.f32 %v3529_v42, %v1749_v23  ;;  %v1751_v29 = vpop.f32.mrb[21].mxu1  ;;  %v2668_v20 = vld [vmem:[%s3186_s28 + $0x1b0] sm:$0xff] }
 0x292   : > { %v1921_v24 = vmul.f32 %v3527_v41, %v1558_v22  ;;  %v1560_v25 = vpop.f32.mrb[22].mxu0  ;;  %v1923_v34 = vmul.f32 %v3531_v44, %v1751_v29  ;;  %v1753_v35 = vpop.f32.mrb[22].mxu1  ;;  %v2669_v22 = vld [vmem:[%s3186_s28 + $0x1b8] sm:$0xff] }
 0x293   : > { %v2048_v27 = vadd.f32 %v2654_v26, %v1920_v21  ;;  %v1924_v30 = vmul.f32 %v3525_v40, %v1560_v25  ;;  %v1562_v31 = vpop.f32.mrb[23].mxu0  ;;  %v2050_v38 = vadd.f32 %v2656_v37, %v1922_v28  ;;  %v1926_v45 = vmul.f32 %v3529_v42, %v1753_v35  ;;  %v1755_v46 = vpop.f32.mrb[23].mxu1 }
 0x294   : > { %v2049_v33 = vadd.f32 %v2655_v32, %v1921_v24  ;;  %v1925_v36 = vmul.f32 %v3527_v41, %v1562_v31  ;;  %v2051_v48 = vadd.f32 %v2658_v47, %v1923_v34  ;;  %v1927_v51 = vmul.f32 %v3531_v44, %v1755_v46  ;;  %v2673_v47 = vld [vmem:[%s3186_s28 + $0x1e0] sm:$0xff] }
 0x295   : > { %2176 = vst [vmem:[%s3543_s27 + $0x140] sm:$0xff] %v2048_v27  ;;  %v2052_v43 = vadd.f32 %v2657_v39, %v1924_v30  ;;  %2178 = vst [vmem:[%s3543_s27 + $0x150] sm:$0xff] %v2050_v38  ;;  %v2054_v53 = vadd.f32 %v2660_v52, %v1926_v45  ;;  %v2670_v30 = vld [vmem:[%s3186_s28 + $0x1c0] sm:$0xff]  ;;  %v2672_v45 = vld [vmem:[%s3186_s28 + $0x1d0] sm:$0xff] }
 0x296   : > { %2177 = vst [vmem:[%s3543_s27 + $0x148] sm:$0xff] %v2049_v33  ;;  %v2053_v50 = vadd.f32 %v2659_v49, %v1925_v36  ;;  %2179 = vst [vmem:[%s3543_s27 + $0x158] sm:$0xff] %v2051_v48  ;;  %v2055_v55 = vadd.f32 %v2661_v54, %v1927_v51  ;;  %v2671_v36 = vld [vmem:[%s3186_s28 + $0x1c8] sm:$0xff]  ;;  %v2674_v51 = vld [vmem:[%s3186_s28 + $0x1d8] sm:$0xff] }
 0x297   : > { %2180 = vst [vmem:[%s3543_s27 + $0x160] sm:$0xff] %v2052_v43  ;;  %2182 = vst [vmem:[%s3543_s27 + $0x170] sm:$0xff] %v2054_v53  ;;  %v2675_v53 = vld [vmem:[%s3186_s28 + $0x1e8] sm:$0xff] }
 0x298   : > { %2181 = vst [vmem:[%s3543_s27 + $0x168] sm:$0xff] %v2053_v50  ;;  %v1566_v56 = vpop.f32.mrb[24].mxu0  ;;  %2183 = vst [vmem:[%s3543_s27 + $0x178] sm:$0xff] %v2055_v55  ;;  %v1759_v59 = vpop.f32.mrb[24].mxu1 }
 0x299   : > { %v1928_v57 = vmul.f32 %v3525_v40, %v1566_v56  ;;  %v1568_v58 = vpop.f32.mrb[25].mxu0  ;;  %v1930_v0 = vmul.f32 %v3529_v42, %v1759_v59  ;;  %v1761_v1 = vpop.f32.mrb[25].mxu1  ;;  %v2676_v56 = vld [vmem:[%s3186_s28 + $0x1f0] sm:$0xff] }
 0x29a   : > { %v1929_v60 = vmul.f32 %v3527_v41, %v1568_v58  ;;  %v1570_v61 = vpop.f32.mrb[26].mxu0  ;;  %v1931_v6 = vmul.f32 %v3531_v44, %v1761_v1  ;;  %v1763_v7 = vpop.f32.mrb[26].mxu1  ;;  %v2677_v58 = vld [vmem:[%s3186_s28 + $0x1f8] sm:$0xff] }
 0x29b   : > { %v2056_v63 = vadd.f32 %v2662_v62, %v1928_v57  ;;  %v1932_v2 = vmul.f32 %v3525_v40, %v1570_v61  ;;  %v1572_v3 = vpop.f32.mrb[27].mxu0  ;;  %v2058_v10 = vadd.f32 %v2664_v9, %v1930_v0  ;;  %v1934_v13 = vmul.f32 %v3529_v42, %v1763_v7  ;;  %v1765_v14 = vpop.f32.mrb[27].mxu1 }
 0x29c   : > { %v2057_v5 = vadd.f32 %v2663_v4, %v1929_v60  ;;  %v1933_v8 = vmul.f32 %v3527_v41, %v1572_v3  ;;  %v2059_v16 = vadd.f32 %v2666_v15, %v1931_v6  ;;  %v1935_v19 = vmul.f32 %v3531_v44, %v1765_v14  ;;  %v2681_v15 = vld [vmem:[%s3186_s28 + $0x220] sm:$0xff] }
 0x29d   : > { %2184 = vst [vmem:[%s3543_s27 + $0x180] sm:$0xff] %v2056_v63  ;;  %v2060_v12 = vadd.f32 %v2665_v11, %v1932_v2  ;;  %2186 = vst [vmem:[%s3543_s27 + $0x190] sm:$0xff] %v2058_v10  ;;  %v2062_v21 = vadd.f32 %v2668_v20, %v1934_v13  ;;  %v2678_v2 = vld [vmem:[%s3186_s28 + $0x200] sm:$0xff]  ;;  %v2680_v13 = vld [vmem:[%s3186_s28 + $0x210] sm:$0xff] }
 0x29e   : > { %2185 = vst [vmem:[%s3543_s27 + $0x188] sm:$0xff] %v2057_v5  ;;  %v2061_v18 = vadd.f32 %v2667_v17, %v1933_v8  ;;  %2187 = vst [vmem:[%s3543_s27 + $0x198] sm:$0xff] %v2059_v16  ;;  %v2063_v23 = vadd.f32 %v2669_v22, %v1935_v19  ;;  %v2679_v8 = vld [vmem:[%s3186_s28 + $0x208] sm:$0xff]  ;;  %v2682_v19 = vld [vmem:[%s3186_s28 + $0x218] sm:$0xff] }
 0x29f   : > { %2188 = vst [vmem:[%s3543_s27 + $0x1a0] sm:$0xff] %v2060_v12  ;;  %2190 = vst [vmem:[%s3543_s27 + $0x1b0] sm:$0xff] %v2062_v21  ;;  %v2683_v21 = vld [vmem:[%s3186_s28 + $0x228] sm:$0xff] }
 0x2a0   : > { %2189 = vst [vmem:[%s3543_s27 + $0x1a8] sm:$0xff] %v2061_v18  ;;  %v1576_v24 = vpop.f32.mrb[28].mxu0  ;;  %2191 = vst [vmem:[%s3543_s27 + $0x1b8] sm:$0xff] %v2063_v23  ;;  %v1769_v27 = vpop.f32.mrb[28].mxu1 }
 0x2a1   : > { %v1936_v25 = vmul.f32 %v3525_v40, %v1576_v24  ;;  %v1578_v26 = vpop.f32.mrb[29].mxu0  ;;  %v1938_v32 = vmul.f32 %v3529_v42, %v1769_v27  ;;  %v1771_v33 = vpop.f32.mrb[29].mxu1  ;;  %v2684_v24 = vld [vmem:[%s3186_s28 + $0x230] sm:$0xff] }
 0x2a2   : > { %v1937_v28 = vmul.f32 %v3527_v41, %v1578_v26  ;;  %v1580_v29 = vpop.f32.mrb[30].mxu0  ;;  %v1939_v38 = vmul.f32 %v3531_v44, %v1771_v33  ;;  %v1773_v39 = vpop.f32.mrb[30].mxu1  ;;  %v2685_v26 = vld [vmem:[%s3186_s28 + $0x238] sm:$0xff] }
 0x2a3   : > { %v2064_v31 = vadd.f32 %v2670_v30, %v1936_v25  ;;  %v1940_v34 = vmul.f32 %v3525_v40, %v1580_v29  ;;  %v1582_v35 = vpop.f32.mrb[31].mxu0  ;;  %v2066_v46 = vadd.f32 %v2672_v45, %v1938_v32  ;;  %v1942_v49 = vmul.f32 %v3529_v42, %v1773_v39  ;;  %v1775_v50 = vpop.f32.mrb[31].mxu1 }
 0x2a4   : > { %v2065_v37 = vadd.f32 %v2671_v36, %v1937_v28  ;;  %v1941_v43 = vmul.f32 %v3527_v41, %v1582_v35  ;;  %v2067_v52 = vadd.f32 %v2674_v51, %v1939_v38  ;;  %v1943_v55 = vmul.f32 %v3531_v44, %v1775_v50  ;;  %v2689_v51 = vld [vmem:[%s3186_s28 + $0x260] sm:$0xff] }
 0x2a5   : > { %2192 = vst [vmem:[%s3543_s27 + $0x1c0] sm:$0xff] %v2064_v31  ;;  %v2068_v48 = vadd.f32 %v2673_v47, %v1940_v34  ;;  %2194 = vst [vmem:[%s3543_s27 + $0x1d0] sm:$0xff] %v2066_v46  ;;  %v2070_v57 = vadd.f32 %v2676_v56, %v1942_v49  ;;  %v2686_v34 = vld [vmem:[%s3186_s28 + $0x240] sm:$0xff]  ;;  %v2688_v49 = vld [vmem:[%s3186_s28 + $0x250] sm:$0xff] }
 0x2a6   : > { %2193 = vst [vmem:[%s3543_s27 + $0x1c8] sm:$0xff] %v2065_v37  ;;  %v2069_v54 = vadd.f32 %v2675_v53, %v1941_v43  ;;  %2195 = vst [vmem:[%s3543_s27 + $0x1d8] sm:$0xff] %v2067_v52  ;;  %v2071_v59 = vadd.f32 %v2677_v58, %v1943_v55  ;;  %v2687_v43 = vld [vmem:[%s3186_s28 + $0x248] sm:$0xff]  ;;  %v2690_v55 = vld [vmem:[%s3186_s28 + $0x258] sm:$0xff] }
 0x2a7   : > { %2196 = vst [vmem:[%s3543_s27 + $0x1e0] sm:$0xff] %v2068_v48  ;;  %2198 = vst [vmem:[%s3543_s27 + $0x1f0] sm:$0xff] %v2070_v57  ;;  %v2691_v57 = vld [vmem:[%s3186_s28 + $0x268] sm:$0xff] }
 0x2a8   : > { %2197 = vst [vmem:[%s3543_s27 + $0x1e8] sm:$0xff] %v2069_v54  ;;  %v1586_v60 = vpop.f32.mrb[32].mxu0  ;;  %2199 = vst [vmem:[%s3543_s27 + $0x1f8] sm:$0xff] %v2071_v59  ;;  %v1779_v63 = vpop.f32.mrb[32].mxu1 }
 0x2a9   : > { %v1944_v61 = vmul.f32 %v3525_v40, %v1586_v60  ;;  %v1588_v62 = vpop.f32.mrb[33].mxu0  ;;  %v1946_v4 = vmul.f32 %v3529_v42, %v1779_v63  ;;  %v1781_v5 = vpop.f32.mrb[33].mxu1  ;;  %v2692_v60 = vld [vmem:[%s3186_s28 + $0x270] sm:$0xff] }
 0x2aa   : > { %v1945_v0 = vmul.f32 %v3527_v41, %v1588_v62  ;;  %v1590_v1 = vpop.f32.mrb[34].mxu0  ;;  %v1947_v10 = vmul.f32 %v3531_v44, %v1781_v5  ;;  %v1783_v11 = vpop.f32.mrb[34].mxu1  ;;  %v2693_v62 = vld [vmem:[%s3186_s28 + $0x278] sm:$0xff] }
 0x2ab   : > { %v2072_v3 = vadd.f32 %v2678_v2, %v1944_v61  ;;  %v1948_v6 = vmul.f32 %v3525_v40, %v1590_v1  ;;  %v1592_v7 = vpop.f32.mrb[35].mxu0  ;;  %v2074_v14 = vadd.f32 %v2680_v13, %v1946_v4  ;;  %v1950_v17 = vmul.f32 %v3529_v42, %v1783_v11  ;;  %v1785_v18 = vpop.f32.mrb[35].mxu1 }
 0x2ac   : > { %v2073_v9 = vadd.f32 %v2679_v8, %v1945_v0  ;;  %v1949_v12 = vmul.f32 %v3527_v41, %v1592_v7  ;;  %v2075_v20 = vadd.f32 %v2682_v19, %v1947_v10  ;;  %v1951_v23 = vmul.f32 %v3531_v44, %v1785_v18  ;;  %v2697_v19 = vld [vmem:[%s3186_s28 + $0x2a0] sm:$0xff] }
 0x2ad   : > { %2200 = vst [vmem:[%s3543_s27 + $0x200] sm:$0xff] %v2072_v3  ;;  %v2076_v16 = vadd.f32 %v2681_v15, %v1948_v6  ;;  %2202 = vst [vmem:[%s3543_s27 + $0x210] sm:$0xff] %v2074_v14  ;;  %v2078_v25 = vadd.f32 %v2684_v24, %v1950_v17  ;;  %v2694_v6 = vld [vmem:[%s3186_s28 + $0x280] sm:$0xff]  ;;  %v2696_v17 = vld [vmem:[%s3186_s28 + $0x290] sm:$0xff] }
 0x2ae   : > { %2201 = vst [vmem:[%s3543_s27 + $0x208] sm:$0xff] %v2073_v9  ;;  %v2077_v22 = vadd.f32 %v2683_v21, %v1949_v12  ;;  %2203 = vst [vmem:[%s3543_s27 + $0x218] sm:$0xff] %v2075_v20  ;;  %v2079_v27 = vadd.f32 %v2685_v26, %v1951_v23  ;;  %v2695_v12 = vld [vmem:[%s3186_s28 + $0x288] sm:$0xff]  ;;  %v2698_v23 = vld [vmem:[%s3186_s28 + $0x298] sm:$0xff] }
 0x2af   : > { %2204 = vst [vmem:[%s3543_s27 + $0x220] sm:$0xff] %v2076_v16  ;;  %2206 = vst [vmem:[%s3543_s27 + $0x230] sm:$0xff] %v2078_v25  ;;  %v2699_v25 = vld [vmem:[%s3186_s28 + $0x2a8] sm:$0xff] }
 0x2b0   : > { %2205 = vst [vmem:[%s3543_s27 + $0x228] sm:$0xff] %v2077_v22  ;;  %v1596_v28 = vpop.f32.mrb[36].mxu0  ;;  %2207 = vst [vmem:[%s3543_s27 + $0x238] sm:$0xff] %v2079_v27  ;;  %v1789_v31 = vpop.f32.mrb[36].mxu1 }
 0x2b1   : > { %v1952_v29 = vmul.f32 %v3525_v40, %v1596_v28  ;;  %v1598_v30 = vpop.f32.mrb[37].mxu0  ;;  %v1954_v36 = vmul.f32 %v3529_v42, %v1789_v31  ;;  %v1791_v37 = vpop.f32.mrb[37].mxu1  ;;  %v2700_v28 = vld [vmem:[%s3186_s28 + $0x2b0] sm:$0xff] }
 0x2b2   : > { %v1953_v32 = vmul.f32 %v3527_v41, %v1598_v30  ;;  %v1600_v33 = vpop.f32.mrb[38].mxu0  ;;  %v1955_v46 = vmul.f32 %v3531_v44, %v1791_v37  ;;  %v1793_v47 = vpop.f32.mrb[38].mxu1  ;;  %v2701_v30 = vld [vmem:[%s3186_s28 + $0x2b8] sm:$0xff] }
 0x2b3   : > { %v2080_v35 = vadd.f32 %v2686_v34, %v1952_v29  ;;  %v1956_v38 = vmul.f32 %v3525_v40, %v1600_v33  ;;  %v1602_v39 = vpop.f32.mrb[39].mxu0  ;;  %v2082_v50 = vadd.f32 %v2688_v49, %v1954_v36  ;;  %v1958_v53 = vmul.f32 %v3529_v42, %v1793_v47  ;;  %v1795_v54 = vpop.f32.mrb[39].mxu1 }
 0x2b4   : > { %v2081_v45 = vadd.f32 %v2687_v43, %v1953_v32  ;;  %v1957_v48 = vmul.f32 %v3527_v41, %v1602_v39  ;;  %v2083_v56 = vadd.f32 %v2690_v55, %v1955_v46  ;;  %v1959_v59 = vmul.f32 %v3531_v44, %v1795_v54  ;;  %v2705_v55 = vld [vmem:[%s3186_s28 + $0x2e0] sm:$0xff] }
 0x2b5   : > { %2208 = vst [vmem:[%s3543_s27 + $0x240] sm:$0xff] %v2080_v35  ;;  %v2084_v52 = vadd.f32 %v2689_v51, %v1956_v38  ;;  %2210 = vst [vmem:[%s3543_s27 + $0x250] sm:$0xff] %v2082_v50  ;;  %v2086_v61 = vadd.f32 %v2692_v60, %v1958_v53  ;;  %v2702_v38 = vld [vmem:[%s3186_s28 + $0x2c0] sm:$0xff]  ;;  %v2704_v53 = vld [vmem:[%s3186_s28 + $0x2d0] sm:$0xff] }
 0x2b6   : > { %2209 = vst [vmem:[%s3543_s27 + $0x248] sm:$0xff] %v2081_v45  ;;  %v2085_v58 = vadd.f32 %v2691_v57, %v1957_v48  ;;  %2211 = vst [vmem:[%s3543_s27 + $0x258] sm:$0xff] %v2083_v56  ;;  %v2087_v63 = vadd.f32 %v2693_v62, %v1959_v59  ;;  %v2703_v48 = vld [vmem:[%s3186_s28 + $0x2c8] sm:$0xff]  ;;  %v2706_v59 = vld [vmem:[%s3186_s28 + $0x2d8] sm:$0xff] }
 0x2b7   : > { %2212 = vst [vmem:[%s3543_s27 + $0x260] sm:$0xff] %v2084_v52  ;;  %2214 = vst [vmem:[%s3543_s27 + $0x270] sm:$0xff] %v2086_v61  ;;  %v2707_v61 = vld [vmem:[%s3186_s28 + $0x2e8] sm:$0xff] }
 0x2b8   : > { %2213 = vst [vmem:[%s3543_s27 + $0x268] sm:$0xff] %v2085_v58  ;;  %v1606_v0 = vpop.f32.mrb[40].mxu0  ;;  %2215 = vst [vmem:[%s3543_s27 + $0x278] sm:$0xff] %v2087_v63  ;;  %v1799_v3 = vpop.f32.mrb[40].mxu1 }
 0x2b9   : > { %v1960_v1 = vmul.f32 %v3525_v40, %v1606_v0  ;;  %v1608_v2 = vpop.f32.mrb[41].mxu0  ;;  %v1962_v8 = vmul.f32 %v3529_v42, %v1799_v3  ;;  %v1801_v9 = vpop.f32.mrb[41].mxu1  ;;  %v2708_v0 = vld [vmem:[%s3186_s28 + $0x2f0] sm:$0xff] }
 0x2ba   : > { %v1961_v4 = vmul.f32 %v3527_v41, %v1608_v2  ;;  %v1610_v5 = vpop.f32.mrb[42].mxu0  ;;  %v1963_v14 = vmul.f32 %v3531_v44, %v1801_v9  ;;  %v1803_v15 = vpop.f32.mrb[42].mxu1  ;;  %v2709_v2 = vld [vmem:[%s3186_s28 + $0x2f8] sm:$0xff] }
 0x2bb   : > { %v2088_v7 = vadd.f32 %v2694_v6, %v1960_v1  ;;  %v1964_v10 = vmul.f32 %v3525_v40, %v1610_v5  ;;  %v1612_v11 = vpop.f32.mrb[43].mxu0  ;;  %v2090_v18 = vadd.f32 %v2696_v17, %v1962_v8  ;;  %v1966_v21 = vmul.f32 %v3529_v42, %v1803_v15  ;;  %v1805_v22 = vpop.f32.mrb[43].mxu1 }
 0x2bc   : > { %v2089_v13 = vadd.f32 %v2695_v12, %v1961_v4  ;;  %v1965_v16 = vmul.f32 %v3527_v41, %v1612_v11  ;;  %v2091_v24 = vadd.f32 %v2698_v23, %v1963_v14  ;;  %v1967_v27 = vmul.f32 %v3531_v44, %v1805_v22  ;;  %v2713_v23 = vld [vmem:[%s3186_s28 + $0x320] sm:$0xff] }
 0x2bd   : > { %2216 = vst [vmem:[%s3543_s27 + $0x280] sm:$0xff] %v2088_v7  ;;  %v2092_v20 = vadd.f32 %v2697_v19, %v1964_v10  ;;  %2218 = vst [vmem:[%s3543_s27 + $0x290] sm:$0xff] %v2090_v18  ;;  %v2094_v29 = vadd.f32 %v2700_v28, %v1966_v21  ;;  %v2710_v10 = vld [vmem:[%s3186_s28 + $0x300] sm:$0xff]  ;;  %v2712_v21 = vld [vmem:[%s3186_s28 + $0x310] sm:$0xff] }
 0x2be   : > { %2217 = vst [vmem:[%s3543_s27 + $0x288] sm:$0xff] %v2089_v13  ;;  %v2093_v26 = vadd.f32 %v2699_v25, %v1965_v16  ;;  %2219 = vst [vmem:[%s3543_s27 + $0x298] sm:$0xff] %v2091_v24  ;;  %v2095_v31 = vadd.f32 %v2701_v30, %v1967_v27  ;;  %v2711_v16 = vld [vmem:[%s3186_s28 + $0x308] sm:$0xff]  ;;  %v2714_v27 = vld [vmem:[%s3186_s28 + $0x318] sm:$0xff] }
 0x2bf   : > { %2220 = vst [vmem:[%s3543_s27 + $0x2a0] sm:$0xff] %v2092_v20  ;;  %2222 = vst [vmem:[%s3543_s27 + $0x2b0] sm:$0xff] %v2094_v29  ;;  %v2715_v29 = vld [vmem:[%s3186_s28 + $0x328] sm:$0xff] }
 0x2c0   : > { %2221 = vst [vmem:[%s3543_s27 + $0x2a8] sm:$0xff] %v2093_v26  ;;  %v1616_v32 = vpop.f32.mrb[44].mxu0  ;;  %2223 = vst [vmem:[%s3543_s27 + $0x2b8] sm:$0xff] %v2095_v31  ;;  %v1809_v35 = vpop.f32.mrb[44].mxu1 }
 0x2c1   : > { %v1968_v33 = vmul.f32 %v3525_v40, %v1616_v32  ;;  %v1618_v34 = vpop.f32.mrb[45].mxu0  ;;  %v1970_v43 = vmul.f32 %v3529_v42, %v1809_v35  ;;  %v1811_v45 = vpop.f32.mrb[45].mxu1  ;;  %v2716_v32 = vld [vmem:[%s3186_s28 + $0x330] sm:$0xff] }
 0x2c2   : > { %v1969_v36 = vmul.f32 %v3527_v41, %v1618_v34  ;;  %v1620_v37 = vpop.f32.mrb[46].mxu0  ;;  %v1971_v50 = vmul.f32 %v3531_v44, %v1811_v45  ;;  %v1813_v51 = vpop.f32.mrb[46].mxu1  ;;  %v2717_v34 = vld [vmem:[%s3186_s28 + $0x338] sm:$0xff] }
 0x2c3   : > { %v2096_v39 = vadd.f32 %v2702_v38, %v1968_v33  ;;  %v1972_v46 = vmul.f32 %v3525_v40, %v1620_v37  ;;  %v1622_v47 = vpop.f32.mrb[47].mxu0  ;;  %v2098_v54 = vadd.f32 %v2704_v53, %v1970_v43  ;;  %v1974_v57 = vmul.f32 %v3529_v42, %v1813_v51  ;;  %v1815_v58 = vpop.f32.mrb[47].mxu1 }
 0x2c4   : > { %v2097_v49 = vadd.f32 %v2703_v48, %v1969_v36  ;;  %v1973_v52 = vmul.f32 %v3527_v41, %v1622_v47  ;;  %v2099_v60 = vadd.f32 %v2706_v59, %v1971_v50  ;;  %v1975_v63 = vmul.f32 %v3531_v44, %v1815_v58  ;;  %v2721_v59 = vld [vmem:[%s3186_s28 + $0x360] sm:$0xff] }
 0x2c5   : > { %2224 = vst [vmem:[%s3543_s27 + $0x2c0] sm:$0xff] %v2096_v39  ;;  %v2100_v56 = vadd.f32 %v2705_v55, %v1972_v46  ;;  %2226 = vst [vmem:[%s3543_s27 + $0x2d0] sm:$0xff] %v2098_v54  ;;  %v2102_v1 = vadd.f32 %v2708_v0, %v1974_v57  ;;  %v2718_v46 = vld [vmem:[%s3186_s28 + $0x340] sm:$0xff]  ;;  %v2720_v57 = vld [vmem:[%s3186_s28 + $0x350] sm:$0xff] }
 0x2c6   : > { %2225 = vst [vmem:[%s3543_s27 + $0x2c8] sm:$0xff] %v2097_v49  ;;  %v2101_v62 = vadd.f32 %v2707_v61, %v1973_v52  ;;  %2227 = vst [vmem:[%s3543_s27 + $0x2d8] sm:$0xff] %v2099_v60  ;;  %v2103_v3 = vadd.f32 %v2709_v2, %v1975_v63  ;;  %v2719_v52 = vld [vmem:[%s3186_s28 + $0x348] sm:$0xff]  ;;  %v2722_v63 = vld [vmem:[%s3186_s28 + $0x358] sm:$0xff] }
 0x2c7   : > { %2228 = vst [vmem:[%s3543_s27 + $0x2e0] sm:$0xff] %v2100_v56  ;;  %2230 = vst [vmem:[%s3543_s27 + $0x2f0] sm:$0xff] %v2102_v1  ;;  %v2723_v1 = vld [vmem:[%s3186_s28 + $0x368] sm:$0xff] }
 0x2c8   : > { %2229 = vst [vmem:[%s3543_s27 + $0x2e8] sm:$0xff] %v2101_v62  ;;  %v1626_v4 = vpop.f32.mrb[48].mxu0  ;;  %2231 = vst [vmem:[%s3543_s27 + $0x2f8] sm:$0xff] %v2103_v3  ;;  %v1819_v7 = vpop.f32.mrb[48].mxu1 }
 0x2c9   : > { %v1976_v5 = vmul.f32 %v3525_v40, %v1626_v4  ;;  %v1628_v6 = vpop.f32.mrb[49].mxu0  ;;  %v1978_v12 = vmul.f32 %v3529_v42, %v1819_v7  ;;  %v1821_v13 = vpop.f32.mrb[49].mxu1  ;;  %v2724_v4 = vld [vmem:[%s3186_s28 + $0x370] sm:$0xff] }
 0x2ca   : > { %v1977_v8 = vmul.f32 %v3527_v41, %v1628_v6  ;;  %v1630_v9 = vpop.f32.mrb[50].mxu0  ;;  %v1979_v18 = vmul.f32 %v3531_v44, %v1821_v13  ;;  %v1823_v19 = vpop.f32.mrb[50].mxu1  ;;  %v2725_v6 = vld [vmem:[%s3186_s28 + $0x378] sm:$0xff] }
 0x2cb   : > { %v2104_v11 = vadd.f32 %v2710_v10, %v1976_v5  ;;  %v1980_v14 = vmul.f32 %v3525_v40, %v1630_v9  ;;  %v1632_v15 = vpop.f32.mrb[51].mxu0  ;;  %v2106_v22 = vadd.f32 %v2712_v21, %v1978_v12  ;;  %v1982_v25 = vmul.f32 %v3529_v42, %v1823_v19  ;;  %v1825_v26 = vpop.f32.mrb[51].mxu1 }
 0x2cc   : > { %v2105_v17 = vadd.f32 %v2711_v16, %v1977_v8  ;;  %v1981_v20 = vmul.f32 %v3527_v41, %v1632_v15  ;;  %v2107_v28 = vadd.f32 %v2714_v27, %v1979_v18  ;;  %v1983_v31 = vmul.f32 %v3531_v44, %v1825_v26  ;;  %v2729_v27 = vld [vmem:[%s3186_s28 + $0x3a0] sm:$0xff] }
 0x2cd   : > { %2232 = vst [vmem:[%s3543_s27 + $0x300] sm:$0xff] %v2104_v11  ;;  %v2108_v24 = vadd.f32 %v2713_v23, %v1980_v14  ;;  %2234 = vst [vmem:[%s3543_s27 + $0x310] sm:$0xff] %v2106_v22  ;;  %v2110_v33 = vadd.f32 %v2716_v32, %v1982_v25  ;;  %v2726_v14 = vld [vmem:[%s3186_s28 + $0x380] sm:$0xff]  ;;  %v2728_v25 = vld [vmem:[%s3186_s28 + $0x390] sm:$0xff] }
 0x2ce   : > { %2233 = vst [vmem:[%s3543_s27 + $0x308] sm:$0xff] %v2105_v17  ;;  %v2109_v30 = vadd.f32 %v2715_v29, %v1981_v20  ;;  %2235 = vst [vmem:[%s3543_s27 + $0x318] sm:$0xff] %v2107_v28  ;;  %v2111_v35 = vadd.f32 %v2717_v34, %v1983_v31  ;;  %v2727_v20 = vld [vmem:[%s3186_s28 + $0x388] sm:$0xff]  ;;  %v2730_v31 = vld [vmem:[%s3186_s28 + $0x398] sm:$0xff] }
 0x2cf   : > { %2236 = vst [vmem:[%s3543_s27 + $0x320] sm:$0xff] %v2108_v24  ;;  %2238 = vst [vmem:[%s3543_s27 + $0x330] sm:$0xff] %v2110_v33  ;;  %v2731_v33 = vld [vmem:[%s3186_s28 + $0x3a8] sm:$0xff] }
 0x2d0   : > { %2237 = vst [vmem:[%s3543_s27 + $0x328] sm:$0xff] %v2109_v30  ;;  %v1636_v36 = vpop.f32.mrb[52].mxu0  ;;  %2239 = vst [vmem:[%s3543_s27 + $0x338] sm:$0xff] %v2111_v35  ;;  %v1829_v39 = vpop.f32.mrb[52].mxu1 }
 0x2d1   : > { %v1984_v37 = vmul.f32 %v3525_v40, %v1636_v36  ;;  %v1638_v38 = vpop.f32.mrb[53].mxu0  ;;  %v1986_v48 = vmul.f32 %v3529_v42, %v1829_v39  ;;  %v1831_v49 = vpop.f32.mrb[53].mxu1  ;;  %v2732_v36 = vld [vmem:[%s3186_s28 + $0x3b0] sm:$0xff] }
 0x2d2   : > { %v1985_v43 = vmul.f32 %v3527_v41, %v1638_v38  ;;  %v1640_v45 = vpop.f32.mrb[54].mxu0  ;;  %v1987_v54 = vmul.f32 %v3531_v44, %v1831_v49  ;;  %v1833_v55 = vpop.f32.mrb[54].mxu1  ;;  %v2733_v38 = vld [vmem:[%s3186_s28 + $0x3b8] sm:$0xff] }
 0x2d3   : > { %v2112_v47 = vadd.f32 %v2718_v46, %v1984_v37  ;;  %v1988_v50 = vmul.f32 %v3525_v40, %v1640_v45  ;;  %v1642_v51 = vpop.f32.mrb[55].mxu0  ;;  %v2114_v58 = vadd.f32 %v2720_v57, %v1986_v48  ;;  %v1990_v61 = vmul.f32 %v3529_v42, %v1833_v55  ;;  %v1835_v62 = vpop.f32.mrb[55].mxu1 }
 0x2d4   : > { %v2113_v53 = vadd.f32 %v2719_v52, %v1985_v43  ;;  %v1989_v56 = vmul.f32 %v3527_v41, %v1642_v51  ;;  %v2115_v0 = vadd.f32 %v2722_v63, %v1987_v54  ;;  %v1991_v3 = vmul.f32 %v3531_v44, %v1835_v62 }
 0x2d5   : > { %2240 = vst [vmem:[%s3543_s27 + $0x340] sm:$0xff] %v2112_v47  ;;  %v2116_v60 = vadd.f32 %v2721_v59, %v1988_v50  ;;  %2242 = vst [vmem:[%s3543_s27 + $0x350] sm:$0xff] %v2114_v58  ;;  %v2118_v5 = vadd.f32 %v2724_v4, %v1990_v61  ;;  %v2734_v50 = vld [vmem:[%s3186_s28 + $0x3c0] sm:$0xff]  ;;  %v2736_v61 = vld [vmem:[%s3186_s28 + $0x3d0] sm:$0xff] }
 0x2d6   : > { %2241 = vst [vmem:[%s3543_s27 + $0x348] sm:$0xff] %v2113_v53  ;;  %v2117_v2 = vadd.f32 %v2723_v1, %v1989_v56  ;;  %2243 = vst [vmem:[%s3543_s27 + $0x358] sm:$0xff] %v2115_v0  ;;  %v2119_v7 = vadd.f32 %v2725_v6, %v1991_v3  ;;  %v2735_v56 = vld [vmem:[%s3186_s28 + $0x3c8] sm:$0xff] }
 0x2d7   : > { %2244 = vst [vmem:[%s3543_s27 + $0x360] sm:$0xff] %v2116_v60  ;;  %2246 = vst [vmem:[%s3543_s27 + $0x370] sm:$0xff] %v2118_v5  ;;  %v2739_v3 = vld [vmem:[%s3186_s28 + $0x3e8] sm:$0xff] }
 0x2d8   : > { %2245 = vst [vmem:[%s3543_s27 + $0x368] sm:$0xff] %v2117_v2  ;;  %v1646_v8 = vpop.f32.mrb[56].mxu0  ;;  %2247 = vst [vmem:[%s3543_s27 + $0x378] sm:$0xff] %v2119_v7  ;;  %v1839_v11 = vpop.f32.mrb[56].mxu1  ;;  %v2738_v2 = vld [vmem:[%s3186_s28 + $0x3d8] sm:$0xff] }
 0x2d9   : > { %v1992_v9 = vmul.f32 %v3525_v40, %v1646_v8  ;;  %v1648_v10 = vpop.f32.mrb[57].mxu0  ;;  %v1994_v16 = vmul.f32 %v3529_v42, %v1839_v11  ;;  %v1841_v17 = vpop.f32.mrb[57].mxu1  ;;  %v2741_v7 = vld [vmem:[%s3186_s28 + $0x3f8] sm:$0xff] }
 0x2da   : > { %v1993_v12 = vmul.f32 %v3527_v41, %v1648_v10  ;;  %v1650_v13 = vpop.f32.mrb[58].mxu0  ;;  %v1995_v22 = vmul.f32 %v3531_v44, %v1841_v17  ;;  %v1843_v23 = vpop.f32.mrb[58].mxu1 }
 0x2db   : > { %v2120_v15 = vadd.f32 %v2726_v14, %v1992_v9  ;;  %v1996_v18 = vmul.f32 %v3525_v40, %v1650_v13  ;;  %v1652_v19 = vpop.f32.mrb[59].mxu0  ;;  %v2122_v26 = vadd.f32 %v2728_v25, %v1994_v16  ;;  %v1998_v29 = vmul.f32 %v3529_v42, %v1843_v23  ;;  %v1845_v30 = vpop.f32.mrb[59].mxu1 }
 0x2dc   : > { %v2121_v21 = vadd.f32 %v2727_v20, %v1993_v12  ;;  %v1997_v24 = vmul.f32 %v3527_v41, %v1652_v19  ;;  %v2123_v32 = vadd.f32 %v2730_v31, %v1995_v22  ;;  %v1999_v35 = vmul.f32 %v3531_v44, %v1845_v30 }
 0x2dd   : > { %2248 = vst [vmem:[%s3543_s27 + $0x380] sm:$0xff] %v2120_v15  ;;  %v2124_v28 = vadd.f32 %v2729_v27, %v1996_v18  ;;  %2250 = vst [vmem:[%s3543_s27 + $0x390] sm:$0xff] %v2122_v26  ;;  %v2126_v37 = vadd.f32 %v2732_v36, %v1998_v29 }
 0x2de   : > { %2249 = vst [vmem:[%s3543_s27 + $0x388] sm:$0xff] %v2121_v21  ;;  %v2125_v34 = vadd.f32 %v2731_v33, %v1997_v24  ;;  %2251 = vst [vmem:[%s3543_s27 + $0x398] sm:$0xff] %v2123_v32  ;;  %v2127_v39 = vadd.f32 %v2733_v38, %v1999_v35 }
 0x2df   : > { %2252 = vst [vmem:[%s3543_s27 + $0x3a0] sm:$0xff] %v2124_v28  ;;  %2254 = vst [vmem:[%s3543_s27 + $0x3b0] sm:$0xff] %v2126_v37 }
 0x2e0   : > { %2253 = vst [vmem:[%s3543_s27 + $0x3a8] sm:$0xff] %v2125_v34  ;;  %v1656_v43 = vpop.f32.mrb[60].mxu0  ;;  %2255 = vst [vmem:[%s3543_s27 + $0x3b8] sm:$0xff] %v2127_v39  ;;  %v1849_v47 = vpop.f32.mrb[60].mxu1 }
 0x2e1   : > { %v2000_v45 = vmul.f32 %v3525_v40, %v1656_v43  ;;  %v1658_v46 = vpop.f32.mrb[61].mxu0  ;;  %v2002_v52 = vmul.f32 %v3529_v42, %v1849_v47  ;;  %v1851_v53 = vpop.f32.mrb[61].mxu1 }
 0x2e2   : > { %v2001_v48 = vmul.f32 %v3527_v41, %v1658_v46  ;;  %v1660_v49 = vpop.f32.mrb[62].mxu0  ;;  %v2003_v58 = vmul.f32 %v3531_v44, %v1851_v53  ;;  %v1853_v59 = vpop.f32.mrb[62].mxu1 }
 0x2e3   : > { %v2128_v51 = vadd.f32 %v2734_v50, %v2000_v45  ;;  %v2004_v54 = vmul.f32 %v3525_v40, %v1660_v49  ;;  %v1662_v55 = vpop.f32.mrb[63].mxu0  ;;  %v2130_v62 = vadd.f32 %v2736_v61, %v2002_v52  ;;  %v2737_v40 = vld [vmem:[%s3186_s28 + $0x3e0] sm:$0xff]  ;;  %v2006_v0 = vmul.f32 %v3529_v42, %v1853_v59  ;;  %v1855_v1 = vpop.f32.mrb[63].mxu1  ;;  %v2740_v42 = vld [vmem:[%s3186_s28 + $0x3f0] sm:$0xff] }
 0x2e4   : > { %v2129_v57 = vadd.f32 %v2735_v56, %v2001_v48  ;;  %v2005_v60 = vmul.f32 %v3527_v41, %v1662_v55  ;;  %v2131_v41 = vadd.f32 %v2738_v2, %v2003_v58  ;;  %v2007_v5 = vmul.f32 %v3531_v44, %v1855_v1 }
 0x2e5   : > { %2256 = vst [vmem:[%s3543_s27 + $0x3c0] sm:$0xff] %v2128_v51  ;;  %v2132_v63 = vadd.f32 %v2737_v40, %v2004_v54  ;;  %2258 = vst [vmem:[%s3543_s27 + $0x3d0] sm:$0xff] %v2130_v62  ;;  %v2134_v6 = vadd.f32 %v2740_v42, %v2006_v0 }
 0x2e6   : > { %2257 = vst [vmem:[%s3543_s27 + $0x3c8] sm:$0xff] %v2129_v57  ;;  %v2133_v4 = vadd.f32 %v2739_v3, %v2005_v60  ;;  %2259 = vst [vmem:[%s3543_s27 + $0x3d8] sm:$0xff] %v2131_v41  ;;  %v2135_v8 = vadd.f32 %v2741_v7, %v2007_v5 }
 0x2e7   : > { %2260 = vst [vmem:[%s3543_s27 + $0x3e0] sm:$0xff] %v2132_v63  ;;  %2262 = vst [vmem:[%s3543_s27 + $0x3f0] sm:$0xff] %v2134_v6 }
 0x2e8   : > { %2261 = vst [vmem:[%s3543_s27 + $0x3e8] sm:$0xff] %v2133_v4  ;;  %2263 = vst [vmem:[%s3543_s27 + $0x3f8] sm:$0xff] %v2135_v8 }
 0x2e9   : > { %2843 = shalt.err (!%p2840_p11)
}
 0x2ea   : > { %s2844_s28 = scalar_lea.hbm %s3927_s12, 16384  ;;  %s2848_s26 = scalar_lea.hbm %s4037_s8, 65536 }
 0x2eb   : > { %p2845_p5 = scmp.ne.s32.totalorder %s3927_s12, %s2844_s28  ;;  %p2849_p1 = scmp.lt.u32.totalorder %s3927_s12, %s4037_s8 }
 0x2ec   : > { %p2850_p12 = scmp.lt.u32.totalorder %s2848_s26, %s2844_s28  ;;  %p2852_p7 = scmp.lt.u32.totalorder %s2844_s28, %s3927_s12 }
 0x2ed   : > { %p2846_p0 = pnand %p2845_p5, %p4038_p8 }
 0x2ee   : > { %p2851_p3 = por %p2850_p12, %p2849_p1 }
 0x2ef   : > { %p2847_p13 = pneg %p2846_p0 }
 0x2f0   : > { %p2853_p9 = por %p2852_p7, %p2851_p3 }
 0x2f2   : > { %p2854_p2 = pnand %p2853_p9, %p2847_p13 }
 0x2f4   : > { %2857 = shalt.err (!%p2854_p2)
}
 0x2f5   : > { %s2948_s9 = smov 512   ;;  %s2949_s29 = smov 1024  }
 0x2f6   : > { %s2950_s16 = smov 32  }
 0x2f7   : > { %2469 = dma.vmem_to_hbm [thread:$0]  (%p4038_p8), %s3919_s0, 16384, %s3927_s12, %s2265_s7, %s2948_s9, %s2949_s29, %s2950_s16  }
 0x2f8 PF: > { %s4039_s10 = sld [smem:[#allocation13_spill]]  ;;  %s4040_s22 = sld [smem:[#allocation18_spill]] }
 0x2f9   : > { %p2489_p6 = scmp.ge.s32.totalorder %s2936_s25, 2 }
 0x2fe   : > { %s2295_s14 = sand.u32 1, %s4039_s10   ;;  %p4041_p10 = scmp.ne.s32.totalorder %s4040_s22, 0 }
 0x2ff   : > { %s2296_s18 = scalar_lea.sflag [#allocation4], %s2295_s14 }
 0x300   : > { %p2483_p4 = pnand %p2489_p6, %p4041_p10 }
 0x302   : > { %2903 = dma.done.wait (!%p2483_p4), %s2296_s18, 16384  }
 0x303   : > { %2905 = vsyncadd (!%p2483_p4), %s2296_s18, 4294950912  ;;  %s24_s25 = sadd.s32 1, %s2936_s25   ;;  %s4042_s20 = sld [smem:[#allocation14_spill]] }
 0x304   : > { %p21_p11 = scmp.ge.s32.totalorder %s24_s25, 6   ;;  %s4043_s6 = sld [smem:[#allocation21_spill]] }
 0x305   : > { %s4044_s0 = sld [smem:[#allocation19_spill]]  ;;  %s4045_s15 = sld [smem:[#allocation20_spill]] }
 0x306   : > { %s4046_s18 = smov %s2912_s19  ;;  %s4049_s21 = smov %s2928_s23 }
 0x307   : > { %s4050_s22 = smov %s2932_s24  ;;  %23 = sbr.rel (!%p21_p11) target bundleno = 13 (0xd), region = 102 }
 0x309   : > { %s4047_s19 = smov %s4042_s20 }
 0x30a   : > { %s4048_s20 = smov %s4043_s6 }
 0x30b   : > { %s4051_s23 = smov %s4044_s0  ;;  %s4052_s24 = smov %s4045_s15 }
 0x30e   :  { %2301 = vsyncpa [#allocation3], 1 }
 0x30f   :  { %2303 = vsyncpa [#allocation3 + $0x1], 1 }
 0x310   :  { %2304 = vsyncpa [#allocation6], 1 }
 0x311   :  { %2306 = vsyncpa [#allocation6 + $0x1], 1 }
 0x312   :  { %2307 = vsyncpa [#allocation4], 1 }
 0x313   :  { %2309 = vsyncpa [#allocation4 + $0x1], 1 }

// kernel: tpu_custom_call.1
= control target key start
LH: loop header
LB: loop body
LE: loop exit
PB: predicated region body
PF: predicated region fallthrough
CT: control target
= control target key end

     0   :  { %s3986_s0 = inlined_call_operand.hbm [shape: f32[2,256,1024], index: 0, kind: input, shape index: {}]   ;;  %s3987_s1 = inlined_call_operand.hbm [shape: f32[2,1,1024], index: 1, kind: input, shape index: {}]   ;;  %s3988_s2 = inlined_call_operand.vmem [shape: f32[256,1], index: 2, kind: input, shape index: {}]   ;;  %s3989_s3 = inlined_call_operand.vmem [shape: f32[256,1], index: 3, kind: input, shape index: {}]   ;;  %s3990_s4 = inlined_call_operand.hbm [shape: bf16[256,256], index: 4, kind: input, shape index: {}]   ;;  %s3991_s5 = inlined_call_operand.hbm [shape: f32[2,256,1024], index: 5, kind: output, shape index: {}]  }
   0x1   :  { %4005 = sst [smem:[#allocation22_spill]] %s3986_s0 }
   0x2   :  { %4006 = sst [smem:[#allocation23_spill]] %s3990_s4 }
   0x3   :  { %4007 = sst [smem:[#allocation24_spill]] %s3991_s5 }
   0x4   :  { %10 = vsyncpa [#allocation3], 0 }
   0x5   :  { %12 = vsyncpa [#allocation3 + $0x1], 0 }
   0x6   :  { %13 = vsyncpa [#allocation6], 0 }
   0x7   :  { %15 = vsyncpa [#allocation6 + $0x1], 0 }
   0x8   :  { %16 = vsyncpa [#allocation4], 0 }
   0x9   :  { %18 = vsyncpa [#allocation4 + $0x1], 0  ;;  %s2981_s18 = smov 0   ;;  %s2983_s19 = smov 0  }
   0xa   :  { %s2985_s20 = smov 0   ;;  %s2987_s21 = smov 0  }
   0xb   :  { %s2989_s22 = smov 0   ;;  %s2991_s23 = smov 0  }
   0xc   :  { %s2993_s24 = smov 0   ;;  %s2995_s25 = smov 0  }
   0xd LB: > { %4008 = sst [smem:[#allocation13_spill]] %s2908_s18  ;;  %s3022_s26 = sadd.s32 4294967295, %s2936_s25   ;;  %s2936_s25 = sphi %s2995_s25, %s24_s25   ;;  %s2932_s24 = sphi %s2993_s24, %s4052_s24   ;;  %s2928_s23 = sphi %s2991_s23, %s4051_s23   ;;  %s2924_s22 = sphi %s2989_s22, %s4050_s22   ;;  %s2920_s21 = sphi %s2987_s21, %s4049_s21   ;;  %s2916_s20 = sphi %s2985_s20, %s4048_s20   ;;  %s2912_s19 = sphi %s2983_s19, %s4047_s19   ;;  %s2908_s18 = sphi %s2981_s18, %s4046_s18  }
   0xe   : > { %4009 = sst [smem:[#allocation14_spill]] %s2916_s20  ;;  %s2406_s27 = sadd.s32 4294967294, %s2936_s25  }
   0xf   : > { %4010 = sst [smem:[#allocation15_spill]] %s2920_s21  ;;  %p52_p0 = scmp.ne.s32.totalorder %s2916_s20, %s2912_s19 }
  0x10   : > { %4011 = sst [smem:[#allocation16_spill]] %s2924_s22  ;;  %p53_p1 = scmp.eq.s32.totalorder %s2936_s25, 0 }
  0x11   : > { %p58_p2 = scmp.ne.s32.totalorder %s2912_s19, %s2908_s18  ;;  %p3992_p3 = scmp.eq.s32.totalorder %s3022_s26, 0 }
  0x12   : > { %p175_p4 = scmp.eq.s32.totalorder %s3022_s26, 3  ;;  %p3033_p5 = por %p53_p1, %p52_p0 }
  0x13   : > { %p181_p6 = scmp.eq.s32.totalorder %s2406_s27, 3  ;;  %p3039_p7 = por %p3992_p3, %p58_p2 }
  0x14   : > { %p3043_p8 = por %p175_p4, %p52_p0  ;;  %p2407_p10 = scmp.ge.s32.totalorder %s2936_s25, 1 }
  0x15   : > { %s4013_s30 = scalar_select %p3039_p7, 1, 0 }
  0x16   : > { %s4014_s6 = scalar_select %p3043_p8, 1, 0 }
  0x17   : > { %p3047_p9 = por %p181_p6, %p58_p2  ;;  %p188_p11 = scmp.lt.s32.totalorder %s2936_s25, 5 }
  0x18   : > { %4015 = sst [smem:[#allocation17_spill]] %s4014_s6  ;;  %s2938_s9 = smov [#allocation7]  }
  0x19   : > { %s4016_s7 = scalar_select %p3047_p9, 1, 0 }
  0x1a   : > { %p3053_p12 = pnand %p2407_p10, %p188_p11  ;;  %s206_s10 = sshll.u32 %s2938_s9, 4  ;;  %s207_s10 = int_to_ptr.vmem [resolvable:$true] %s206_s10 }
  0x1b   : > { %4017 = sst [smem:[#allocation18_spill]] %s4016_s7  ;;  %p2487_p0 = scmp.lt.s32.totalorder %s2936_s25, 4 }
  0x1c   : > { %s4018_s8 = scalar_select %p3053_p12, 1, 0 }
  0x1d   : > { %p2471_p13 = pneg %p3053_p12  ;;  %p3068_p2 = pnand %p2487_p0, %p3033_p5 }
  0x1e   : > { %s4021_s4 = sld [smem:[#allocation23_spill]] }
  0x1f   : > { %p3062_p1 = pnand %p2471_p13, %p3992_p3 }
  0x20   : > { %s4020_s12 = scalar_select %p3068_p2, 1, 0 }
  0x21   : > { %p2744_p6 = pneg %p3062_p1 }
  0x24   : > { %s2742_s15 = scalar_lea.hbm %s4021_s4, 4096 }
  0x25   : > { %p2743_p4 = scmp.ne.s32.totalorder %s4021_s4, %s2742_s15  ;;  %p2749_p13 = scmp.lt.u32.totalorder %s2742_s15, %s4021_s4 }
  0x27   : > { %p2745_p10 = pnand %p2744_p6, %p2743_p4 }
  0x29   : > { %p2746_p11 = pneg %p2745_p10 }
  0x2b   : > { %p2751_p5 = pnand %p2749_p13, %p2746_p11 }
  0x2d   : > { %2754 = shalt.err (!%p2751_p5)
}
  0x2e   : > { %s2755_s29 = scalar_lea.vmem %s207_s10, 4096  ;;  %p2763_p8 = scmp.lt.s32.totalorder %s207_s10, %s207_s10 }
  0x2f   : > { %p2756_p0 = scmp.ne.s32.totalorder %s207_s10, %s2755_s29  ;;  %p2764_p7 = scmp.lt.s32.totalorder %s2755_s29, %s2755_s29 }
  0x31   : > { %p2758_p3 = pnand %p2756_p0, %p2744_p6  ;;  %p2765_p12 = por %p2764_p7, %p2763_p8 }
  0x33   : > { %p2759_p9 = pneg %p2758_p3 }
  0x35   : > { %p2766_p2 = pnand %p2765_p12, %p2759_p9 }
  0x37   : > { %2769 = shalt.err (!%p2766_p2)
}
  0x38   : > { %s2939_s13 = smov 128   ;;  %s2940_s14 = smov 8  }
  0x39   : > { %2474 = dma.hbm_to_vmem [thread:$0]  (!%p3062_p1), %s4021_s4, 4096, %s207_s10, [#allocation6], %s2939_s13, %s2939_s13, %s2940_s14  }
  0x3a   : > { %s33_s17 = sadd.s32 1, %s2928_s23  ;;  %s36_s27 = sadd.s32 1, %s2932_s24 }
  0x3b   : > { %p34_p3 = scmp.ge.s32.totalorder %s33_s17, 2  ;;  %s3091_s9 = sand.u32 1, %s2916_s20  }
  0x3c   : > { %s2411_s29 = sshll.u32 %s2928_s23, 2  ;;  %s2410_s15 = sshll.u32 %s3091_s9, 10 }
  0x3d   : > { %s4054_s17 = smov (%p34_p3, %s33_s17), 0  ;;  %s4056_s27 = smov (!%p34_p3, %s36_s27), %s2932_s24 }
  0x3e   : > { %4022 = sst [smem:[#allocation19_spill]] %s4054_s17  ;;  %s41_s11 = ssub.s32 %s2928_s23, %s4054_s17 }
  0x3f   : > { %p38_p7 = scmp.ge.s32.totalorder %s4056_s27, 2  ;;  %s2412_s10 = sshll.u32 %s2932_s24, 8 }
  0x40   : > { %s230_s13 = sadd.s32 %s2412_s10, %s2411_s29  ;;  %s224_s14 = scalar_lea.vmem [#allocation2], %s2410_s15 }
  0x41   : > { %s4058_s27 = smov (%p38_p7, %s4056_s27), 0  ;;  %s233_s16 = sshll.u32 %s224_s14, 4  ;;  %s3112_s16 = int_to_ptr.vmem [resolvable:$true] %s233_s16 }
  0x42   : > { %4023 = sst [smem:[#allocation20_spill]] %s4058_s27  ;;  %s40_s28 = ssub.s32 %s2932_s24, %s4058_s27 }
  0x43   : > { %s2413_s4 = sshll.u32 %s230_s13, 7  ;;  %s42_s7 = sor.u32 %s41_s11, %s40_s28 }
  0x44   : > { %s4024_s0 = sld [smem:[#allocation22_spill]]  ;;  %p43_p8 = scmp.eq.s32.totalorder %s42_s7, 0 }
  0x45   : > { %s4025_s6 = sadd.s32 1, %s2916_s20  ;;  %s221_s10 = scalar_lea.sflag [#allocation3], %s3091_s9 }
  0x46   : > { %s3117_s22 = scalar_select %p43_p8, %s2916_s20, %s4025_s6  }
  0x47   : > { %p4027_p12 = scmp.ne.s32.totalorder %s4020_s12, 0 }
  0x48   : > { %4026 = sst [smem:[#allocation21_spill]] %s3117_s22 }
  0x49   : > { %p2772_p1 = pneg %p4027_p12 }
  0x4a   : > { %s3110_s17 = scalar_lea.hbm %s4024_s0, %s2413_s4  ;;  %s2775_s18 = scalar_lea.hbm %s4024_s0, 65536 }
  0x4b   : > { %s2770_s14 = scalar_lea.hbm %s3110_s17, 16384  ;;  %p2776_p6 = scmp.lt.u32.totalorder %s3110_s17, %s4024_s0 }
  0x4c   : > { %p2771_p9 = scmp.ne.s32.totalorder %s3110_s17, %s2770_s14  ;;  %p2777_p10 = scmp.lt.u32.totalorder %s2775_s18, %s2770_s14 }
  0x4d   : > { %p2779_p13 = scmp.lt.u32.totalorder %s2770_s14, %s3110_s17 }
  0x4e   : > { %p2773_p2 = pnand %p2772_p1, %p2771_p9  ;;  %p2778_p11 = por %p2777_p10, %p2776_p6 }
  0x50   : > { %p2774_p4 = pneg %p2773_p2  ;;  %p2780_p5 = por %p2779_p13, %p2778_p11 }
  0x52   : > { %p2781_p0 = pnand %p2780_p5, %p2774_p4 }
  0x54   : > { %2784 = shalt.err (!%p2781_p0)
}
  0x55   : > { %s2785_s6 = scalar_lea.vmem %s3112_s16, 16384  ;;  %s2941_s11 = smov [#allocation2]  }
  0x56   : > { %p2786_p3 = scmp.ne.s32.totalorder %s3112_s16, %s2785_s6  ;;  %s2790_s13 = sshll.u32 %s2941_s11, 4  ;;  %s2791_s13 = int_to_ptr.vmem [resolvable:$false] %s2790_s13 }
  0x57   : > { %s2792_s4 = scalar_lea.vmem %s2791_s13, 32768  ;;  %p2793_p9 = scmp.lt.s32.totalorder %s3112_s16, %s2791_s13 }
  0x58   : > { %p2788_p7 = pnand %p2786_p3, %p2772_p1  ;;  %p2794_p2 = scmp.lt.s32.totalorder %s2792_s4, %s2785_s6 }
  0x5a   : > { %p2789_p8 = pneg %p2788_p7  ;;  %p2795_p6 = por %p2794_p2, %p2793_p9 }
  0x5c   : > { %p2796_p10 = pnand %p2795_p6, %p2789_p8 }
  0x5e   : > { %2799 = shalt.err (!%p2796_p10)
}
  0x5f   : > { %s2942_s14 = smov 1024   ;;  %s2943_s5 = smov 512  }
  0x60   : > { %s2944_s18 = smov 32   ;;  %s2414_s28 = sshll.u32 %s3091_s9, 2 }
  0x61   : > { %2478 = dma.hbm_to_vmem [thread:$0]  (!%p4027_p12), %s3110_s17, 16384, %s3112_s16, %s221_s10, %s2942_s14, %s2943_s5, %s2944_s18  }
  0x62   : > { %s2416_s7 = sshll.u32 %s2932_s24, 3  ;;  %s247_s11 = scalar_lea.vmem [#allocation5], %s2414_s28 }
  0x63   : > { %s253_s6 = sadd.s32 %s2416_s7, %s2411_s29  ;;  %s257_s13 = sshll.u32 %s247_s11, 4  ;;  %s3152_s13 = int_to_ptr.vmem [resolvable:$true] %s257_s13 }
  0x64   : > { %s2417_s4 = sshll.u32 %s253_s6, 4  ;;  %s4028_s22 = sand.u32 1, %s2936_s25  }
  0x65   : > { %s255_s27 = scalar_lea.hbm %s3987_s1, %s2417_s4  ;;  %s244_s20 = scalar_lea.sflag [#allocation6], %s4028_s22 }
  0x66   : > { %s2800_s21 = scalar_lea.hbm %s255_s27, 64  ;;  %s2805_s29 = scalar_lea.hbm %s3987_s1, 256 }
  0x67   : > { %p2801_p4 = scmp.ne.s32.totalorder %s255_s27, %s2800_s21  ;;  %p2806_p5 = scmp.lt.u32.totalorder %s255_s27, %s3987_s1 }
  0x68   : > { %p2807_p0 = scmp.lt.u32.totalorder %s2805_s29, %s2800_s21  ;;  %p2809_p7 = scmp.lt.u32.totalorder %s2800_s21, %s255_s27 }
  0x69   : > { %p2803_p11 = pnand %p2801_p4, %p2772_p1 }
  0x6a   : > { %p2808_p3 = por %p2807_p0, %p2806_p5 }
  0x6b   : > { %p2804_p13 = pneg %p2803_p11 }
  0x6c   : > { %p2810_p8 = por %p2809_p7, %p2808_p3 }
  0x6e   : > { %p2811_p9 = pnand %p2810_p8, %p2804_p13 }
  0x70   : > { %2814 = shalt.err (!%p2811_p9)
}
  0x71   : > { %s2815_s0 = scalar_lea.vmem %s3152_s13, 64  ;;  %s2945_s22 = smov [#allocation5]  }
  0x72   : > { %p2816_p2 = scmp.ne.s32.totalorder %s3152_s13, %s2815_s0  ;;  %s2820_s15 = sshll.u32 %s2945_s22, 4  ;;  %s2821_s15 = int_to_ptr.vmem [resolvable:$false] %s2820_s15 }
  0x73   : > { %s2822_s14 = scalar_lea.vmem %s2821_s15, 128  ;;  %p2823_p4 = scmp.lt.s32.totalorder %s3152_s13, %s2821_s15 }
  0x74   : > { %p2818_p6 = pnand %p2816_p2, %p2772_p1  ;;  %p2824_p11 = scmp.lt.s32.totalorder %s2822_s14, %s2815_s0 }
  0x76   : > { %p2819_p10 = pneg %p2818_p6  ;;  %p2825_p5 = por %p2824_p11, %p2823_p4 }
  0x78   : > { %p2826_p0 = pnand %p2825_p5, %p2819_p10 }
  0x7a   : > { %2829 = shalt.err (!%p2826_p0)
}
  0x7b   : > { %2481 = dma.hbm_to_vmem [thread:$0]  (!%p4027_p12), %s255_s27, 64, %s3152_s13, %s244_s20  }
  0x7c   : > { %p4029_p13 = scmp.ne.s32.totalorder %s4018_s8, 0 }
  0x7d   : > { %s3180_s21 = sand.u32 (!%p4029_p13), 1, %s2912_s19   ;;  %p4030_p1 = scmp.ne.s32.totalorder (!%p4029_p13), %s4013_s30, 0 }
  0x7e   : > { %266 = sbr.rel (%p4029_p13) target bundleno = 760 (0x2f8), region = 40  ;;  %s2419_s5 = sshll.u32 (!%p4029_p13), %s3180_s21, 10 }
  0x7f   : > { %s269_s18 = scalar_lea.sflag (!%p4029_p13), [#allocation3], %s3180_s21  ;;  %s3186_s28 = scalar_lea.vmem (!%p4029_p13), [#allocation2], %s2419_s5 }
  0x85   : > { %2891 = dma.done.wait (%p4030_p1), %s269_s18, 16384  }
  0x86   : > { %2893 = vsyncadd (%p4030_p1), %s269_s18, 4294950912  ;;  %s277_s20 = sand.u32 1, %s3022_s26   ;;  %s2420_s8 = sshll.u32 %s3180_s21, 2 }
  0x87   : > { %s278_s12 = scalar_lea.sflag [#allocation6], %s277_s20  ;;  %s3194_s27 = scalar_lea.vmem [#allocation5], %s2420_s8 }
  0x88   : > { %2895 = dma.done.wait (%p4030_p1), %s278_s12, 64  }
  0x89   : > { %2897 = vsyncadd (%p4030_p1), %s278_s12, 4294967232  ;;  %p4031_p12 = scmp.eq.s32.totalorder %s3022_s26, 0 }
  0x8b   : > { %2899 = dma.done.wait (%p4031_p12), [#allocation6], 4096   ;;  %p4032_p3 = pmov %p4031_p12 }
  0x8c   : > { %v2946_v0 = vmov 0   ;;  %v768_v1 = vld [vmem:[%s3989_s3] sm:$0xff]  ;;  %v769_v3 = vld [vmem:[%s3989_s3 + $0x8] sm:$0xff]  ;;  %v451_v5 = vld [vmem:[%s3988_s2 + $0x18] sm:$0xff]  ;;  %s4034_s9 = sld [smem:[#allocation16_spill]]  ;;  %s4035_s15 = sld [smem:[#allocation17_spill]] }
  0x8d   : > { %2901 = vsyncadd (%p4032_p3), [#allocation6], 4294963200  ;;  %2565 = vset.pattern.permute.xlu1 %v2946_v0  ;;  %2564 = vset.pattern.permute.xlu0 %v2946_v0  ;;  %v448_v2 = vld [vmem:[%s3988_s2] sm:$0xff]  ;;  %v449_v4 = vld [vmem:[%s3988_s2 + $0x8] sm:$0xff]  ;;  %s4036_s20 = sld [smem:[#allocation24_spill]]  ;;  %s2265_s7 = scalar_lea.sflag [#allocation4], %s3180_s21 }
  0x8e   : > { %802 = vperm.xlu1 %2565, %v768_v1   ;;  %482 = vperm.xlu0 %2564, %v448_v2   ;;  %v450_v6 = vld [vmem:[%s3988_s2 + $0x10] sm:$0xff]  ;;  %v771_v7 = vld [vmem:[%s3989_s3 + $0x18] sm:$0xff]  ;;  %v453_v9 = vld [vmem:[%s3988_s2 + $0x28] sm:$0xff]  ;;  %s2947_s11 = smov [#allocation8]  }
  0x8f   : > { %v770_v8 = vld [vmem:[%s3989_s3 + $0x10] sm:$0xff]  ;;  %v452_v10 = vld [vmem:[%s3988_s2 + $0x20] sm:$0xff]  ;;  %v773_v11 = vld [vmem:[%s3989_s3 + $0x28] sm:$0xff]  ;;  %s2834_s13 = sshll.u32 %s2947_s11, 4  ;;  %s2835_s13 = int_to_ptr.vmem [resolvable:$false] %s2834_s13 }
  0x90   : > { %v772_v12 = vld [vmem:[%s3989_s3 + $0x20] sm:$0xff]  ;;  %v455_v13 = vld [vmem:[%s3988_s2 + $0x38] sm:$0xff]  ;;  %v454_v14 = vld [vmem:[%s3988_s2 + $0x30] sm:$0xff]  ;;  %s2836_s30 = scalar_lea.vmem %s2835_s13, 32768 }
  0x91   : > { %v775_v15 = vld [vmem:[%s3989_s3 + $0x38] sm:$0xff]  ;;  %v774_v16 = vld [vmem:[%s3989_s3 + $0x30] sm:$0xff]  ;;  %v457_v17 = vld [vmem:[%s3988_s2 + $0x48] sm:$0xff] }
  0x92   : > { %807 = vperm.xlu1 %2565, %v769_v3   ;;  %487 = vperm.xlu0 %2564, %v449_v4   ;;  %v456_v18 = vld [vmem:[%s3988_s2 + $0x40] sm:$0xff]  ;;  %v777_v19 = vld [vmem:[%s3989_s3 + $0x48] sm:$0xff]  ;;  %v459_v21 = vld [vmem:[%s3988_s2 + $0x58] sm:$0xff]  ;;  %s2457_s16 = sshll.u32 %s4034_s9, 8  ;;  %p4038_p8 = scmp.ne.s32.totalorder %s4035_s15, 0 }
  0x93   : > { %v776_v20 = vld [vmem:[%s3989_s3 + $0x40] sm:$0xff]  ;;  %v458_v22 = vld [vmem:[%s3988_s2 + $0x50] sm:$0xff]  ;;  %v779_v23 = vld [vmem:[%s3989_s3 + $0x58] sm:$0xff]  ;;  %s4037_s8 = smov %s4036_s20 }
  0x94   : > { %v778_v24 = vld [vmem:[%s3989_s3 + $0x50] sm:$0xff]  ;;  %v461_v25 = vld [vmem:[%s3988_s2 + $0x68] sm:$0xff]  ;;  %v460_v26 = vld [vmem:[%s3988_s2 + $0x60] sm:$0xff] }
  0x95   : > { %v781_v27 = vld [vmem:[%s3989_s3 + $0x68] sm:$0xff]  ;;  %v780_v28 = vld [vmem:[%s3989_s3 + $0x60] sm:$0xff]  ;;  %v463_v29 = vld [vmem:[%s3988_s2 + $0x78] sm:$0xff] }
  0x96   : > { %497 = vperm.xlu1 %2565, %v451_v5   ;;  %492 = vperm.xlu0 %2564, %v450_v6   ;;  %v462_v30 = vld [vmem:[%s3988_s2 + $0x70] sm:$0xff]  ;;  %v783_v31 = vld [vmem:[%s3989_s3 + $0x78] sm:$0xff]  ;;  %v465_v33 = vld [vmem:[%s3988_s2 + $0x88] sm:$0xff] }
  0x97   : > { %v782_v32 = vld [vmem:[%s3989_s3 + $0x70] sm:$0xff]  ;;  %v464_v34 = vld [vmem:[%s3988_s2 + $0x80] sm:$0xff]  ;;  %v785_v35 = vld [vmem:[%s3989_s3 + $0x88] sm:$0xff] }
  0x98   : > { %v784_v36 = vld [vmem:[%s3989_s3 + $0x80] sm:$0xff]  ;;  %v467_v37 = vld [vmem:[%s3988_s2 + $0x98] sm:$0xff]  ;;  %v466_v38 = vld [vmem:[%s3988_s2 + $0x90] sm:$0xff] }
  0x99   : > { %v787_v39 = vld [vmem:[%s3989_s3 + $0x98] sm:$0xff]  ;;  %v786_v40 = vld [vmem:[%s3989_s3 + $0x90] sm:$0xff]  ;;  %v469_v41 = vld [vmem:[%s3988_s2 + $0xa8] sm:$0xff] }
  0x9a   : > { %817 = vperm.xlu1 %2565, %v771_v7   ;;  %812 = vperm.xlu0 %2564, %v770_v8   ;;  %v468_v42 = vld [vmem:[%s3988_s2 + $0xa0] sm:$0xff]  ;;  %v789_v43 = vld [vmem:[%s3989_s3 + $0xa8] sm:$0xff]  ;;  %v471_v45 = vld [vmem:[%s3988_s2 + $0xb8] sm:$0xff] }
  0x9b   : > { %v788_v44 = vld [vmem:[%s3989_s3 + $0xa0] sm:$0xff]  ;;  %v470_v46 = vld [vmem:[%s3988_s2 + $0xb0] sm:$0xff]  ;;  %v791_v47 = vld [vmem:[%s3989_s3 + $0xb8] sm:$0xff] }
  0x9c   : > { %v790_v48 = vld [vmem:[%s3989_s3 + $0xb0] sm:$0xff]  ;;  %v473_v49 = vld [vmem:[%s3988_s2 + $0xc8] sm:$0xff]  ;;  %v472_v50 = vld [vmem:[%s3988_s2 + $0xc0] sm:$0xff] }
  0x9d   : > { %v793_v51 = vld [vmem:[%s3989_s3 + $0xc8] sm:$0xff]  ;;  %v792_v52 = vld [vmem:[%s3989_s3 + $0xc0] sm:$0xff]  ;;  %v475_v53 = vld [vmem:[%s3988_s2 + $0xd8] sm:$0xff] }
  0x9e   : > { %507 = vperm.xlu1 %2565, %v453_v9   ;;  %502 = vperm.xlu0 %2564, %v452_v10   ;;  %v474_v54 = vld [vmem:[%s3988_s2 + $0xd0] sm:$0xff]  ;;  %v795_v55 = vld [vmem:[%s3989_s3 + $0xd8] sm:$0xff]  ;;  %v477_v57 = vld [vmem:[%s3988_s2 + $0xe8] sm:$0xff] }
  0x9f   : > { %v794_v56 = vld [vmem:[%s3989_s3 + $0xd0] sm:$0xff]  ;;  %v476_v58 = vld [vmem:[%s3988_s2 + $0xe0] sm:$0xff]  ;;  %v797_v59 = vld [vmem:[%s3989_s3 + $0xe8] sm:$0xff] }
  0xa0   : > { %v796_v60 = vld [vmem:[%s3989_s3 + $0xe0] sm:$0xff]  ;;  %v479_v61 = vld [vmem:[%s3988_s2 + $0xf8] sm:$0xff]  ;;  %v478_v62 = vld [vmem:[%s3988_s2 + $0xf0] sm:$0xff] }
  0xa1   : > { %v799_v63 = vld [vmem:[%s3989_s3 + $0xf8] sm:$0xff]  ;;  %v798_v0 = vld [vmem:[%s3989_s3 + $0xf0] sm:$0xff]  ;;  %v320_v1 = vld [vmem:[%s3186_s28] sm:$0xff] }
  0xa2   : > { %827 = vperm.xlu1 %2565, %v773_v11   ;;  %822 = vperm.xlu0 %2564, %v772_v12   ;;  %v322_v2 = vld [vmem:[%s3186_s28 + $0x10] sm:$0xff]  ;;  %v321_v3 = vld [vmem:[%s3186_s28 + $0x8] sm:$0xff]  ;;  %v323_v4 = vld [vmem:[%s3186_s28 + $0x18] sm:$0xff] }
  0xa3   : > { %v324_v11 = vld [vmem:[%s3186_s28 + $0x20] sm:$0xff]  ;;  %v326_v12 = vld [vmem:[%s3186_s28 + $0x30] sm:$0xff] }
  0xa6   : > { %517 = vperm.xlu1 %2565, %v455_v13   ;;  %512 = vperm.xlu0 %2564, %v454_v14   ;;  %v325_v13 = vld [vmem:[%s3186_s28 + $0x28] sm:$0xff]  ;;  %v327_v14 = vld [vmem:[%s3186_s28 + $0x38] sm:$0xff] }
  0xaa   : > { %837 = vperm.xlu1 %2565, %v775_v15   ;;  %832 = vperm.xlu0 %2564, %v774_v16  }
  0xae   : > { %527 = vperm.xlu1 %2565, %v457_v17   ;;  %522 = vperm.xlu0 %2564, %v456_v18  }
  0xb2   : > { %847 = vperm.xlu1 %2565, %v777_v19   ;;  %842 = vperm.xlu0 %2564, %v776_v20  }
  0xb6   : > { %537 = vperm.xlu1 %2565, %v459_v21   ;;  %532 = vperm.xlu0 %2564, %v458_v22  }
  0xba   : > { %857 = vperm.xlu1 %2565, %v779_v23   ;;  %852 = vperm.xlu0 %2564, %v778_v24   ;;  %v332_v24 = vld [vmem:[%s3186_s28 + $0x60] sm:$0xff] }
  0xbe   : > { %547 = vperm.xlu1 %2565, %v461_v25   ;;  %542 = vperm.xlu0 %2564, %v460_v26   ;;  %v333_v25 = vld [vmem:[%s3186_s28 + $0x68] sm:$0xff] }
  0xc2   : > { %867 = vperm.xlu1 %2565, %v781_v27   ;;  %862 = vperm.xlu0 %2564, %v780_v28   ;;  %v334_v27 = vld [vmem:[%s3186_s28 + $0x70] sm:$0xff]  ;;  %v335_v28 = vld [vmem:[%s3186_s28 + $0x78] sm:$0xff] }
  0xc6   : > { %557 = vperm.xlu1 %2565, %v463_v29   ;;  %552 = vperm.xlu0 %2564, %v462_v30  }
  0xca   : > { %877 = vperm.xlu1 %2565, %v783_v31   ;;  %872 = vperm.xlu0 %2564, %v782_v32   ;;  %v2568_v32 = vld [vmem:[#allocation7 + $0x4] ss:$8 sps:$4 sm:$0xff]  }
  0xcb   : > { %1504 = vmatprep.mubr.bf16.mxu0 %v2568_v32  ;;  %1697 = vmatprep.mubr.bf16.mxu1 %v2568_v32 }
  0xce   : > { %567 = vperm.xlu1 %2565, %v465_v33   ;;  %562 = vperm.xlu0 %2564, %v464_v34  }
  0xd2   : > { %887 = vperm.xlu1 %2565, %v785_v35   ;;  %882 = vperm.xlu0 %2564, %v784_v36   ;;  %v328_v35 = vld [vmem:[%s3186_s28 + $0x40] sm:$0xff]  ;;  %v329_v36 = vld [vmem:[%s3186_s28 + $0x48] sm:$0xff] }
  0xd6   : > { %577 = vperm.xlu1 %2565, %v467_v37   ;;  %572 = vperm.xlu0 %2564, %v466_v38   ;;  %v330_v38 = vld [vmem:[%s3186_s28 + $0x50] sm:$0xff] }
  0xda   : > { %897 = vperm.xlu1 %2565, %v787_v39   ;;  %892 = vperm.xlu0 %2564, %v786_v40   ;;  %v331_v39 = vld [vmem:[%s3186_s28 + $0x58] sm:$0xff] }
  0xde   : > { %587 = vperm.xlu1 %2565, %v469_v41   ;;  %582 = vperm.xlu0 %2564, %v468_v42  }
  0xe2   : > { %907 = vperm.xlu1 %2565, %v789_v43   ;;  %902 = vperm.xlu0 %2564, %v788_v44  }
  0xe6   : > { %597 = vperm.xlu1 %2565, %v471_v45   ;;  %592 = vperm.xlu0 %2564, %v470_v46  }
  0xea   : > { %917 = vperm.xlu1 %2565, %v791_v47   ;;  %912 = vperm.xlu0 %2564, %v790_v48  }
  0xee   : > { %607 = vperm.xlu1 %2565, %v473_v49   ;;  %602 = vperm.xlu0 %2564, %v472_v50  }
  0xf2   : > { %927 = vperm.xlu1 %2565, %v793_v51   ;;  %922 = vperm.xlu0 %2564, %v792_v52  }
  0xf6   : > { %617 = vperm.xlu1 %2565, %v475_v53   ;;  %612 = vperm.xlu0 %2564, %v474_v54  }
  0xfa   : > { %937 = vperm.xlu1 %2565, %v795_v55   ;;  %932 = vperm.xlu0 %2564, %v794_v56  }
  0xfe   : > { %627 = vperm.xlu1 %2565, %v477_v57   ;;  %622 = vperm.xlu0 %2564, %v476_v58  }
 0x102   : > { %947 = vperm.xlu1 %2565, %v797_v59   ;;  %942 = vperm.xlu0 %2564, %v796_v60  }
 0x106   : > { %637 = vperm.xlu1 %2565, %v479_v61   ;;  %632 = vperm.xlu0 %2564, %v478_v62  }
 0x10a   : > { %957 = vperm.xlu1 %2565, %v799_v63   ;;  %952 = vperm.xlu0 %2564, %v798_v0  }
 0x10d   : > { %v803_v5 = vpop.permute.xlu1 %802  ;;  %v483_v6 = vpop.permute.xlu0 %482 }
 0x10e   : > { %v640_v7 = vmul.f32 %v483_v6, %v320_v1  ;;  %v642_v8 = vmul.f32 %v483_v6, %v322_v2  ;;  %v641_v9 = vmul.f32 %v483_v6, %v321_v3  ;;  %v643_v10 = vmul.f32 %v483_v6, %v323_v4  ;;  %v340_v2 = vld [vmem:[%s3186_s28 + $0xa0] sm:$0xff]  ;;  %v341_v3 = vld [vmem:[%s3186_s28 + $0xa8] sm:$0xff] }
 0x110   : > { %v961_v17 = vadd.f32 %v803_v5, %v641_v9  ;;  %v963_v18 = vadd.f32 %v803_v5, %v643_v10  ;;  %v960_v19 = vadd.f32 %v803_v5, %v640_v7  ;;  %v962_v23 = vadd.f32 %v803_v5, %v642_v8  ;;  %v342_v8 = vld [vmem:[%s3186_s28 + $0xb0] sm:$0xff]  ;;  %v343_v9 = vld [vmem:[%s3186_s28 + $0xb8] sm:$0xff]  ;;  %v336_v10 = vld [vmem:[%s3186_s28 + $0x80] sm:$0xff] }
 0x111   : > { %v808_v15 = vpop.permute.xlu1 %807  ;;  %v488_v16 = vpop.permute.xlu0 %487 }
 0x112   : > { %v644_v20 = vmul.f32 %v488_v16, %v324_v11  ;;  %v646_v21 = vmul.f32 %v488_v16, %v326_v12  ;;  %v645_v22 = vmul.f32 %v488_v16, %v325_v13  ;;  %v647_v26 = vmul.f32 %v488_v16, %v327_v14  ;;  %v337_v13 = vld [vmem:[%s3186_s28 + $0x88] sm:$0xff]  ;;  %v338_v14 = vld [vmem:[%s3186_s28 + $0x90] sm:$0xff] }
 0x113   : > { %v1089_v40 = vmax.f32 %v961_v17, 0.0  ;;  %v1091_v41 = vmax.f32 %v963_v18, 0.0  ;;  %v1088_v42 = vmax.f32 %v960_v19, 0.0  ;;  %v1090_v43 = vmax.f32 %v962_v23, 0.0 }
 0x114   : > { %v965_v29 = vadd.f32 %v808_v15, %v645_v22  ;;  %v964_v30 = vadd.f32 %v808_v15, %v644_v20  ;;  %v966_v31 = vadd.f32 %v808_v15, %v646_v21  ;;  %v967_v37 = vadd.f32 %v808_v15, %v647_v26  ;;  %v339_v21 = vld [vmem:[%s3186_s28 + $0x98] sm:$0xff] }
 0x115   : > { %v498_v33 = vpop.permute.xlu1 %497  ;;  %v493_v34 = vpop.permute.xlu0 %492 }
 0x116   : > { %v652_v44 = vmul.f32 %v498_v33, %v332_v24  ;;  %v653_v45 = vmul.f32 %v498_v33, %v333_v25  ;;  %v654_v46 = vmul.f32 %v498_v33, %v334_v27  ;;  %v655_v47 = vmul.f32 %v498_v33, %v335_v28 }
 0x117   : > { %v1093_v48 = vmax.f32 %v965_v29, 0.0  ;;  %v1095_v49 = vmax.f32 %v967_v37, 0.0  ;;  %v1092_v50 = vmax.f32 %v964_v30, 0.0  ;;  %v1094_v51 = vmax.f32 %v966_v31, 0.0 }
 0x118   : > { %v648_v52 = vmul.f32 %v493_v34, %v328_v35  ;;  %v649_v53 = vmul.f32 %v493_v34, %v329_v36  ;;  %v650_v54 = vmul.f32 %v493_v34, %v330_v38  ;;  %v651_v55 = vmul.f32 %v493_v34, %v331_v39 }
 0x119   : > { %v818_v56 = vpop.permute.xlu1 %817  ;;  %v813_v57 = vpop.permute.xlu0 %812  ;;  %v1249_v4 = vpack.c.bf16 %v1093_v48, %v1089_v40  ;;  %v1251_v5 = vpack.c.bf16 %v1095_v49, %v1091_v41  ;;  %v1248_v6 = vpack.c.bf16 %v1092_v50, %v1088_v42  ;;  %v1250_v7 = vpack.c.bf16 %v1094_v51, %v1090_v43  ;;  %v350_v48 = vld [vmem:[%s3186_s28 + $0xf0] sm:$0xff]  ;;  %v351_v49 = vld [vmem:[%s3186_s28 + $0xf8] sm:$0xff] }
 0x11a   : > { %v972_v58 = vadd.f32 %v818_v56, %v652_v44  ;;  %v973_v59 = vadd.f32 %v818_v56, %v653_v45  ;;  %v974_v60 = vadd.f32 %v818_v56, %v654_v46  ;;  %v975_v61 = vadd.f32 %v818_v56, %v655_v47  ;;  %v348_v44 = vld [vmem:[%s3186_s28 + $0xe0] sm:$0xff]  ;;  %v349_v47 = vld [vmem:[%s3186_s28 + $0xe8] sm:$0xff] }
 0x11b   : > { %v968_v62 = vadd.f32 %v813_v57, %v648_v52  ;;  %v969_v63 = vadd.f32 %v813_v57, %v649_v53  ;;  %v970_v0 = vadd.f32 %v813_v57, %v650_v54  ;;  %v971_v1 = vadd.f32 %v813_v57, %v651_v55  ;;  %1472 = vmatprep.subr.bf16.mxu0 %v1249_v4  ;;  %v344_v54 = vld [vmem:[%s3186_s28 + $0xc0] sm:$0xff]  ;;  %v345_v57 = vld [vmem:[%s3186_s28 + $0xc8] sm:$0xff] }
 0x11c   : > { %v1101_v16 = vmax.f32 %v973_v59, 0.0  ;;  %v1103_v18 = vmax.f32 %v975_v61, 0.0  ;;  %1665 = vmatprep.subr.bf16.mxu1 %v1251_v5  ;;  %1473 = vmatpush1.bf16.msra.mxu0 %v1248_v6  ;;  %v1100_v26 = vmax.f32 %v972_v58, 0.0  ;;  %v1102_v36 = vmax.f32 %v974_v60, 0.0  ;;  %v346_v58 = vld [vmem:[%s3186_s28 + $0xd0] sm:$0xff]  ;;  %v347_v59 = vld [vmem:[%s3186_s28 + $0xd8] sm:$0xff] }
 0x11d   : > { %v508_v11 = vpop.permute.xlu1 %507  ;;  %v503_v12 = vpop.permute.xlu0 %502  ;;  %v1097_v15 = vmax.f32 %v969_v63, 0.0  ;;  %v1099_v17 = vmax.f32 %v971_v1, 0.0  ;;  %v1096_v22 = vmax.f32 %v968_v62, 0.0  ;;  %1666 = vmatpush1.bf16.msra.mxu1 %v1250_v7  ;;  %v1098_v35 = vmax.f32 %v970_v0, 0.0 }
 0x11e   : > { %v660_v19 = vmul.f32 %v508_v11, %v340_v2  ;;  %v661_v20 = vmul.f32 %v508_v11, %v341_v3  ;;  %v662_v23 = vmul.f32 %v508_v11, %v342_v8  ;;  %v663_v24 = vmul.f32 %v508_v11, %v343_v9 }
 0x11f   : > { %v656_v25 = vmul.f32 %v503_v12, %v336_v10  ;;  %v657_v27 = vmul.f32 %v503_v12, %v337_v13  ;;  %v658_v28 = vmul.f32 %v503_v12, %v338_v14  ;;  %v1253_v29 = vpack.c.bf16 %v1101_v16, %v1097_v15 }
 0x120   : > { %v1255_v30 = vpack.c.bf16 %v1103_v18, %v1099_v17  ;;  %v659_v31 = vmul.f32 %v503_v12, %v339_v21  ;;  %v1252_v34 = vpack.c.bf16 %v1100_v26, %v1096_v22  ;;  %v1254_v46 = vpack.c.bf16 %v1102_v36, %v1098_v35  ;;  %v355_v35 = vld [vmem:[%s3186_s28 + $0x118] sm:$0xff] }
 0x121   : > { %v828_v32 = vpop.permute.xlu1 %827  ;;  %v823_v33 = vpop.permute.xlu0 %822  ;;  %1474 = vmatprep.subr.bf16.mxu0 %v1253_v29 }
 0x122   : > { %1667 = vmatprep.subr.bf16.mxu1 %v1255_v30  ;;  %v980_v37 = vadd.f32 %v828_v32, %v660_v19  ;;  %v981_v38 = vadd.f32 %v828_v32, %v661_v20  ;;  %v982_v39 = vadd.f32 %v828_v32, %v662_v23  ;;  %v983_v40 = vadd.f32 %v828_v32, %v663_v24  ;;  %v356_v20 = vld [vmem:[%s3186_s28 + $0x120] sm:$0xff]  ;;  %v357_v23 = vld [vmem:[%s3186_s28 + $0x128] sm:$0xff]  ;;  %v358_v24 = vld [vmem:[%s3186_s28 + $0x130] sm:$0xff] }
 0x123   : > { %v976_v41 = vadd.f32 %v823_v33, %v656_v25  ;;  %v977_v42 = vadd.f32 %v823_v33, %v657_v27  ;;  %v978_v43 = vadd.f32 %v823_v33, %v658_v28  ;;  %1475 = vmatpush1.bf16.msra.mxu0 %v1252_v34  ;;  %v979_v45 = vadd.f32 %v823_v33, %v659_v31  ;;  %v359_v25 = vld [vmem:[%s3186_s28 + $0x138] sm:$0xff]  ;;  %v352_v30 = vld [vmem:[%s3186_s28 + $0x100] sm:$0xff]  ;;  %v353_v33 = vld [vmem:[%s3186_s28 + $0x108] sm:$0xff] }
 0x124   : > { %v1109_v50 = vmax.f32 %v981_v38, 0.0  ;;  %v1108_v51 = vmax.f32 %v980_v37, 0.0  ;;  %1668 = vmatpush1.bf16.msra.mxu1 %v1254_v46  ;;  %v1111_v60 = vmax.f32 %v983_v40, 0.0  ;;  %v1110_v5 = vmax.f32 %v982_v39, 0.0  ;;  %v354_v34 = vld [vmem:[%s3186_s28 + $0x110] sm:$0xff] }
 0x125   : > { %v518_v52 = vpop.permute.xlu1 %517  ;;  %v513_v53 = vpop.permute.xlu0 %512  ;;  %v1105_v55 = vmax.f32 %v977_v42, 0.0  ;;  %v1104_v56 = vmax.f32 %v976_v41, 0.0  ;;  %v1106_v61 = vmax.f32 %v978_v43, 0.0  ;;  %v1107_v3 = vmax.f32 %v979_v45, 0.0 }
 0x126   : > { %v668_v62 = vmul.f32 %v518_v52, %v348_v44  ;;  %v669_v63 = vmul.f32 %v518_v52, %v349_v47  ;;  %v670_v0 = vmul.f32 %v518_v52, %v350_v48  ;;  %v671_v1 = vmul.f32 %v518_v52, %v351_v49 }
 0x127   : > { %v1257_v2 = vpack.c.bf16 %v1109_v50, %v1105_v55  ;;  %v1256_v4 = vpack.c.bf16 %v1108_v51, %v1104_v56  ;;  %v664_v6 = vmul.f32 %v513_v53, %v344_v54  ;;  %v665_v7 = vmul.f32 %v513_v53, %v345_v57 }
 0x128   : > { %v666_v8 = vmul.f32 %v513_v53, %v346_v58  ;;  %v667_v9 = vmul.f32 %v513_v53, %v347_v59  ;;  %v1259_v12 = vpack.c.bf16 %v1111_v60, %v1107_v3  ;;  %v1258_v22 = vpack.c.bf16 %v1110_v5, %v1106_v61  ;;  %v364_v60 = vld [vmem:[%s3186_s28 + $0x160] sm:$0xff] }
 0x129   : > { %v838_v10 = vpop.permute.xlu1 %837  ;;  %v833_v11 = vpop.permute.xlu0 %832  ;;  %1476 = vmatprep.subr.bf16.mxu0 %v1257_v2 }
 0x12a   : > { %v988_v13 = vadd.f32 %v838_v10, %v668_v62  ;;  %v989_v14 = vadd.f32 %v838_v10, %v669_v63  ;;  %v990_v15 = vadd.f32 %v838_v10, %v670_v0  ;;  %v991_v16 = vadd.f32 %v838_v10, %v671_v1  ;;  %1477 = vmatpush1.bf16.msra.mxu0 %v1256_v4  ;;  %v365_v63 = vld [vmem:[%s3186_s28 + $0x168] sm:$0xff]  ;;  %v366_v0 = vld [vmem:[%s3186_s28 + $0x170] sm:$0xff]  ;;  %v367_v1 = vld [vmem:[%s3186_s28 + $0x178] sm:$0xff] }
 0x12b   : > { %v984_v17 = vadd.f32 %v833_v11, %v664_v6  ;;  %v985_v18 = vadd.f32 %v833_v11, %v665_v7  ;;  %v986_v19 = vadd.f32 %v833_v11, %v666_v8  ;;  %1669 = vmatprep.subr.bf16.mxu1 %v1259_v12  ;;  %v987_v21 = vadd.f32 %v833_v11, %v667_v9  ;;  %v360_v6 = vld [vmem:[%s3186_s28 + $0x140] sm:$0xff]  ;;  %v361_v9 = vld [vmem:[%s3186_s28 + $0x148] sm:$0xff]  ;;  %v362_v10 = vld [vmem:[%s3186_s28 + $0x150] sm:$0xff] }
 0x12c   : > { %v1117_v26 = vmax.f32 %v989_v14, 0.0  ;;  %v1116_v27 = vmax.f32 %v988_v13, 0.0  ;;  %1670 = vmatpush1.bf16.msra.mxu1 %v1258_v22  ;;  %v1119_v36 = vmax.f32 %v991_v16, 0.0  ;;  %v1118_v45 = vmax.f32 %v990_v15, 0.0  ;;  %v363_v11 = vld [vmem:[%s3186_s28 + $0x158] sm:$0xff] }
 0x12d   : > { %v528_v28 = vpop.permute.xlu1 %527  ;;  %v523_v29 = vpop.permute.xlu0 %522  ;;  %v1113_v31 = vmax.f32 %v985_v18, 0.0  ;;  %v1112_v32 = vmax.f32 %v984_v17, 0.0  ;;  %v1114_v37 = vmax.f32 %v986_v19, 0.0  ;;  %v1115_v43 = vmax.f32 %v987_v21, 0.0 }
 0x12e   : > { %v676_v38 = vmul.f32 %v528_v28, %v356_v20  ;;  %v677_v39 = vmul.f32 %v528_v28, %v357_v23  ;;  %v678_v40 = vmul.f32 %v528_v28, %v358_v24  ;;  %v679_v41 = vmul.f32 %v528_v28, %v359_v25 }
 0x12f   : > { %v1261_v42 = vpack.c.bf16 %v1117_v26, %v1113_v31  ;;  %v1260_v44 = vpack.c.bf16 %v1116_v27, %v1112_v32  ;;  %v672_v46 = vmul.f32 %v523_v29, %v352_v30  ;;  %v673_v47 = vmul.f32 %v523_v29, %v353_v33 }
 0x130   : > { %v674_v48 = vmul.f32 %v523_v29, %v354_v34  ;;  %v675_v49 = vmul.f32 %v523_v29, %v355_v35  ;;  %v1263_v52 = vpack.c.bf16 %v1119_v36, %v1115_v43  ;;  %v1262_v62 = vpack.c.bf16 %v1118_v45, %v1114_v37  ;;  %v372_v36 = vld [vmem:[%s3186_s28 + $0x1a0] sm:$0xff] }
 0x131   : > { %v848_v50 = vpop.permute.xlu1 %847  ;;  %v843_v51 = vpop.permute.xlu0 %842  ;;  %1478 = vmatprep.subr.bf16.mxu0 %v1261_v42 }
 0x132   : > { %v996_v53 = vadd.f32 %v848_v50, %v676_v38  ;;  %v997_v54 = vadd.f32 %v848_v50, %v677_v39  ;;  %v998_v55 = vadd.f32 %v848_v50, %v678_v40  ;;  %v999_v56 = vadd.f32 %v848_v50, %v679_v41  ;;  %1479 = vmatpush1.bf16.msra.mxu0 %v1260_v44  ;;  %v373_v39 = vld [vmem:[%s3186_s28 + $0x1a8] sm:$0xff]  ;;  %v374_v40 = vld [vmem:[%s3186_s28 + $0x1b0] sm:$0xff]  ;;  %v375_v41 = vld [vmem:[%s3186_s28 + $0x1b8] sm:$0xff] }
 0x133   : > { %v992_v57 = vadd.f32 %v843_v51, %v672_v46  ;;  %v993_v58 = vadd.f32 %v843_v51, %v673_v47  ;;  %v994_v59 = vadd.f32 %v843_v51, %v674_v48  ;;  %1671 = vmatprep.subr.bf16.mxu1 %v1263_v52  ;;  %v995_v61 = vadd.f32 %v843_v51, %v675_v49  ;;  %v368_v46 = vld [vmem:[%s3186_s28 + $0x180] sm:$0xff]  ;;  %v369_v49 = vld [vmem:[%s3186_s28 + $0x188] sm:$0xff]  ;;  %v370_v50 = vld [vmem:[%s3186_s28 + $0x190] sm:$0xff] }
 0x134   : > { %v1125_v2 = vmax.f32 %v997_v54, 0.0  ;;  %v1124_v3 = vmax.f32 %v996_v53, 0.0  ;;  %1672 = vmatpush1.bf16.msra.mxu1 %v1262_v62  ;;  %v1127_v12 = vmax.f32 %v999_v56, 0.0  ;;  %v1126_v21 = vmax.f32 %v998_v55, 0.0  ;;  %v371_v51 = vld [vmem:[%s3186_s28 + $0x198] sm:$0xff] }
 0x135   : > { %v538_v4 = vpop.permute.xlu1 %537  ;;  %v533_v5 = vpop.permute.xlu0 %532  ;;  %v1121_v7 = vmax.f32 %v993_v58, 0.0  ;;  %v1120_v8 = vmax.f32 %v992_v57, 0.0  ;;  %v1122_v13 = vmax.f32 %v994_v59, 0.0  ;;  %v1123_v19 = vmax.f32 %v995_v61, 0.0 }
 0x136   : > { %v684_v14 = vmul.f32 %v538_v4, %v364_v60  ;;  %v685_v15 = vmul.f32 %v538_v4, %v365_v63  ;;  %v686_v16 = vmul.f32 %v538_v4, %v366_v0  ;;  %v687_v17 = vmul.f32 %v538_v4, %v367_v1 }
 0x137   : > { %v1265_v18 = vpack.c.bf16 %v1125_v2, %v1121_v7  ;;  %v1264_v20 = vpack.c.bf16 %v1124_v3, %v1120_v8  ;;  %v680_v22 = vmul.f32 %v533_v5, %v360_v6  ;;  %v681_v23 = vmul.f32 %v533_v5, %v361_v9 }
 0x138   : > { %v682_v24 = vmul.f32 %v533_v5, %v362_v10  ;;  %v683_v25 = vmul.f32 %v533_v5, %v363_v11  ;;  %v1267_v28 = vpack.c.bf16 %v1127_v12, %v1123_v19  ;;  %v1266_v38 = vpack.c.bf16 %v1126_v21, %v1122_v13  ;;  %v380_v12 = vld [vmem:[%s3186_s28 + $0x1e0] sm:$0xff] }
 0x139   : > { %v858_v26 = vpop.permute.xlu1 %857  ;;  %v853_v27 = vpop.permute.xlu0 %852  ;;  %1480 = vmatprep.subr.bf16.mxu0 %v1265_v18 }
 0x13a   : > { %v1004_v29 = vadd.f32 %v858_v26, %v684_v14  ;;  %v1005_v30 = vadd.f32 %v858_v26, %v685_v15  ;;  %v1006_v31 = vadd.f32 %v858_v26, %v686_v16  ;;  %v1007_v32 = vadd.f32 %v858_v26, %v687_v17  ;;  %1481 = vmatpush1.bf16.msra.mxu0 %v1264_v20  ;;  %v381_v15 = vld [vmem:[%s3186_s28 + $0x1e8] sm:$0xff]  ;;  %v382_v16 = vld [vmem:[%s3186_s28 + $0x1f0] sm:$0xff]  ;;  %v383_v17 = vld [vmem:[%s3186_s28 + $0x1f8] sm:$0xff] }
 0x13b   : > { %v1000_v33 = vadd.f32 %v853_v27, %v680_v22  ;;  %v1001_v34 = vadd.f32 %v853_v27, %v681_v23  ;;  %v1002_v35 = vadd.f32 %v853_v27, %v682_v24  ;;  %1673 = vmatprep.subr.bf16.mxu1 %v1267_v28  ;;  %v1003_v37 = vadd.f32 %v853_v27, %v683_v25  ;;  %v376_v22 = vld [vmem:[%s3186_s28 + $0x1c0] sm:$0xff]  ;;  %v377_v25 = vld [vmem:[%s3186_s28 + $0x1c8] sm:$0xff]  ;;  %v378_v26 = vld [vmem:[%s3186_s28 + $0x1d0] sm:$0xff] }
 0x13c   : > { %v1133_v42 = vmax.f32 %v1005_v30, 0.0  ;;  %v1132_v43 = vmax.f32 %v1004_v29, 0.0  ;;  %1674 = vmatpush1.bf16.msra.mxu1 %v1266_v38  ;;  %v1135_v52 = vmax.f32 %v1007_v32, 0.0  ;;  %v1134_v61 = vmax.f32 %v1006_v31, 0.0  ;;  %v379_v27 = vld [vmem:[%s3186_s28 + $0x1d8] sm:$0xff] }
 0x13d   : > { %v548_v44 = vpop.permute.xlu1 %547  ;;  %v543_v45 = vpop.permute.xlu0 %542  ;;  %v1129_v47 = vmax.f32 %v1001_v34, 0.0  ;;  %v1128_v48 = vmax.f32 %v1000_v33, 0.0  ;;  %v1130_v53 = vmax.f32 %v1002_v35, 0.0  ;;  %v1131_v59 = vmax.f32 %v1003_v37, 0.0 }
 0x13e   : > { %v692_v54 = vmul.f32 %v548_v44, %v372_v36  ;;  %v693_v55 = vmul.f32 %v548_v44, %v373_v39  ;;  %v694_v56 = vmul.f32 %v548_v44, %v374_v40  ;;  %v695_v57 = vmul.f32 %v548_v44, %v375_v41 }
 0x13f   : > { %v1269_v58 = vpack.c.bf16 %v1133_v42, %v1129_v47  ;;  %v1268_v60 = vpack.c.bf16 %v1132_v43, %v1128_v48  ;;  %v688_v62 = vmul.f32 %v543_v45, %v368_v46  ;;  %v689_v63 = vmul.f32 %v543_v45, %v369_v49 }
 0x140   : > { %v690_v0 = vmul.f32 %v543_v45, %v370_v50  ;;  %v691_v1 = vmul.f32 %v543_v45, %v371_v51  ;;  %v1271_v4 = vpack.c.bf16 %v1135_v52, %v1131_v59  ;;  %v1270_v14 = vpack.c.bf16 %v1134_v61, %v1130_v53  ;;  %v388_v52 = vld [vmem:[%s3186_s28 + $0x220] sm:$0xff] }
 0x141   : > { %v868_v2 = vpop.permute.xlu1 %867  ;;  %v863_v3 = vpop.permute.xlu0 %862  ;;  %1482 = vmatprep.subr.bf16.mxu0 %v1269_v58 }
 0x142   : > { %v1012_v5 = vadd.f32 %v868_v2, %v692_v54  ;;  %v1013_v6 = vadd.f32 %v868_v2, %v693_v55  ;;  %v1014_v7 = vadd.f32 %v868_v2, %v694_v56  ;;  %v1015_v8 = vadd.f32 %v868_v2, %v695_v57  ;;  %1483 = vmatpush1.bf16.msra.mxu0 %v1268_v60  ;;  %v389_v55 = vld [vmem:[%s3186_s28 + $0x228] sm:$0xff]  ;;  %v390_v56 = vld [vmem:[%s3186_s28 + $0x230] sm:$0xff]  ;;  %v391_v57 = vld [vmem:[%s3186_s28 + $0x238] sm:$0xff] }
 0x143   : > { %v1008_v9 = vadd.f32 %v863_v3, %v688_v62  ;;  %v1009_v10 = vadd.f32 %v863_v3, %v689_v63  ;;  %v1010_v11 = vadd.f32 %v863_v3, %v690_v0  ;;  %1675 = vmatprep.subr.bf16.mxu1 %v1271_v4  ;;  %v1011_v13 = vadd.f32 %v863_v3, %v691_v1  ;;  %v384_v62 = vld [vmem:[%s3186_s28 + $0x200] sm:$0xff]  ;;  %v385_v1 = vld [vmem:[%s3186_s28 + $0x208] sm:$0xff]  ;;  %v386_v2 = vld [vmem:[%s3186_s28 + $0x210] sm:$0xff] }
 0x144   : > { %v1141_v18 = vmax.f32 %v1013_v6, 0.0  ;;  %v1140_v19 = vmax.f32 %v1012_v5, 0.0  ;;  %1676 = vmatpush1.bf16.msra.mxu1 %v1270_v14  ;;  %v1143_v28 = vmax.f32 %v1015_v8, 0.0  ;;  %v1142_v37 = vmax.f32 %v1014_v7, 0.0  ;;  %v387_v3 = vld [vmem:[%s3186_s28 + $0x218] sm:$0xff] }
 0x145   : > { %v558_v20 = vpop.permute.xlu1 %557  ;;  %v553_v21 = vpop.permute.xlu0 %552  ;;  %v1137_v23 = vmax.f32 %v1009_v10, 0.0  ;;  %v1136_v24 = vmax.f32 %v1008_v9, 0.0  ;;  %v1138_v29 = vmax.f32 %v1010_v11, 0.0  ;;  %v1139_v35 = vmax.f32 %v1011_v13, 0.0 }
 0x146   : > { %v700_v30 = vmul.f32 %v558_v20, %v380_v12  ;;  %v701_v31 = vmul.f32 %v558_v20, %v381_v15  ;;  %v702_v32 = vmul.f32 %v558_v20, %v382_v16  ;;  %v703_v33 = vmul.f32 %v558_v20, %v383_v17 }
 0x147   : > { %v1273_v34 = vpack.c.bf16 %v1141_v18, %v1137_v23  ;;  %v1272_v36 = vpack.c.bf16 %v1140_v19, %v1136_v24  ;;  %v696_v38 = vmul.f32 %v553_v21, %v376_v22  ;;  %v697_v39 = vmul.f32 %v553_v21, %v377_v25 }
 0x148   : > { %v698_v40 = vmul.f32 %v553_v21, %v378_v26  ;;  %v699_v41 = vmul.f32 %v553_v21, %v379_v27  ;;  %v1275_v44 = vpack.c.bf16 %v1143_v28, %v1139_v35  ;;  %v1274_v54 = vpack.c.bf16 %v1142_v37, %v1138_v29  ;;  %v396_v28 = vld [vmem:[%s3186_s28 + $0x260] sm:$0xff] }
 0x149   : > { %v878_v42 = vpop.permute.xlu1 %877  ;;  %v873_v43 = vpop.permute.xlu0 %872  ;;  %1484 = vmatprep.subr.bf16.mxu0 %v1273_v34 }
 0x14a   : > { %v1020_v45 = vadd.f32 %v878_v42, %v700_v30  ;;  %v1021_v46 = vadd.f32 %v878_v42, %v701_v31  ;;  %v1022_v47 = vadd.f32 %v878_v42, %v702_v32  ;;  %v1023_v48 = vadd.f32 %v878_v42, %v703_v33  ;;  %1485 = vmatpush1.bf16.msra.mxu0 %v1272_v36  ;;  %v397_v31 = vld [vmem:[%s3186_s28 + $0x268] sm:$0xff]  ;;  %v398_v32 = vld [vmem:[%s3186_s28 + $0x270] sm:$0xff]  ;;  %v399_v33 = vld [vmem:[%s3186_s28 + $0x278] sm:$0xff] }
 0x14b   : > { %v1016_v49 = vadd.f32 %v873_v43, %v696_v38  ;;  %v1017_v50 = vadd.f32 %v873_v43, %v697_v39  ;;  %v1018_v51 = vadd.f32 %v873_v43, %v698_v40  ;;  %1677 = vmatprep.subr.bf16.mxu1 %v1275_v44  ;;  %v1019_v53 = vadd.f32 %v873_v43, %v699_v41  ;;  %v392_v38 = vld [vmem:[%s3186_s28 + $0x240] sm:$0xff]  ;;  %v393_v41 = vld [vmem:[%s3186_s28 + $0x248] sm:$0xff]  ;;  %v394_v42 = vld [vmem:[%s3186_s28 + $0x250] sm:$0xff] }
 0x14c   : > { %v1149_v58 = vmax.f32 %v1021_v46, 0.0  ;;  %v1148_v59 = vmax.f32 %v1020_v45, 0.0  ;;  %1678 = vmatpush1.bf16.msra.mxu1 %v1274_v54  ;;  %v1151_v4 = vmax.f32 %v1023_v48, 0.0  ;;  %v1150_v13 = vmax.f32 %v1022_v47, 0.0  ;;  %v395_v43 = vld [vmem:[%s3186_s28 + $0x258] sm:$0xff] }
 0x14d   : > { %v568_v60 = vpop.permute.xlu1 %567  ;;  %v563_v61 = vpop.permute.xlu0 %562  ;;  %v1145_v63 = vmax.f32 %v1017_v50, 0.0  ;;  %v1144_v0 = vmax.f32 %v1016_v49, 0.0  ;;  %v1146_v5 = vmax.f32 %v1018_v51, 0.0  ;;  %v1147_v11 = vmax.f32 %v1019_v53, 0.0 }
 0x14e   : > { %v708_v6 = vmul.f32 %v568_v60, %v388_v52  ;;  %v709_v7 = vmul.f32 %v568_v60, %v389_v55  ;;  %v710_v8 = vmul.f32 %v568_v60, %v390_v56  ;;  %v711_v9 = vmul.f32 %v568_v60, %v391_v57 }
 0x14f   : > { %v1277_v10 = vpack.c.bf16 %v1149_v58, %v1145_v63  ;;  %v1276_v12 = vpack.c.bf16 %v1148_v59, %v1144_v0  ;;  %v704_v14 = vmul.f32 %v563_v61, %v384_v62  ;;  %v705_v15 = vmul.f32 %v563_v61, %v385_v1 }
 0x150   : > { %v706_v16 = vmul.f32 %v563_v61, %v386_v2  ;;  %v707_v17 = vmul.f32 %v563_v61, %v387_v3  ;;  %v1279_v20 = vpack.c.bf16 %v1151_v4, %v1147_v11  ;;  %v1278_v30 = vpack.c.bf16 %v1150_v13, %v1146_v5  ;;  %v404_v4 = vld [vmem:[%s3186_s28 + $0x2a0] sm:$0xff] }
 0x151   : > { %v888_v18 = vpop.permute.xlu1 %887  ;;  %v883_v19 = vpop.permute.xlu0 %882  ;;  %1486 = vmatprep.subr.bf16.mxu0 %v1277_v10 }
 0x152   : > { %v1028_v21 = vadd.f32 %v888_v18, %v708_v6  ;;  %v1029_v22 = vadd.f32 %v888_v18, %v709_v7  ;;  %v1030_v23 = vadd.f32 %v888_v18, %v710_v8  ;;  %v1031_v24 = vadd.f32 %v888_v18, %v711_v9  ;;  %1487 = vmatpush1.bf16.msra.mxu0 %v1276_v12  ;;  %v405_v7 = vld [vmem:[%s3186_s28 + $0x2a8] sm:$0xff]  ;;  %v406_v8 = vld [vmem:[%s3186_s28 + $0x2b0] sm:$0xff]  ;;  %v407_v9 = vld [vmem:[%s3186_s28 + $0x2b8] sm:$0xff] }
 0x153   : > { %v1024_v25 = vadd.f32 %v883_v19, %v704_v14  ;;  %v1025_v26 = vadd.f32 %v883_v19, %v705_v15  ;;  %v1026_v27 = vadd.f32 %v883_v19, %v706_v16  ;;  %1679 = vmatprep.subr.bf16.mxu1 %v1279_v20  ;;  %v1027_v29 = vadd.f32 %v883_v19, %v707_v17  ;;  %v400_v14 = vld [vmem:[%s3186_s28 + $0x280] sm:$0xff]  ;;  %v401_v17 = vld [vmem:[%s3186_s28 + $0x288] sm:$0xff]  ;;  %v402_v18 = vld [vmem:[%s3186_s28 + $0x290] sm:$0xff] }
 0x154   : > { %v1157_v34 = vmax.f32 %v1029_v22, 0.0  ;;  %v1156_v35 = vmax.f32 %v1028_v21, 0.0  ;;  %1680 = vmatpush1.bf16.msra.mxu1 %v1278_v30  ;;  %v1159_v44 = vmax.f32 %v1031_v24, 0.0  ;;  %v1158_v53 = vmax.f32 %v1030_v23, 0.0  ;;  %v403_v19 = vld [vmem:[%s3186_s28 + $0x298] sm:$0xff] }
 0x155   : > { %v578_v36 = vpop.permute.xlu1 %577  ;;  %v573_v37 = vpop.permute.xlu0 %572  ;;  %v1153_v39 = vmax.f32 %v1025_v26, 0.0  ;;  %v1152_v40 = vmax.f32 %v1024_v25, 0.0  ;;  %v1154_v45 = vmax.f32 %v1026_v27, 0.0  ;;  %v1155_v51 = vmax.f32 %v1027_v29, 0.0 }
 0x156   : > { %v716_v46 = vmul.f32 %v578_v36, %v396_v28  ;;  %v717_v47 = vmul.f32 %v578_v36, %v397_v31  ;;  %v718_v48 = vmul.f32 %v578_v36, %v398_v32  ;;  %v719_v49 = vmul.f32 %v578_v36, %v399_v33 }
 0x157   : > { %v1281_v50 = vpack.c.bf16 %v1157_v34, %v1153_v39  ;;  %v1280_v52 = vpack.c.bf16 %v1156_v35, %v1152_v40  ;;  %v712_v54 = vmul.f32 %v573_v37, %v392_v38  ;;  %v713_v55 = vmul.f32 %v573_v37, %v393_v41 }
 0x158   : > { %v714_v56 = vmul.f32 %v573_v37, %v394_v42  ;;  %v715_v57 = vmul.f32 %v573_v37, %v395_v43  ;;  %v1283_v60 = vpack.c.bf16 %v1159_v44, %v1155_v51  ;;  %v1282_v6 = vpack.c.bf16 %v1158_v53, %v1154_v45  ;;  %v412_v44 = vld [vmem:[%s3186_s28 + $0x2e0] sm:$0xff] }
 0x159   : > { %v898_v58 = vpop.permute.xlu1 %897  ;;  %v893_v59 = vpop.permute.xlu0 %892  ;;  %1488 = vmatprep.subr.bf16.mxu0 %v1281_v50 }
 0x15a   : > { %v1036_v61 = vadd.f32 %v898_v58, %v716_v46  ;;  %v1037_v62 = vadd.f32 %v898_v58, %v717_v47  ;;  %v1038_v63 = vadd.f32 %v898_v58, %v718_v48  ;;  %v1039_v0 = vadd.f32 %v898_v58, %v719_v49  ;;  %1489 = vmatpush1.bf16.msra.mxu0 %v1280_v52  ;;  %v413_v47 = vld [vmem:[%s3186_s28 + $0x2e8] sm:$0xff]  ;;  %v414_v48 = vld [vmem:[%s3186_s28 + $0x2f0] sm:$0xff]  ;;  %v415_v49 = vld [vmem:[%s3186_s28 + $0x2f8] sm:$0xff] }
 0x15b   : > { %v1032_v1 = vadd.f32 %v893_v59, %v712_v54  ;;  %v1033_v2 = vadd.f32 %v893_v59, %v713_v55  ;;  %v1034_v3 = vadd.f32 %v893_v59, %v714_v56  ;;  %1681 = vmatprep.subr.bf16.mxu1 %v1283_v60  ;;  %v1035_v5 = vadd.f32 %v893_v59, %v715_v57  ;;  %v408_v54 = vld [vmem:[%s3186_s28 + $0x2c0] sm:$0xff]  ;;  %v409_v57 = vld [vmem:[%s3186_s28 + $0x2c8] sm:$0xff]  ;;  %v410_v58 = vld [vmem:[%s3186_s28 + $0x2d0] sm:$0xff] }
 0x15c   : > { %v1165_v10 = vmax.f32 %v1037_v62, 0.0  ;;  %v1164_v11 = vmax.f32 %v1036_v61, 0.0  ;;  %1682 = vmatpush1.bf16.msra.mxu1 %v1282_v6  ;;  %v1167_v20 = vmax.f32 %v1039_v0, 0.0  ;;  %v1166_v29 = vmax.f32 %v1038_v63, 0.0  ;;  %v411_v59 = vld [vmem:[%s3186_s28 + $0x2d8] sm:$0xff] }
 0x15d   : > { %v588_v12 = vpop.permute.xlu1 %587  ;;  %v583_v13 = vpop.permute.xlu0 %582  ;;  %v1161_v15 = vmax.f32 %v1033_v2, 0.0  ;;  %v1160_v16 = vmax.f32 %v1032_v1, 0.0  ;;  %v1162_v21 = vmax.f32 %v1034_v3, 0.0  ;;  %v1163_v27 = vmax.f32 %v1035_v5, 0.0 }
 0x15e   : > { %v724_v22 = vmul.f32 %v588_v12, %v404_v4  ;;  %v725_v23 = vmul.f32 %v588_v12, %v405_v7  ;;  %v726_v24 = vmul.f32 %v588_v12, %v406_v8  ;;  %v727_v25 = vmul.f32 %v588_v12, %v407_v9 }
 0x15f   : > { %v1285_v26 = vpack.c.bf16 %v1165_v10, %v1161_v15  ;;  %v1284_v28 = vpack.c.bf16 %v1164_v11, %v1160_v16  ;;  %v720_v30 = vmul.f32 %v583_v13, %v400_v14  ;;  %v721_v31 = vmul.f32 %v583_v13, %v401_v17 }
 0x160   : > { %v722_v32 = vmul.f32 %v583_v13, %v402_v18  ;;  %v723_v33 = vmul.f32 %v583_v13, %v403_v19  ;;  %v1287_v36 = vpack.c.bf16 %v1167_v20, %v1163_v27  ;;  %v1286_v46 = vpack.c.bf16 %v1166_v29, %v1162_v21  ;;  %v420_v20 = vld [vmem:[%s3186_s28 + $0x320] sm:$0xff] }
 0x161   : > { %v908_v34 = vpop.permute.xlu1 %907  ;;  %v903_v35 = vpop.permute.xlu0 %902  ;;  %1490 = vmatprep.subr.bf16.mxu0 %v1285_v26 }
 0x162   : > { %v1044_v37 = vadd.f32 %v908_v34, %v724_v22  ;;  %v1045_v38 = vadd.f32 %v908_v34, %v725_v23  ;;  %v1046_v39 = vadd.f32 %v908_v34, %v726_v24  ;;  %v1047_v40 = vadd.f32 %v908_v34, %v727_v25  ;;  %1491 = vmatpush1.bf16.msra.mxu0 %v1284_v28  ;;  %v421_v23 = vld [vmem:[%s3186_s28 + $0x328] sm:$0xff]  ;;  %v422_v24 = vld [vmem:[%s3186_s28 + $0x330] sm:$0xff]  ;;  %v423_v25 = vld [vmem:[%s3186_s28 + $0x338] sm:$0xff] }
 0x163   : > { %v1040_v41 = vadd.f32 %v903_v35, %v720_v30  ;;  %v1041_v42 = vadd.f32 %v903_v35, %v721_v31  ;;  %v1042_v43 = vadd.f32 %v903_v35, %v722_v32  ;;  %1683 = vmatprep.subr.bf16.mxu1 %v1287_v36  ;;  %v1043_v45 = vadd.f32 %v903_v35, %v723_v33  ;;  %v416_v30 = vld [vmem:[%s3186_s28 + $0x300] sm:$0xff]  ;;  %v417_v33 = vld [vmem:[%s3186_s28 + $0x308] sm:$0xff]  ;;  %v418_v34 = vld [vmem:[%s3186_s28 + $0x310] sm:$0xff] }
 0x164   : > { %v1173_v50 = vmax.f32 %v1045_v38, 0.0  ;;  %v1172_v51 = vmax.f32 %v1044_v37, 0.0  ;;  %1684 = vmatpush1.bf16.msra.mxu1 %v1286_v46  ;;  %v1175_v60 = vmax.f32 %v1047_v40, 0.0  ;;  %v1174_v5 = vmax.f32 %v1046_v39, 0.0  ;;  %v419_v35 = vld [vmem:[%s3186_s28 + $0x318] sm:$0xff] }
 0x165   : > { %v598_v52 = vpop.permute.xlu1 %597  ;;  %v593_v53 = vpop.permute.xlu0 %592  ;;  %v1169_v55 = vmax.f32 %v1041_v42, 0.0  ;;  %v1168_v56 = vmax.f32 %v1040_v41, 0.0  ;;  %v1170_v61 = vmax.f32 %v1042_v43, 0.0  ;;  %v1171_v3 = vmax.f32 %v1043_v45, 0.0 }
 0x166   : > { %v732_v62 = vmul.f32 %v598_v52, %v412_v44  ;;  %v733_v63 = vmul.f32 %v598_v52, %v413_v47  ;;  %v734_v0 = vmul.f32 %v598_v52, %v414_v48  ;;  %v735_v1 = vmul.f32 %v598_v52, %v415_v49 }
 0x167   : > { %v1289_v2 = vpack.c.bf16 %v1173_v50, %v1169_v55  ;;  %v1288_v4 = vpack.c.bf16 %v1172_v51, %v1168_v56  ;;  %v728_v6 = vmul.f32 %v593_v53, %v408_v54  ;;  %v729_v7 = vmul.f32 %v593_v53, %v409_v57 }
 0x168   : > { %v730_v8 = vmul.f32 %v593_v53, %v410_v58  ;;  %v731_v9 = vmul.f32 %v593_v53, %v411_v59  ;;  %v1291_v12 = vpack.c.bf16 %v1175_v60, %v1171_v3  ;;  %v1290_v22 = vpack.c.bf16 %v1174_v5, %v1170_v61  ;;  %v428_v60 = vld [vmem:[%s3186_s28 + $0x360] sm:$0xff] }
 0x169   : > { %v918_v10 = vpop.permute.xlu1 %917  ;;  %v913_v11 = vpop.permute.xlu0 %912  ;;  %1492 = vmatprep.subr.bf16.mxu0 %v1289_v2 }
 0x16a   : > { %v1052_v13 = vadd.f32 %v918_v10, %v732_v62  ;;  %v1053_v14 = vadd.f32 %v918_v10, %v733_v63  ;;  %v1054_v15 = vadd.f32 %v918_v10, %v734_v0  ;;  %v1055_v16 = vadd.f32 %v918_v10, %v735_v1  ;;  %1493 = vmatpush1.bf16.msra.mxu0 %v1288_v4  ;;  %v429_v63 = vld [vmem:[%s3186_s28 + $0x368] sm:$0xff]  ;;  %v430_v0 = vld [vmem:[%s3186_s28 + $0x370] sm:$0xff]  ;;  %v431_v1 = vld [vmem:[%s3186_s28 + $0x378] sm:$0xff] }
 0x16b   : > { %v1048_v17 = vadd.f32 %v913_v11, %v728_v6  ;;  %v1049_v18 = vadd.f32 %v913_v11, %v729_v7  ;;  %v1050_v19 = vadd.f32 %v913_v11, %v730_v8  ;;  %1685 = vmatprep.subr.bf16.mxu1 %v1291_v12  ;;  %v1051_v21 = vadd.f32 %v913_v11, %v731_v9  ;;  %v424_v6 = vld [vmem:[%s3186_s28 + $0x340] sm:$0xff]  ;;  %v425_v9 = vld [vmem:[%s3186_s28 + $0x348] sm:$0xff]  ;;  %v426_v10 = vld [vmem:[%s3186_s28 + $0x350] sm:$0xff] }
 0x16c   : > { %v1181_v26 = vmax.f32 %v1053_v14, 0.0  ;;  %v1180_v27 = vmax.f32 %v1052_v13, 0.0  ;;  %1686 = vmatpush1.bf16.msra.mxu1 %v1290_v22  ;;  %v1183_v36 = vmax.f32 %v1055_v16, 0.0  ;;  %v1182_v45 = vmax.f32 %v1054_v15, 0.0  ;;  %v427_v11 = vld [vmem:[%s3186_s28 + $0x358] sm:$0xff] }
 0x16d   : > { %v608_v28 = vpop.permute.xlu1 %607  ;;  %v603_v29 = vpop.permute.xlu0 %602  ;;  %v1177_v31 = vmax.f32 %v1049_v18, 0.0  ;;  %v1176_v32 = vmax.f32 %v1048_v17, 0.0  ;;  %v1178_v37 = vmax.f32 %v1050_v19, 0.0  ;;  %v1179_v43 = vmax.f32 %v1051_v21, 0.0 }
 0x16e   : > { %v740_v38 = vmul.f32 %v608_v28, %v420_v20  ;;  %v741_v39 = vmul.f32 %v608_v28, %v421_v23  ;;  %v742_v40 = vmul.f32 %v608_v28, %v422_v24  ;;  %v743_v41 = vmul.f32 %v608_v28, %v423_v25 }
 0x16f   : > { %v1293_v42 = vpack.c.bf16 %v1181_v26, %v1177_v31  ;;  %v1292_v44 = vpack.c.bf16 %v1180_v27, %v1176_v32  ;;  %v736_v46 = vmul.f32 %v603_v29, %v416_v30  ;;  %v737_v47 = vmul.f32 %v603_v29, %v417_v33 }
 0x170   : > { %v738_v48 = vmul.f32 %v603_v29, %v418_v34  ;;  %v739_v49 = vmul.f32 %v603_v29, %v419_v35  ;;  %v1295_v52 = vpack.c.bf16 %v1183_v36, %v1179_v43  ;;  %v1294_v62 = vpack.c.bf16 %v1182_v45, %v1178_v37 }
 0x171   : > { %v928_v50 = vpop.permute.xlu1 %927  ;;  %v923_v51 = vpop.permute.xlu0 %922  ;;  %1494 = vmatprep.subr.bf16.mxu0 %v1293_v42 }
 0x172   : > { %v1060_v53 = vadd.f32 %v928_v50, %v740_v38  ;;  %v1061_v54 = vadd.f32 %v928_v50, %v741_v39  ;;  %v1062_v55 = vadd.f32 %v928_v50, %v742_v40  ;;  %v1063_v56 = vadd.f32 %v928_v50, %v743_v41  ;;  %1495 = vmatpush1.bf16.msra.mxu0 %v1292_v44  ;;  %v436_v38 = vld [vmem:[%s3186_s28 + $0x3a0] sm:$0xff]  ;;  %v437_v39 = vld [vmem:[%s3186_s28 + $0x3a8] sm:$0xff]  ;;  %v438_v40 = vld [vmem:[%s3186_s28 + $0x3b0] sm:$0xff] }
 0x173   : > { %v1056_v57 = vadd.f32 %v923_v51, %v736_v46  ;;  %v1057_v58 = vadd.f32 %v923_v51, %v737_v47  ;;  %v1058_v59 = vadd.f32 %v923_v51, %v738_v48  ;;  %1687 = vmatprep.subr.bf16.mxu1 %v1295_v52  ;;  %v1059_v61 = vadd.f32 %v923_v51, %v739_v49  ;;  %v439_v44 = vld [vmem:[%s3186_s28 + $0x3b8] sm:$0xff]  ;;  %v432_v48 = vld [vmem:[%s3186_s28 + $0x380] sm:$0xff]  ;;  %v433_v49 = vld [vmem:[%s3186_s28 + $0x388] sm:$0xff] }
 0x174   : > { %v1189_v2 = vmax.f32 %v1061_v54, 0.0  ;;  %v1188_v3 = vmax.f32 %v1060_v53, 0.0  ;;  %1688 = vmatpush1.bf16.msra.mxu1 %v1294_v62  ;;  %v1191_v12 = vmax.f32 %v1063_v56, 0.0  ;;  %v1190_v21 = vmax.f32 %v1062_v55, 0.0  ;;  %v434_v50 = vld [vmem:[%s3186_s28 + $0x390] sm:$0xff]  ;;  %v435_v55 = vld [vmem:[%s3186_s28 + $0x398] sm:$0xff] }
 0x175   : > { %v618_v4 = vpop.permute.xlu1 %617  ;;  %v613_v5 = vpop.permute.xlu0 %612  ;;  %v1185_v7 = vmax.f32 %v1057_v58, 0.0  ;;  %v1184_v8 = vmax.f32 %v1056_v57, 0.0  ;;  %v1186_v13 = vmax.f32 %v1058_v59, 0.0  ;;  %v1187_v19 = vmax.f32 %v1059_v61, 0.0 }
 0x176   : > { %v748_v14 = vmul.f32 %v618_v4, %v428_v60  ;;  %v749_v15 = vmul.f32 %v618_v4, %v429_v63  ;;  %v750_v16 = vmul.f32 %v618_v4, %v430_v0  ;;  %v751_v17 = vmul.f32 %v618_v4, %v431_v1 }
 0x177   : > { %v1297_v18 = vpack.c.bf16 %v1189_v2, %v1185_v7  ;;  %v1296_v20 = vpack.c.bf16 %v1188_v3, %v1184_v8  ;;  %v744_v22 = vmul.f32 %v613_v5, %v424_v6  ;;  %v745_v23 = vmul.f32 %v613_v5, %v425_v9 }
 0x178   : > { %v746_v24 = vmul.f32 %v613_v5, %v426_v10  ;;  %v747_v25 = vmul.f32 %v613_v5, %v427_v11  ;;  %v1299_v28 = vpack.c.bf16 %v1191_v12, %v1187_v19  ;;  %v1298_v37 = vpack.c.bf16 %v1190_v21, %v1186_v13 }
 0x179   : > { %v938_v26 = vpop.permute.xlu1 %937  ;;  %v933_v27 = vpop.permute.xlu0 %932  ;;  %1496 = vmatprep.subr.bf16.mxu0 %v1297_v18 }
 0x17a   : > { %v1068_v29 = vadd.f32 %v938_v26, %v748_v14  ;;  %v1069_v30 = vadd.f32 %v938_v26, %v749_v15  ;;  %v1070_v31 = vadd.f32 %v938_v26, %v750_v16  ;;  %v1071_v32 = vadd.f32 %v938_v26, %v751_v17  ;;  %1497 = vmatpush1.bf16.msra.mxu0 %v1296_v20  ;;  %v444_v14 = vld [vmem:[%s3186_s28 + $0x3e0] sm:$0xff]  ;;  %v445_v15 = vld [vmem:[%s3186_s28 + $0x3e8] sm:$0xff]  ;;  %v446_v16 = vld [vmem:[%s3186_s28 + $0x3f0] sm:$0xff] }
 0x17b   : > { %v1064_v33 = vadd.f32 %v933_v27, %v744_v22  ;;  %v1065_v34 = vadd.f32 %v933_v27, %v745_v23  ;;  %v1066_v35 = vadd.f32 %v933_v27, %v746_v24  ;;  %1689 = vmatprep.subr.bf16.mxu1 %v1299_v28  ;;  %v1067_v36 = vadd.f32 %v933_v27, %v747_v25  ;;  %v447_v23 = vld [vmem:[%s3186_s28 + $0x3f8] sm:$0xff]  ;;  %v440_v24 = vld [vmem:[%s3186_s28 + $0x3c0] sm:$0xff]  ;;  %v441_v27 = vld [vmem:[%s3186_s28 + $0x3c8] sm:$0xff] }
 0x17c   : > { %v1197_v41 = vmax.f32 %v1069_v30, 0.0  ;;  %v1196_v42 = vmax.f32 %v1068_v29, 0.0  ;;  %1690 = vmatpush1.bf16.msra.mxu1 %v1298_v37  ;;  %v1199_v51 = vmax.f32 %v1071_v32, 0.0  ;;  %v1198_v60 = vmax.f32 %v1070_v31, 0.0  ;;  %v442_v28 = vld [vmem:[%s3186_s28 + $0x3d0] sm:$0xff]  ;;  %v443_v29 = vld [vmem:[%s3186_s28 + $0x3d8] sm:$0xff] }
 0x17d   : > { %v628_v43 = vpop.permute.xlu1 %627  ;;  %v623_v45 = vpop.permute.xlu0 %622  ;;  %v1193_v46 = vmax.f32 %v1065_v34, 0.0  ;;  %v1192_v47 = vmax.f32 %v1064_v33, 0.0  ;;  %v1194_v56 = vmax.f32 %v1066_v35, 0.0  ;;  %v1195_v58 = vmax.f32 %v1067_v36, 0.0 }
 0x17e   : > { %v756_v52 = vmul.f32 %v628_v43, %v436_v38  ;;  %v757_v53 = vmul.f32 %v628_v43, %v437_v39  ;;  %v758_v54 = vmul.f32 %v628_v43, %v438_v40  ;;  %v759_v61 = vmul.f32 %v628_v43, %v439_v44 }
 0x17f   : > { %v1301_v57 = vpack.c.bf16 %v1197_v41, %v1193_v46  ;;  %v1300_v59 = vpack.c.bf16 %v1196_v42, %v1192_v47  ;;  %v752_v62 = vmul.f32 %v623_v45, %v432_v48  ;;  %v753_v63 = vmul.f32 %v623_v45, %v433_v49 }
 0x180   : > { %v754_v0 = vmul.f32 %v623_v45, %v434_v50  ;;  %v755_v3 = vmul.f32 %v623_v45, %v435_v55  ;;  %v1303_v4 = vpack.c.bf16 %v1199_v51, %v1195_v58  ;;  %v1302_v12 = vpack.c.bf16 %v1198_v60, %v1194_v56 }
 0x181   : > { %v948_v1 = vpop.permute.xlu1 %947  ;;  %v943_v2 = vpop.permute.xlu0 %942  ;;  %1498 = vmatprep.subr.bf16.mxu0 %v1301_v57 }
 0x182   : > { %v1076_v5 = vadd.f32 %v948_v1, %v756_v52  ;;  %v1077_v6 = vadd.f32 %v948_v1, %v757_v53  ;;  %v1079_v7 = vadd.f32 %v948_v1, %v759_v61  ;;  %v1072_v8 = vadd.f32 %v943_v2, %v752_v62  ;;  %1499 = vmatpush1.bf16.msra.mxu0 %v1300_v59 }
 0x183   : > { %v1073_v9 = vadd.f32 %v943_v2, %v753_v63  ;;  %v1074_v10 = vadd.f32 %v943_v2, %v754_v0  ;;  %1691 = vmatprep.subr.bf16.mxu1 %v1303_v4  ;;  %v1075_v11 = vadd.f32 %v943_v2, %v755_v3  ;;  %v1078_v18 = vadd.f32 %v948_v1, %v758_v54  ;;  %v2566_v2 = vld [vmem:[#allocation7] ss:$8 sps:$4 sm:$0xff]   ;;  %v2569_v3 = vld [vmem:[#allocation7 + $0x14] ss:$8 sps:$4 sm:$0xff]   ;;  %v2571_v4 = vld [vmem:[#allocation7 + $0x10] ss:$8 sps:$4 sm:$0xff]  }
 0x184   : > { %v1205_v13 = vmax.f32 %v1077_v6, 0.0  ;;  %v1204_v17 = vmax.f32 %v1076_v5, 0.0  ;;  %v1207_v22 = vmax.f32 %v1079_v7, 0.0  ;;  %v1200_v25 = vmax.f32 %v1072_v8, 0.0  ;;  %1692 = vmatpush1.bf16.msra.mxu1 %v1302_v12  ;;  %v2572_v5 = vld [vmem:[#allocation7 + $0x24] ss:$8 sps:$4 sm:$0xff]  }
 0x185   : > { %v638_v19 = vpop.permute.xlu1 %637  ;;  %v633_v20 = vpop.permute.xlu0 %632  ;;  %v1201_v21 = vmax.f32 %v1073_v9, 0.0  ;;  %v1203_v26 = vmax.f32 %v1075_v11, 0.0  ;;  %v1202_v30 = vmax.f32 %v1074_v10, 0.0  ;;  %v1206_v44 = vmax.f32 %v1078_v18, 0.0  ;;  %v2574_v6 = vld [vmem:[#allocation7 + $0x20] ss:$8 sps:$4 sm:$0xff]  }
 0x186   : > { %v764_v32 = vmul.f32 %v638_v19, %v444_v14  ;;  %v765_v33 = vmul.f32 %v638_v19, %v445_v15  ;;  %v766_v34 = vmul.f32 %v638_v19, %v446_v16  ;;  %v767_v36 = vmul.f32 %v638_v19, %v447_v23  ;;  %v2575_v7 = vld [vmem:[#allocation7 + $0x34] ss:$8 sps:$4 sm:$0xff]   ;;  %v2577_v8 = vld [vmem:[#allocation7 + $0x30] ss:$8 sps:$4 sm:$0xff]   ;;  %v2578_v9 = vld [vmem:[#allocation7 + $0x44] ss:$8 sps:$4 sm:$0xff]  }
 0x187   : > { %v1305_v31 = vpack.c.bf16 %v1205_v13, %v1201_v21  ;;  %v1307_v35 = vpack.c.bf16 %v1207_v22, %v1203_v26  ;;  %v760_v37 = vmul.f32 %v633_v20, %v440_v24  ;;  %v1304_v38 = vpack.c.bf16 %v1204_v17, %v1200_v25  ;;  %v2580_v10 = vld [vmem:[#allocation7 + $0x40] ss:$8 sps:$4 sm:$0xff]   ;;  %v2581_v11 = vld [vmem:[#allocation7 + $0x54] ss:$8 sps:$4 sm:$0xff]   ;;  %v2583_v12 = vld [vmem:[#allocation7 + $0x50] ss:$8 sps:$4 sm:$0xff]  }
 0x188   : > { %v761_v41 = vmul.f32 %v633_v20, %v441_v27  ;;  %v762_v42 = vmul.f32 %v633_v20, %v442_v28  ;;  %v763_v43 = vmul.f32 %v633_v20, %v443_v29  ;;  %v1306_v61 = vpack.c.bf16 %v1206_v44, %v1202_v30  ;;  %v2584_v13 = vld [vmem:[#allocation7 + $0x64] ss:$8 sps:$4 sm:$0xff]   ;;  %v2586_v14 = vld [vmem:[#allocation7 + $0x60] ss:$8 sps:$4 sm:$0xff]   ;;  %v2587_v15 = vld [vmem:[#allocation7 + $0x74] ss:$8 sps:$4 sm:$0xff]  }
 0x189   : > { %1500 = vmatprep.subr.bf16.mxu0 %v1305_v31  ;;  %v958_v39 = vpop.permute.xlu1 %957  ;;  %v953_v40 = vpop.permute.xlu0 %952  ;;  %1693 = vmatprep.subr.bf16.mxu1 %v1307_v35  ;;  %v2589_v16 = vld [vmem:[#allocation7 + $0x70] ss:$8 sps:$4 sm:$0xff]   ;;  %v2590_v17 = vld [vmem:[#allocation7 + $0x84] ss:$8 sps:$4 sm:$0xff]   ;;  %v2592_v18 = vld [vmem:[#allocation7 + $0x80] ss:$8 sps:$4 sm:$0xff]  }
 0x18a   : > { %v1084_v45 = vadd.f32 %v958_v39, %v764_v32  ;;  %v1085_v46 = vadd.f32 %v958_v39, %v765_v33  ;;  %v1086_v47 = vadd.f32 %v958_v39, %v766_v34  ;;  %v1087_v48 = vadd.f32 %v958_v39, %v767_v36  ;;  %1501 = vmatpush1.bf16.msra.mxu0 %v1304_v38  ;;  %v2593_v19 = vld [vmem:[#allocation7 + $0x94] ss:$8 sps:$4 sm:$0xff]   ;;  %v2595_v20 = vld [vmem:[#allocation7 + $0x90] ss:$8 sps:$4 sm:$0xff]   ;;  %v2596_v21 = vld [vmem:[#allocation7 + $0xa4] ss:$8 sps:$4 sm:$0xff]  }
 0x18b   : > { %v1080_v49 = vadd.f32 %v953_v40, %v760_v37  ;;  %v1081_v50 = vadd.f32 %v953_v40, %v761_v41  ;;  %v1082_v51 = vadd.f32 %v953_v40, %v762_v42  ;;  %v1083_v52 = vadd.f32 %v953_v40, %v763_v43  ;;  %1694 = vmatpush1.bf16.msra.mxu1 %v1306_v61  ;;  %v2598_v22 = vld [vmem:[#allocation7 + $0xa0] ss:$8 sps:$4 sm:$0xff]   ;;  %v2599_v23 = vld [vmem:[#allocation7 + $0xb4] ss:$8 sps:$4 sm:$0xff]   ;;  %v2601_v24 = vld [vmem:[#allocation7 + $0xb0] ss:$8 sps:$4 sm:$0xff]  }
 0x18c   : > { %v1212_v53 = vmax.f32 %v1084_v45, 0.0  ;;  %v1213_v54 = vmax.f32 %v1085_v46, 0.0  ;;  %v1214_v55 = vmax.f32 %v1086_v47, 0.0  ;;  %v1215_v56 = vmax.f32 %v1087_v48, 0.0  ;;  %v2602_v25 = vld [vmem:[#allocation7 + $0xc4] ss:$8 sps:$4 sm:$0xff]  }
 0x18d   : > { %v1208_v57 = vmax.f32 %v1080_v49, 0.0  ;;  %v1209_v58 = vmax.f32 %v1081_v50, 0.0  ;;  %v1210_v59 = vmax.f32 %v1082_v51, 0.0  ;;  %v1211_v60 = vmax.f32 %v1083_v52, 0.0  ;;  %v2604_v26 = vld [vmem:[#allocation7 + $0xc0] ss:$8 sps:$4 sm:$0xff]  }
 0x18e   : > { %v2605_v27 = vld [vmem:[#allocation7 + $0xd4] ss:$8 sps:$4 sm:$0xff]   ;;  %v2607_v28 = vld [vmem:[#allocation7 + $0xd0] ss:$8 sps:$4 sm:$0xff]   ;;  %v2608_v29 = vld [vmem:[#allocation7 + $0xe4] ss:$8 sps:$4 sm:$0xff]   ;;  %v1860_v33 = vlaneseq }
 0x18f   : > { %v1309_v62 = vpack.c.bf16 %v1213_v54, %v1209_v58  ;;  %v1311_v63 = vpack.c.bf16 %v1215_v56, %v1211_v60  ;;  %v1308_v0 = vpack.c.bf16 %v1212_v53, %v1208_v57  ;;  %v1310_v1 = vpack.c.bf16 %v1214_v55, %v1210_v59  ;;  %v2610_v30 = vld [vmem:[#allocation7 + $0xe0] ss:$8 sps:$4 sm:$0xff]   ;;  %v2611_v31 = vld [vmem:[#allocation7 + $0xf4] ss:$8 sps:$4 sm:$0xff]   ;;  %v2613_v32 = vld [vmem:[#allocation7 + $0xf0] ss:$8 sps:$4 sm:$0xff]  }
 0x190   : > { %v1861_v34 = vshrl.u32 %v1860_v33, 7  ;;  %v1858_v36 = vld [vmem:[%s3194_s27] sm:$0xf]  ;;  %v2615_v56 = vld [vmem:[%s3186_s28 + $0x8] sm:$0xff]  ;;  %s3543_s27 = scalar_lea.vmem [#allocation8], %s2419_s5  ;;  %v2616_v61 = vld [vmem:[%s3186_s28 + $0x10] sm:$0xff] }
 0x191   : > { %1502 = vmatprep.subr.bf16.mxu0 %v1309_v62  ;;  %1695 = vmatprep.subr.bf16.mxu1 %v1311_v63  ;;  %v2614_v50 = vld [vmem:[%s3186_s28] sm:$0xff]  ;;  %s4033_s5 = sld [smem:[#allocation15_spill]]  ;;  %s2280_s0 = sshll.u32 %s3543_s27, 4  ;;  %s3919_s0 = int_to_ptr.vmem [resolvable:$true] %s2280_s0 }
 0x192   : > { %1503 = vmatpush1.bf16.msra.mxu0 %v1308_v0  ;;  %1696 = vmatpush1.bf16.msra.mxu1 %v1310_v1  ;;  %v1862_v35 = vsub.s32 0, %v1861_v34  ;;  %v1866_v37 = vsub.s32 1, %v1861_v34  ;;  %v1870_v38 = vsub.s32 2, %v1861_v34  ;;  %v1874_v39 = vsub.s32 3, %v1861_v34  ;;  %v2617_v63 = vld [vmem:[%s3186_s28 + $0x20] sm:$0xff]  ;;  %s2830_s6 = scalar_lea.vmem %s3919_s0, 16384  ;;  %p2837_p6 = scmp.lt.s32.totalorder %s3919_s0, %s2835_s13 }
 0x193   : > { %p2831_p7 = scmp.ne.s32.totalorder %s3919_s0, %s2830_s6  ;;  %p2838_p10 = scmp.lt.s32.totalorder %s2836_s30, %s2830_s6 }
 0x194   : > { %v3525_v40 = vrot.slane %v1858_v36, %v1862_v35  ;;  %v3527_v41 = vrot.slane %v1858_v36, %v1866_v37  ;;  %v3529_v42 = vrot.slane %v1858_v36, %v1870_v38  ;;  %v3531_v44 = vrot.slane %v1858_v36, %v1874_v39  ;;  %v2626_v35 = vld [vmem:[%s3186_s28 + $0x58] sm:$0xff]  ;;  %v2627_v37 = vld [vmem:[%s3186_s28 + $0x68] sm:$0xff] }
 0x195   : > { %1505 = vmatmul.mubr.bf16.vlgmr.msra.gmra.mrb[0].mxu0 %v2566_v2  ;;  %1698 = vmatmul.mubr.bf16.vlgmr.msra.gmra.mrb[0].mxu1 %v2566_v2  ;;  %p2832_p9 = pnand %p2831_p7, %p4038_p8  ;;  %p2839_p4 = por %p2838_p10, %p2837_p6 }
 0x196   : > { %1514 = vmatprep.mubr.bf16.mxu0 %v2569_v3  ;;  %1707 = vmatprep.mubr.bf16.mxu1 %v2569_v3  ;;  %v2618_v3 = vld [vmem:[%s3186_s28 + $0x18] sm:$0xff] }
 0x197   : > { %s2456_s29 = sshll.u32 %s4033_s5, 2  ;;  %p2833_p2 = pneg %p2832_p9 }
 0x198   : > { %s3899_s10 = sadd.s32 %s2457_s16, %s2456_s29 }
 0x199   : > { %s2458_s22 = sshll.u32 %s3899_s10, 7  ;;  %p2840_p11 = pnand %p2839_p4, %p2833_p2 }
 0x19a   : > { %s3927_s12 = scalar_lea.hbm %s4036_s20, %s2458_s22 }
 0x19d   : > { %1515 = vmatmul.mubr.bf16.gmra.mrb[4].mxu0 %v2571_v4  ;;  %1708 = vmatmul.mubr.bf16.gmra.mrb[4].mxu1 %v2571_v4 }
 0x19e   : > { %1524 = vmatprep.mubr.bf16.mxu0 %v2572_v5  ;;  %1717 = vmatprep.mubr.bf16.mxu1 %v2572_v5  ;;  %v2619_v5 = vld [vmem:[%s3186_s28 + $0x28] sm:$0xff] }
 0x1a5   : > { %1525 = vmatmul.mubr.bf16.gmra.mrb[8].mxu0 %v2574_v6  ;;  %1718 = vmatmul.mubr.bf16.gmra.mrb[8].mxu1 %v2574_v6 }
 0x1a6   : > { %1534 = vmatprep.mubr.bf16.mxu0 %v2575_v7  ;;  %1727 = vmatprep.mubr.bf16.mxu1 %v2575_v7 }
 0x1ad   : > { %1535 = vmatmul.mubr.bf16.gmra.mrb[12].mxu0 %v2577_v8  ;;  %1728 = vmatmul.mubr.bf16.gmra.mrb[12].mxu1 %v2577_v8  ;;  %v2620_v8 = vld [vmem:[%s3186_s28 + $0x30] sm:$0xff] }
 0x1ae   : > { %1544 = vmatprep.mubr.bf16.mxu0 %v2578_v9  ;;  %1737 = vmatprep.mubr.bf16.mxu1 %v2578_v9 }
 0x1b5   : > { %1545 = vmatmul.mubr.bf16.gmra.mrb[16].mxu0 %v2580_v10  ;;  %1738 = vmatmul.mubr.bf16.gmra.mrb[16].mxu1 %v2580_v10  ;;  %v2621_v10 = vld [vmem:[%s3186_s28 + $0x38] sm:$0xff] }
 0x1b6   : > { %1554 = vmatprep.mubr.bf16.mxu0 %v2581_v11  ;;  %1747 = vmatprep.mubr.bf16.mxu1 %v2581_v11 }
 0x1bd   : > { %1555 = vmatmul.mubr.bf16.gmra.mrb[20].mxu0 %v2583_v12  ;;  %1748 = vmatmul.mubr.bf16.gmra.mrb[20].mxu1 %v2583_v12 }
 0x1be   : > { %1564 = vmatprep.mubr.bf16.mxu0 %v2584_v13  ;;  %1757 = vmatprep.mubr.bf16.mxu1 %v2584_v13 }
 0x1c5   : > { %1565 = vmatmul.mubr.bf16.gmra.mrb[24].mxu0 %v2586_v14  ;;  %1758 = vmatmul.mubr.bf16.gmra.mrb[24].mxu1 %v2586_v14 }
 0x1c6   : > { %1574 = vmatprep.mubr.bf16.mxu0 %v2587_v15  ;;  %1767 = vmatprep.mubr.bf16.mxu1 %v2587_v15 }
 0x1cd   : > { %1575 = vmatmul.mubr.bf16.gmra.mrb[28].mxu0 %v2589_v16  ;;  %1768 = vmatmul.mubr.bf16.gmra.mrb[28].mxu1 %v2589_v16 }
 0x1ce   : > { %1584 = vmatprep.mubr.bf16.mxu0 %v2590_v17  ;;  %1777 = vmatprep.mubr.bf16.mxu1 %v2590_v17 }
 0x1d5   : > { %1585 = vmatmul.mubr.bf16.gmra.mrb[32].mxu0 %v2592_v18  ;;  %1778 = vmatmul.mubr.bf16.gmra.mrb[32].mxu1 %v2592_v18  ;;  %v2622_v18 = vld [vmem:[%s3186_s28 + $0x40] sm:$0xff] }
 0x1d6   : > { %1594 = vmatprep.mubr.bf16.mxu0 %v2593_v19  ;;  %1787 = vmatprep.mubr.bf16.mxu1 %v2593_v19 }
 0x1dd   : > { %1595 = vmatmul.mubr.bf16.gmra.mrb[36].mxu0 %v2595_v20  ;;  %1788 = vmatmul.mubr.bf16.gmra.mrb[36].mxu1 %v2595_v20 }
 0x1de   : > { %1604 = vmatprep.mubr.bf16.mxu0 %v2596_v21  ;;  %1797 = vmatprep.mubr.bf16.mxu1 %v2596_v21 }
 0x1e5   : > { %1605 = vmatmul.mubr.bf16.gmra.mrb[40].mxu0 %v2598_v22  ;;  %1798 = vmatmul.mubr.bf16.gmra.mrb[40].mxu1 %v2598_v22 }
 0x1e6   : > { %1614 = vmatprep.mubr.bf16.mxu0 %v2599_v23  ;;  %1807 = vmatprep.mubr.bf16.mxu1 %v2599_v23 }
 0x1ed   : > { %1615 = vmatmul.mubr.bf16.gmra.mrb[44].mxu0 %v2601_v24  ;;  %1808 = vmatmul.mubr.bf16.gmra.mrb[44].mxu1 %v2601_v24  ;;  %v2623_v24 = vld [vmem:[%s3186_s28 + $0x48] sm:$0xff] }
 0x1ee   : > { %1624 = vmatprep.mubr.bf16.mxu0 %v2602_v25  ;;  %1817 = vmatprep.mubr.bf16.mxu1 %v2602_v25 }
 0x1f5   : > { %1625 = vmatmul.mubr.bf16.gmra.mrb[48].mxu0 %v2604_v26  ;;  %1818 = vmatmul.mubr.bf16.gmra.mrb[48].mxu1 %v2604_v26 }
 0x1f6   : > { %1634 = vmatprep.mubr.bf16.mxu0 %v2605_v27  ;;  %1827 = vmatprep.mubr.bf16.mxu1 %v2605_v27 }
 0x1fd   : > { %1635 = vmatmul.mubr.bf16.gmra.mrb[52].mxu0 %v2607_v28  ;;  %1828 = vmatmul.mubr.bf16.gmra.mrb[52].mxu1 %v2607_v28 }
 0x1fe   : > { %1644 = vmatprep.mubr.bf16.mxu0 %v2608_v29  ;;  %1837 = vmatprep.mubr.bf16.mxu1 %v2608_v29  ;;  %v2624_v29 = vld [vmem:[%s3186_s28 + $0x50] sm:$0xff] }
 0x205   : > { %1645 = vmatmul.mubr.bf16.gmra.mrb[56].mxu0 %v2610_v30  ;;  %1838 = vmatmul.mubr.bf16.gmra.mrb[56].mxu1 %v2610_v30 }
 0x206   : > { %1654 = vmatprep.mubr.bf16.mxu0 %v2611_v31  ;;  %1847 = vmatprep.mubr.bf16.mxu1 %v2611_v31  ;;  %v2625_v31 = vld [vmem:[%s3186_s28 + $0x60] sm:$0xff] }
 0x20d   : > { %1655 = vmatmul.mubr.bf16.gmra.mrb[60].mxu0 %v2613_v32  ;;  %1848 = vmatmul.mubr.bf16.gmra.mrb[60].mxu1 %v2613_v32 }
 0x268   : > { %v1506_v43 = vpop.f32.mrb[0].mxu0  ;;  %v1699_v47 = vpop.f32.mrb[0].mxu1 }
 0x269   : > { %v1880_v45 = vmul.f32 %v3525_v40, %v1506_v43  ;;  %v1508_v46 = vpop.f32.mrb[1].mxu0  ;;  %v1882_v52 = vmul.f32 %v3529_v42, %v1699_v47  ;;  %v1701_v53 = vpop.f32.mrb[1].mxu1  ;;  %v2628_v43 = vld [vmem:[%s3186_s28 + $0x70] sm:$0xff] }
 0x26a   : > { %v1881_v48 = vmul.f32 %v3527_v41, %v1508_v46  ;;  %v1510_v49 = vpop.f32.mrb[2].mxu0  ;;  %v1883_v58 = vmul.f32 %v3531_v44, %v1701_v53  ;;  %v1703_v59 = vpop.f32.mrb[2].mxu1  ;;  %v2629_v46 = vld [vmem:[%s3186_s28 + $0x78] sm:$0xff] }
 0x26b   : > { %v2008_v51 = vadd.f32 %v2614_v50, %v1880_v45  ;;  %v1884_v54 = vmul.f32 %v3525_v40, %v1510_v49  ;;  %v1512_v55 = vpop.f32.mrb[3].mxu0  ;;  %v2010_v62 = vadd.f32 %v2616_v61, %v1882_v52  ;;  %v1886_v1 = vmul.f32 %v3529_v42, %v1703_v59  ;;  %v1705_v2 = vpop.f32.mrb[3].mxu1 }
 0x26c   : > { %v2009_v57 = vadd.f32 %v2615_v56, %v1881_v48  ;;  %v1885_v60 = vmul.f32 %v3527_v41, %v1512_v55  ;;  %v2011_v4 = vadd.f32 %v2618_v3, %v1883_v58  ;;  %v1887_v7 = vmul.f32 %v3531_v44, %v1705_v2  ;;  %v2633_v3 = vld [vmem:[%s3186_s28 + $0xa0] sm:$0xff] }
 0x26d   : > { %2136 = vst [vmem:[%s3543_s27] sm:$0xff] %v2008_v51  ;;  %v2012_v0 = vadd.f32 %v2617_v63, %v1884_v54  ;;  %2138 = vst [vmem:[%s3543_s27 + $0x10] sm:$0xff] %v2010_v62  ;;  %v2014_v9 = vadd.f32 %v2620_v8, %v1886_v1  ;;  %v2630_v54 = vld [vmem:[%s3186_s28 + $0x80] sm:$0xff]  ;;  %v2632_v1 = vld [vmem:[%s3186_s28 + $0x90] sm:$0xff] }
 0x26e   : > { %2137 = vst [vmem:[%s3543_s27 + $0x8] sm:$0xff] %v2009_v57  ;;  %v2013_v6 = vadd.f32 %v2619_v5, %v1885_v60  ;;  %2139 = vst [vmem:[%s3543_s27 + $0x18] sm:$0xff] %v2011_v4  ;;  %v2015_v11 = vadd.f32 %v2621_v10, %v1887_v7  ;;  %v2631_v60 = vld [vmem:[%s3186_s28 + $0x88] sm:$0xff]  ;;  %v2634_v7 = vld [vmem:[%s3186_s28 + $0x98] sm:$0xff] }
 0x26f   : > { %2140 = vst [vmem:[%s3543_s27 + $0x20] sm:$0xff] %v2012_v0  ;;  %2142 = vst [vmem:[%s3543_s27 + $0x30] sm:$0xff] %v2014_v9  ;;  %v2635_v9 = vld [vmem:[%s3186_s28 + $0xa8] sm:$0xff] }
 0x270   : > { %2141 = vst [vmem:[%s3543_s27 + $0x28] sm:$0xff] %v2013_v6  ;;  %v1516_v12 = vpop.f32.mrb[4].mxu0  ;;  %2143 = vst [vmem:[%s3543_s27 + $0x38] sm:$0xff] %v2015_v11  ;;  %v1709_v15 = vpop.f32.mrb[4].mxu1 }
 0x271   : > { %v1888_v13 = vmul.f32 %v3525_v40, %v1516_v12  ;;  %v1518_v14 = vpop.f32.mrb[5].mxu0  ;;  %v1890_v20 = vmul.f32 %v3529_v42, %v1709_v15  ;;  %v1711_v21 = vpop.f32.mrb[5].mxu1  ;;  %v2636_v12 = vld [vmem:[%s3186_s28 + $0xb0] sm:$0xff] }
 0x272   : > { %v1889_v16 = vmul.f32 %v3527_v41, %v1518_v14  ;;  %v1520_v17 = vpop.f32.mrb[6].mxu0  ;;  %v1891_v26 = vmul.f32 %v3531_v44, %v1711_v21  ;;  %v1713_v27 = vpop.f32.mrb[6].mxu1  ;;  %v2637_v14 = vld [vmem:[%s3186_s28 + $0xb8] sm:$0xff] }
 0x273   : > { %v2016_v19 = vadd.f32 %v2622_v18, %v1888_v13  ;;  %v1892_v22 = vmul.f32 %v3525_v40, %v1520_v17  ;;  %v1522_v23 = vpop.f32.mrb[7].mxu0  ;;  %v2018_v30 = vadd.f32 %v2624_v29, %v1890_v20  ;;  %v1894_v33 = vmul.f32 %v3529_v42, %v1713_v27  ;;  %v1715_v34 = vpop.f32.mrb[7].mxu1 }
 0x274   : > { %v2017_v25 = vadd.f32 %v2623_v24, %v1889_v16  ;;  %v1893_v28 = vmul.f32 %v3527_v41, %v1522_v23  ;;  %v2019_v36 = vadd.f32 %v2626_v35, %v1891_v26  ;;  %v1895_v39 = vmul.f32 %v3531_v44, %v1715_v34  ;;  %v2641_v35 = vld [vmem:[%s3186_s28 + $0xe0] sm:$0xff] }
 0x275   : > { %2144 = vst [vmem:[%s3543_s27 + $0x40] sm:$0xff] %v2016_v19  ;;  %v2020_v32 = vadd.f32 %v2625_v31, %v1892_v22  ;;  %2146 = vst [vmem:[%s3543_s27 + $0x50] sm:$0xff] %v2018_v30  ;;  %v2022_v45 = vadd.f32 %v2628_v43, %v1894_v33  ;;  %v2638_v22 = vld [vmem:[%s3186_s28 + $0xc0] sm:$0xff]  ;;  %v2640_v33 = vld [vmem:[%s3186_s28 + $0xd0] sm:$0xff] }
 0x276   : > { %2145 = vst [vmem:[%s3543_s27 + $0x48] sm:$0xff] %v2017_v25  ;;  %v2021_v38 = vadd.f32 %v2627_v37, %v1893_v28  ;;  %2147 = vst [vmem:[%s3543_s27 + $0x58] sm:$0xff] %v2019_v36  ;;  %v2023_v47 = vadd.f32 %v2629_v46, %v1895_v39  ;;  %v2639_v28 = vld [vmem:[%s3186_s28 + $0xc8] sm:$0xff]  ;;  %v2642_v39 = vld [vmem:[%s3186_s28 + $0xd8] sm:$0xff] }
 0x277   : > { %2148 = vst [vmem:[%s3543_s27 + $0x60] sm:$0xff] %v2020_v32  ;;  %2150 = vst [vmem:[%s3543_s27 + $0x70] sm:$0xff] %v2022_v45  ;;  %v2643_v45 = vld [vmem:[%s3186_s28 + $0xe8] sm:$0xff] }
 0x278   : > { %2149 = vst [vmem:[%s3543_s27 + $0x68] sm:$0xff] %v2021_v38  ;;  %v1526_v48 = vpop.f32.mrb[8].mxu0  ;;  %2151 = vst [vmem:[%s3543_s27 + $0x78] sm:$0xff] %v2023_v47  ;;  %v1719_v51 = vpop.f32.mrb[8].mxu1 }
 0x279   : > { %v1896_v49 = vmul.f32 %v3525_v40, %v1526_v48  ;;  %v1528_v50 = vpop.f32.mrb[9].mxu0  ;;  %v1898_v56 = vmul.f32 %v3529_v42, %v1719_v51  ;;  %v1721_v57 = vpop.f32.mrb[9].mxu1  ;;  %v2644_v48 = vld [vmem:[%s3186_s28 + $0xf0] sm:$0xff] }
 0x27a   : > { %v1897_v52 = vmul.f32 %v3527_v41, %v1528_v50  ;;  %v1530_v53 = vpop.f32.mrb[10].mxu0  ;;  %v1899_v62 = vmul.f32 %v3531_v44, %v1721_v57  ;;  %v1723_v63 = vpop.f32.mrb[10].mxu1  ;;  %v2645_v50 = vld [vmem:[%s3186_s28 + $0xf8] sm:$0xff] }
 0x27b   : > { %v2024_v55 = vadd.f32 %v2630_v54, %v1896_v49  ;;  %v1900_v58 = vmul.f32 %v3525_v40, %v1530_v53  ;;  %v1532_v59 = vpop.f32.mrb[11].mxu0  ;;  %v2026_v2 = vadd.f32 %v2632_v1, %v1898_v56  ;;  %v1902_v5 = vmul.f32 %v3529_v42, %v1723_v63  ;;  %v1725_v6 = vpop.f32.mrb[11].mxu1 }
 0x27c   : > { %v2025_v61 = vadd.f32 %v2631_v60, %v1897_v52  ;;  %v1901_v0 = vmul.f32 %v3527_v41, %v1532_v59  ;;  %v2027_v8 = vadd.f32 %v2634_v7, %v1899_v62  ;;  %v1903_v11 = vmul.f32 %v3531_v44, %v1725_v6  ;;  %v2649_v7 = vld [vmem:[%s3186_s28 + $0x120] sm:$0xff] }
 0x27d   : > { %2152 = vst [vmem:[%s3543_s27 + $0x80] sm:$0xff] %v2024_v55  ;;  %v2028_v4 = vadd.f32 %v2633_v3, %v1900_v58  ;;  %2154 = vst [vmem:[%s3543_s27 + $0x90] sm:$0xff] %v2026_v2  ;;  %v2030_v13 = vadd.f32 %v2636_v12, %v1902_v5  ;;  %v2646_v58 = vld [vmem:[%s3186_s28 + $0x100] sm:$0xff]  ;;  %v2648_v5 = vld [vmem:[%s3186_s28 + $0x110] sm:$0xff] }
 0x27e   : > { %2153 = vst [vmem:[%s3543_s27 + $0x88] sm:$0xff] %v2025_v61  ;;  %v2029_v10 = vadd.f32 %v2635_v9, %v1901_v0  ;;  %2155 = vst [vmem:[%s3543_s27 + $0x98] sm:$0xff] %v2027_v8  ;;  %v2031_v15 = vadd.f32 %v2637_v14, %v1903_v11  ;;  %v2647_v0 = vld [vmem:[%s3186_s28 + $0x108] sm:$0xff]  ;;  %v2650_v11 = vld [vmem:[%s3186_s28 + $0x118] sm:$0xff] }
 0x27f   : > { %2156 = vst [vmem:[%s3543_s27 + $0xa0] sm:$0xff] %v2028_v4  ;;  %2158 = vst [vmem:[%s3543_s27 + $0xb0] sm:$0xff] %v2030_v13  ;;  %v2651_v13 = vld [vmem:[%s3186_s28 + $0x128] sm:$0xff] }
 0x280   : > { %2157 = vst [vmem:[%s3543_s27 + $0xa8] sm:$0xff] %v2029_v10  ;;  %v1536_v16 = vpop.f32.mrb[12].mxu0  ;;  %2159 = vst [vmem:[%s3543_s27 + $0xb8] sm:$0xff] %v2031_v15  ;;  %v1729_v19 = vpop.f32.mrb[12].mxu1 }
 0x281   : > { %v1904_v17 = vmul.f32 %v3525_v40, %v1536_v16  ;;  %v1538_v18 = vpop.f32.mrb[13].mxu0  ;;  %v1906_v24 = vmul.f32 %v3529_v42, %v1729_v19  ;;  %v1731_v25 = vpop.f32.mrb[13].mxu1  ;;  %v2652_v16 = vld [vmem:[%s3186_s28 + $0x130] sm:$0xff] }
 0x282   : > { %v1905_v20 = vmul.f32 %v3527_v41, %v1538_v18  ;;  %v1540_v21 = vpop.f32.mrb[14].mxu0  ;;  %v1907_v30 = vmul.f32 %v3531_v44, %v1731_v25  ;;  %v1733_v31 = vpop.f32.mrb[14].mxu1  ;;  %v2653_v18 = vld [vmem:[%s3186_s28 + $0x138] sm:$0xff] }
 0x283   : > { %v2032_v23 = vadd.f32 %v2638_v22, %v1904_v17  ;;  %v1908_v26 = vmul.f32 %v3525_v40, %v1540_v21  ;;  %v1542_v27 = vpop.f32.mrb[15].mxu0  ;;  %v2034_v34 = vadd.f32 %v2640_v33, %v1906_v24  ;;  %v1910_v37 = vmul.f32 %v3529_v42, %v1733_v31  ;;  %v1735_v38 = vpop.f32.mrb[15].mxu1 }
 0x284   : > { %v2033_v29 = vadd.f32 %v2639_v28, %v1905_v20  ;;  %v1909_v32 = vmul.f32 %v3527_v41, %v1542_v27  ;;  %v2035_v43 = vadd.f32 %v2642_v39, %v1907_v30  ;;  %v1911_v47 = vmul.f32 %v3531_v44, %v1735_v38  ;;  %v2657_v39 = vld [vmem:[%s3186_s28 + $0x160] sm:$0xff] }
 0x285   : > { %2160 = vst [vmem:[%s3543_s27 + $0xc0] sm:$0xff] %v2032_v23  ;;  %v2036_v36 = vadd.f32 %v2641_v35, %v1908_v26  ;;  %2162 = vst [vmem:[%s3543_s27 + $0xd0] sm:$0xff] %v2034_v34  ;;  %v2038_v49 = vadd.f32 %v2644_v48, %v1910_v37  ;;  %v2654_v26 = vld [vmem:[%s3186_s28 + $0x140] sm:$0xff]  ;;  %v2656_v37 = vld [vmem:[%s3186_s28 + $0x150] sm:$0xff] }
 0x286   : > { %2161 = vst [vmem:[%s3543_s27 + $0xc8] sm:$0xff] %v2033_v29  ;;  %v2037_v46 = vadd.f32 %v2643_v45, %v1909_v32  ;;  %2163 = vst [vmem:[%s3543_s27 + $0xd8] sm:$0xff] %v2035_v43  ;;  %v2039_v51 = vadd.f32 %v2645_v50, %v1911_v47  ;;  %v2655_v32 = vld [vmem:[%s3186_s28 + $0x148] sm:$0xff]  ;;  %v2658_v47 = vld [vmem:[%s3186_s28 + $0x158] sm:$0xff] }
 0x287   : > { %2164 = vst [vmem:[%s3543_s27 + $0xe0] sm:$0xff] %v2036_v36  ;;  %2166 = vst [vmem:[%s3543_s27 + $0xf0] sm:$0xff] %v2038_v49  ;;  %v2659_v49 = vld [vmem:[%s3186_s28 + $0x168] sm:$0xff] }
 0x288   : > { %2165 = vst [vmem:[%s3543_s27 + $0xe8] sm:$0xff] %v2037_v46  ;;  %v1546_v52 = vpop.f32.mrb[16].mxu0  ;;  %2167 = vst [vmem:[%s3543_s27 + $0xf8] sm:$0xff] %v2039_v51  ;;  %v1739_v55 = vpop.f32.mrb[16].mxu1 }
 0x289   : > { %v1912_v53 = vmul.f32 %v3525_v40, %v1546_v52  ;;  %v1548_v54 = vpop.f32.mrb[17].mxu0  ;;  %v1914_v60 = vmul.f32 %v3529_v42, %v1739_v55  ;;  %v1741_v61 = vpop.f32.mrb[17].mxu1  ;;  %v2660_v52 = vld [vmem:[%s3186_s28 + $0x170] sm:$0xff] }
 0x28a   : > { %v1913_v56 = vmul.f32 %v3527_v41, %v1548_v54  ;;  %v1550_v57 = vpop.f32.mrb[18].mxu0  ;;  %v1915_v2 = vmul.f32 %v3531_v44, %v1741_v61  ;;  %v1743_v3 = vpop.f32.mrb[18].mxu1  ;;  %v2661_v54 = vld [vmem:[%s3186_s28 + $0x178] sm:$0xff] }
 0x28b   : > { %v2040_v59 = vadd.f32 %v2646_v58, %v1912_v53  ;;  %v1916_v62 = vmul.f32 %v3525_v40, %v1550_v57  ;;  %v1552_v63 = vpop.f32.mrb[19].mxu0  ;;  %v2042_v6 = vadd.f32 %v2648_v5, %v1914_v60  ;;  %v1918_v9 = vmul.f32 %v3529_v42, %v1743_v3  ;;  %v1745_v10 = vpop.f32.mrb[19].mxu1 }
 0x28c   : > { %v2041_v1 = vadd.f32 %v2647_v0, %v1913_v56  ;;  %v1917_v4 = vmul.f32 %v3527_v41, %v1552_v63  ;;  %v2043_v12 = vadd.f32 %v2650_v11, %v1915_v2  ;;  %v1919_v15 = vmul.f32 %v3531_v44, %v1745_v10  ;;  %v2665_v11 = vld [vmem:[%s3186_s28 + $0x1a0] sm:$0xff] }
 0x28d   : > { %2168 = vst [vmem:[%s3543_s27 + $0x100] sm:$0xff] %v2040_v59  ;;  %v2044_v8 = vadd.f32 %v2649_v7, %v1916_v62  ;;  %2170 = vst [vmem:[%s3543_s27 + $0x110] sm:$0xff] %v2042_v6  ;;  %v2046_v17 = vadd.f32 %v2652_v16, %v1918_v9  ;;  %v2662_v62 = vld [vmem:[%s3186_s28 + $0x180] sm:$0xff]  ;;  %v2664_v9 = vld [vmem:[%s3186_s28 + $0x190] sm:$0xff] }
 0x28e   : > { %2169 = vst [vmem:[%s3543_s27 + $0x108] sm:$0xff] %v2041_v1  ;;  %v2045_v14 = vadd.f32 %v2651_v13, %v1917_v4  ;;  %2171 = vst [vmem:[%s3543_s27 + $0x118] sm:$0xff] %v2043_v12  ;;  %v2047_v19 = vadd.f32 %v2653_v18, %v1919_v15  ;;  %v2663_v4 = vld [vmem:[%s3186_s28 + $0x188] sm:$0xff]  ;;  %v2666_v15 = vld [vmem:[%s3186_s28 + $0x198] sm:$0xff] }
 0x28f   : > { %2172 = vst [vmem:[%s3543_s27 + $0x120] sm:$0xff] %v2044_v8  ;;  %2174 = vst [vmem:[%s3543_s27 + $0x130] sm:$0xff] %v2046_v17  ;;  %v2667_v17 = vld [vmem:[%s3186_s28 + $0x1a8] sm:$0xff] }
 0x290   : > { %2173 = vst [vmem:[%s3543_s27 + $0x128] sm:$0xff] %v2045_v14  ;;  %v1556_v20 = vpop.f32.mrb[20].mxu0  ;;  %2175 = vst [vmem:[%s3543_s27 + $0x138] sm:$0xff] %v2047_v19  ;;  %v1749_v23 = vpop.f32.mrb[20].mxu1 }
 0x291   : > { %v1920_v21 = vmul.f32 %v3525_v40, %v1556_v20  ;;  %v1558_v22 = vpop.f32.mrb[21].mxu0  ;;  %v1922_v28 = vmul.f32 %v3529_v42, %v1749_v23  ;;  %v1751_v29 = vpop.f32.mrb[21].mxu1  ;;  %v2668_v20 = vld [vmem:[%s3186_s28 + $0x1b0] sm:$0xff] }
 0x292   : > { %v1921_v24 = vmul.f32 %v3527_v41, %v1558_v22  ;;  %v1560_v25 = vpop.f32.mrb[22].mxu0  ;;  %v1923_v34 = vmul.f32 %v3531_v44, %v1751_v29  ;;  %v1753_v35 = vpop.f32.mrb[22].mxu1  ;;  %v2669_v22 = vld [vmem:[%s3186_s28 + $0x1b8] sm:$0xff] }
 0x293   : > { %v2048_v27 = vadd.f32 %v2654_v26, %v1920_v21  ;;  %v1924_v30 = vmul.f32 %v3525_v40, %v1560_v25  ;;  %v1562_v31 = vpop.f32.mrb[23].mxu0  ;;  %v2050_v38 = vadd.f32 %v2656_v37, %v1922_v28  ;;  %v1926_v45 = vmul.f32 %v3529_v42, %v1753_v35  ;;  %v1755_v46 = vpop.f32.mrb[23].mxu1 }
 0x294   : > { %v2049_v33 = vadd.f32 %v2655_v32, %v1921_v24  ;;  %v1925_v36 = vmul.f32 %v3527_v41, %v1562_v31  ;;  %v2051_v48 = vadd.f32 %v2658_v47, %v1923_v34  ;;  %v1927_v51 = vmul.f32 %v3531_v44, %v1755_v46  ;;  %v2673_v47 = vld [vmem:[%s3186_s28 + $0x1e0] sm:$0xff] }
 0x295   : > { %2176 = vst [vmem:[%s3543_s27 + $0x140] sm:$0xff] %v2048_v27  ;;  %v2052_v43 = vadd.f32 %v2657_v39, %v1924_v30  ;;  %2178 = vst [vmem:[%s3543_s27 + $0x150] sm:$0xff] %v2050_v38  ;;  %v2054_v53 = vadd.f32 %v2660_v52, %v1926_v45  ;;  %v2670_v30 = vld [vmem:[%s3186_s28 + $0x1c0] sm:$0xff]  ;;  %v2672_v45 = vld [vmem:[%s3186_s28 + $0x1d0] sm:$0xff] }
 0x296   : > { %2177 = vst [vmem:[%s3543_s27 + $0x148] sm:$0xff] %v2049_v33  ;;  %v2053_v50 = vadd.f32 %v2659_v49, %v1925_v36  ;;  %2179 = vst [vmem:[%s3543_s27 + $0x158] sm:$0xff] %v2051_v48  ;;  %v2055_v55 = vadd.f32 %v2661_v54, %v1927_v51  ;;  %v2671_v36 = vld [vmem:[%s3186_s28 + $0x1c8] sm:$0xff]  ;;  %v2674_v51 = vld [vmem:[%s3186_s28 + $0x1d8] sm:$0xff] }
 0x297   : > { %2180 = vst [vmem:[%s3543_s27 + $0x160] sm:$0xff] %v2052_v43  ;;  %2182 = vst [vmem:[%s3543_s27 + $0x170] sm:$0xff] %v2054_v53  ;;  %v2675_v53 = vld [vmem:[%s3186_s28 + $0x1e8] sm:$0xff] }
 0x298   : > { %2181 = vst [vmem:[%s3543_s27 + $0x168] sm:$0xff] %v2053_v50  ;;  %v1566_v56 = vpop.f32.mrb[24].mxu0  ;;  %2183 = vst [vmem:[%s3543_s27 + $0x178] sm:$0xff] %v2055_v55  ;;  %v1759_v59 = vpop.f32.mrb[24].mxu1 }
 0x299   : > { %v1928_v57 = vmul.f32 %v3525_v40, %v1566_v56  ;;  %v1568_v58 = vpop.f32.mrb[25].mxu0  ;;  %v1930_v0 = vmul.f32 %v3529_v42, %v1759_v59  ;;  %v1761_v1 = vpop.f32.mrb[25].mxu1  ;;  %v2676_v56 = vld [vmem:[%s3186_s28 + $0x1f0] sm:$0xff] }
 0x29a   : > { %v1929_v60 = vmul.f32 %v3527_v41, %v1568_v58  ;;  %v1570_v61 = vpop.f32.mrb[26].mxu0  ;;  %v1931_v6 = vmul.f32 %v3531_v44, %v1761_v1  ;;  %v1763_v7 = vpop.f32.mrb[26].mxu1  ;;  %v2677_v58 = vld [vmem:[%s3186_s28 + $0x1f8] sm:$0xff] }
 0x29b   : > { %v2056_v63 = vadd.f32 %v2662_v62, %v1928_v57  ;;  %v1932_v2 = vmul.f32 %v3525_v40, %v1570_v61  ;;  %v1572_v3 = vpop.f32.mrb[27].mxu0  ;;  %v2058_v10 = vadd.f32 %v2664_v9, %v1930_v0  ;;  %v1934_v13 = vmul.f32 %v3529_v42, %v1763_v7  ;;  %v1765_v14 = vpop.f32.mrb[27].mxu1 }
 0x29c   : > { %v2057_v5 = vadd.f32 %v2663_v4, %v1929_v60  ;;  %v1933_v8 = vmul.f32 %v3527_v41, %v1572_v3  ;;  %v2059_v16 = vadd.f32 %v2666_v15, %v1931_v6  ;;  %v1935_v19 = vmul.f32 %v3531_v44, %v1765_v14  ;;  %v2681_v15 = vld [vmem:[%s3186_s28 + $0x220] sm:$0xff] }
 0x29d   : > { %2184 = vst [vmem:[%s3543_s27 + $0x180] sm:$0xff] %v2056_v63  ;;  %v2060_v12 = vadd.f32 %v2665_v11, %v1932_v2  ;;  %2186 = vst [vmem:[%s3543_s27 + $0x190] sm:$0xff] %v2058_v10  ;;  %v2062_v21 = vadd.f32 %v2668_v20, %v1934_v13  ;;  %v2678_v2 = vld [vmem:[%s3186_s28 + $0x200] sm:$0xff]  ;;  %v2680_v13 = vld [vmem:[%s3186_s28 + $0x210] sm:$0xff] }
 0x29e   : > { %2185 = vst [vmem:[%s3543_s27 + $0x188] sm:$0xff] %v2057_v5  ;;  %v2061_v18 = vadd.f32 %v2667_v17, %v1933_v8  ;;  %2187 = vst [vmem:[%s3543_s27 + $0x198] sm:$0xff] %v2059_v16  ;;  %v2063_v23 = vadd.f32 %v2669_v22, %v1935_v19  ;;  %v2679_v8 = vld [vmem:[%s3186_s28 + $0x208] sm:$0xff]  ;;  %v2682_v19 = vld [vmem:[%s3186_s28 + $0x218] sm:$0xff] }
 0x29f   : > { %2188 = vst [vmem:[%s3543_s27 + $0x1a0] sm:$0xff] %v2060_v12  ;;  %2190 = vst [vmem:[%s3543_s27 + $0x1b0] sm:$0xff] %v2062_v21  ;;  %v2683_v21 = vld [vmem:[%s3186_s28 + $0x228] sm:$0xff] }
 0x2a0   : > { %2189 = vst [vmem:[%s3543_s27 + $0x1a8] sm:$0xff] %v2061_v18  ;;  %v1576_v24 = vpop.f32.mrb[28].mxu0  ;;  %2191 = vst [vmem:[%s3543_s27 + $0x1b8] sm:$0xff] %v2063_v23  ;;  %v1769_v27 = vpop.f32.mrb[28].mxu1 }
 0x2a1   : > { %v1936_v25 = vmul.f32 %v3525_v40, %v1576_v24  ;;  %v1578_v26 = vpop.f32.mrb[29].mxu0  ;;  %v1938_v32 = vmul.f32 %v3529_v42, %v1769_v27  ;;  %v1771_v33 = vpop.f32.mrb[29].mxu1  ;;  %v2684_v24 = vld [vmem:[%s3186_s28 + $0x230] sm:$0xff] }
 0x2a2   : > { %v1937_v28 = vmul.f32 %v3527_v41, %v1578_v26  ;;  %v1580_v29 = vpop.f32.mrb[30].mxu0  ;;  %v1939_v38 = vmul.f32 %v3531_v44, %v1771_v33  ;;  %v1773_v39 = vpop.f32.mrb[30].mxu1  ;;  %v2685_v26 = vld [vmem:[%s3186_s28 + $0x238] sm:$0xff] }
 0x2a3   : > { %v2064_v31 = vadd.f32 %v2670_v30, %v1936_v25  ;;  %v1940_v34 = vmul.f32 %v3525_v40, %v1580_v29  ;;  %v1582_v35 = vpop.f32.mrb[31].mxu0  ;;  %v2066_v46 = vadd.f32 %v2672_v45, %v1938_v32  ;;  %v1942_v49 = vmul.f32 %v3529_v42, %v1773_v39  ;;  %v1775_v50 = vpop.f32.mrb[31].mxu1 }
 0x2a4   : > { %v2065_v37 = vadd.f32 %v2671_v36, %v1937_v28  ;;  %v1941_v43 = vmul.f32 %v3527_v41, %v1582_v35  ;;  %v2067_v52 = vadd.f32 %v2674_v51, %v1939_v38  ;;  %v1943_v55 = vmul.f32 %v3531_v44, %v1775_v50  ;;  %v2689_v51 = vld [vmem:[%s3186_s28 + $0x260] sm:$0xff] }
 0x2a5   : > { %2192 = vst [vmem:[%s3543_s27 + $0x1c0] sm:$0xff] %v2064_v31  ;;  %v2068_v48 = vadd.f32 %v2673_v47, %v1940_v34  ;;  %2194 = vst [vmem:[%s3543_s27 + $0x1d0] sm:$0xff] %v2066_v46  ;;  %v2070_v57 = vadd.f32 %v2676_v56, %v1942_v49  ;;  %v2686_v34 = vld [vmem:[%s3186_s28 + $0x240] sm:$0xff]  ;;  %v2688_v49 = vld [vmem:[%s3186_s28 + $0x250] sm:$0xff] }
 0x2a6   : > { %2193 = vst [vmem:[%s3543_s27 + $0x1c8] sm:$0xff] %v2065_v37  ;;  %v2069_v54 = vadd.f32 %v2675_v53, %v1941_v43  ;;  %2195 = vst [vmem:[%s3543_s27 + $0x1d8] sm:$0xff] %v2067_v52  ;;  %v2071_v59 = vadd.f32 %v2677_v58, %v1943_v55  ;;  %v2687_v43 = vld [vmem:[%s3186_s28 + $0x248] sm:$0xff]  ;;  %v2690_v55 = vld [vmem:[%s3186_s28 + $0x258] sm:$0xff] }
 0x2a7   : > { %2196 = vst [vmem:[%s3543_s27 + $0x1e0] sm:$0xff] %v2068_v48  ;;  %2198 = vst [vmem:[%s3543_s27 + $0x1f0] sm:$0xff] %v2070_v57  ;;  %v2691_v57 = vld [vmem:[%s3186_s28 + $0x268] sm:$0xff] }
 0x2a8   : > { %2197 = vst [vmem:[%s3543_s27 + $0x1e8] sm:$0xff] %v2069_v54  ;;  %v1586_v60 = vpop.f32.mrb[32].mxu0  ;;  %2199 = vst [vmem:[%s3543_s27 + $0x1f8] sm:$0xff] %v2071_v59  ;;  %v1779_v63 = vpop.f32.mrb[32].mxu1 }
 0x2a9   : > { %v1944_v61 = vmul.f32 %v3525_v40, %v1586_v60  ;;  %v1588_v62 = vpop.f32.mrb[33].mxu0  ;;  %v1946_v4 = vmul.f32 %v3529_v42, %v1779_v63  ;;  %v1781_v5 = vpop.f32.mrb[33].mxu1  ;;  %v2692_v60 = vld [vmem:[%s3186_s28 + $0x270] sm:$0xff] }
 0x2aa   : > { %v1945_v0 = vmul.f32 %v3527_v41, %v1588_v62  ;;  %v1590_v1 = vpop.f32.mrb[34].mxu0  ;;  %v1947_v10 = vmul.f32 %v3531_v44, %v1781_v5  ;;  %v1783_v11 = vpop.f32.mrb[34].mxu1  ;;  %v2693_v62 = vld [vmem:[%s3186_s28 + $0x278] sm:$0xff] }
 0x2ab   : > { %v2072_v3 = vadd.f32 %v2678_v2, %v1944_v61  ;;  %v1948_v6 = vmul.f32 %v3525_v40, %v1590_v1  ;;  %v1592_v7 = vpop.f32.mrb[35].mxu0  ;;  %v2074_v14 = vadd.f32 %v2680_v13, %v1946_v4  ;;  %v1950_v17 = vmul.f32 %v3529_v42, %v1783_v11  ;;  %v1785_v18 = vpop.f32.mrb[35].mxu1 }
 0x2ac   : > { %v2073_v9 = vadd.f32 %v2679_v8, %v1945_v0  ;;  %v1949_v12 = vmul.f32 %v3527_v41, %v1592_v7  ;;  %v2075_v20 = vadd.f32 %v2682_v19, %v1947_v10  ;;  %v1951_v23 = vmul.f32 %v3531_v44, %v1785_v18  ;;  %v2697_v19 = vld [vmem:[%s3186_s28 + $0x2a0] sm:$0xff] }
 0x2ad   : > { %2200 = vst [vmem:[%s3543_s27 + $0x200] sm:$0xff] %v2072_v3  ;;  %v2076_v16 = vadd.f32 %v2681_v15, %v1948_v6  ;;  %2202 = vst [vmem:[%s3543_s27 + $0x210] sm:$0xff] %v2074_v14  ;;  %v2078_v25 = vadd.f32 %v2684_v24, %v1950_v17  ;;  %v2694_v6 = vld [vmem:[%s3186_s28 + $0x280] sm:$0xff]  ;;  %v2696_v17 = vld [vmem:[%s3186_s28 + $0x290] sm:$0xff] }
 0x2ae   : > { %2201 = vst [vmem:[%s3543_s27 + $0x208] sm:$0xff] %v2073_v9  ;;  %v2077_v22 = vadd.f32 %v2683_v21, %v1949_v12  ;;  %2203 = vst [vmem:[%s3543_s27 + $0x218] sm:$0xff] %v2075_v20  ;;  %v2079_v27 = vadd.f32 %v2685_v26, %v1951_v23  ;;  %v2695_v12 = vld [vmem:[%s3186_s28 + $0x288] sm:$0xff]  ;;  %v2698_v23 = vld [vmem:[%s3186_s28 + $0x298] sm:$0xff] }
 0x2af   : > { %2204 = vst [vmem:[%s3543_s27 + $0x220] sm:$0xff] %v2076_v16  ;;  %2206 = vst [vmem:[%s3543_s27 + $0x230] sm:$0xff] %v2078_v25  ;;  %v2699_v25 = vld [vmem:[%s3186_s28 + $0x2a8] sm:$0xff] }
 0x2b0   : > { %2205 = vst [vmem:[%s3543_s27 + $0x228] sm:$0xff] %v2077_v22  ;;  %v1596_v28 = vpop.f32.mrb[36].mxu0  ;;  %2207 = vst [vmem:[%s3543_s27 + $0x238] sm:$0xff] %v2079_v27  ;;  %v1789_v31 = vpop.f32.mrb[36].mxu1 }
 0x2b1   : > { %v1952_v29 = vmul.f32 %v3525_v40, %v1596_v28  ;;  %v1598_v30 = vpop.f32.mrb[37].mxu0  ;;  %v1954_v36 = vmul.f32 %v3529_v42, %v1789_v31  ;;  %v1791_v37 = vpop.f32.mrb[37].mxu1  ;;  %v2700_v28 = vld [vmem:[%s3186_s28 + $0x2b0] sm:$0xff] }
 0x2b2   : > { %v1953_v32 = vmul.f32 %v3527_v41, %v1598_v30  ;;  %v1600_v33 = vpop.f32.mrb[38].mxu0  ;;  %v1955_v46 = vmul.f32 %v3531_v44, %v1791_v37  ;;  %v1793_v47 = vpop.f32.mrb[38].mxu1  ;;  %v2701_v30 = vld [vmem:[%s3186_s28 + $0x2b8] sm:$0xff] }
 0x2b3   : > { %v2080_v35 = vadd.f32 %v2686_v34, %v1952_v29  ;;  %v1956_v38 = vmul.f32 %v3525_v40, %v1600_v33  ;;  %v1602_v39 = vpop.f32.mrb[39].mxu0  ;;  %v2082_v50 = vadd.f32 %v2688_v49, %v1954_v36  ;;  %v1958_v53 = vmul.f32 %v3529_v42, %v1793_v47  ;;  %v1795_v54 = vpop.f32.mrb[39].mxu1 }
 0x2b4   : > { %v2081_v45 = vadd.f32 %v2687_v43, %v1953_v32  ;;  %v1957_v48 = vmul.f32 %v3527_v41, %v1602_v39  ;;  %v2083_v56 = vadd.f32 %v2690_v55, %v1955_v46  ;;  %v1959_v59 = vmul.f32 %v3531_v44, %v1795_v54  ;;  %v2705_v55 = vld [vmem:[%s3186_s28 + $0x2e0] sm:$0xff] }
 0x2b5   : > { %2208 = vst [vmem:[%s3543_s27 + $0x240] sm:$0xff] %v2080_v35  ;;  %v2084_v52 = vadd.f32 %v2689_v51, %v1956_v38  ;;  %2210 = vst [vmem:[%s3543_s27 + $0x250] sm:$0xff] %v2082_v50  ;;  %v2086_v61 = vadd.f32 %v2692_v60, %v1958_v53  ;;  %v2702_v38 = vld [vmem:[%s3186_s28 + $0x2c0] sm:$0xff]  ;;  %v2704_v53 = vld [vmem:[%s3186_s28 + $0x2d0] sm:$0xff] }
 0x2b6   : > { %2209 = vst [vmem:[%s3543_s27 + $0x248] sm:$0xff] %v2081_v45  ;;  %v2085_v58 = vadd.f32 %v2691_v57, %v1957_v48  ;;  %2211 = vst [vmem:[%s3543_s27 + $0x258] sm:$0xff] %v2083_v56  ;;  %v2087_v63 = vadd.f32 %v2693_v62, %v1959_v59  ;;  %v2703_v48 = vld [vmem:[%s3186_s28 + $0x2c8] sm:$0xff]  ;;  %v2706_v59 = vld [vmem:[%s3186_s28 + $0x2d8] sm:$0xff] }
 0x2b7   : > { %2212 = vst [vmem:[%s3543_s27 + $0x260] sm:$0xff] %v2084_v52  ;;  %2214 = vst [vmem:[%s3543_s27 + $0x270] sm:$0xff] %v2086_v61  ;;  %v2707_v61 = vld [vmem:[%s3186_s28 + $0x2e8] sm:$0xff] }
 0x2b8   : > { %2213 = vst [vmem:[%s3543_s27 + $0x268] sm:$0xff] %v2085_v58  ;;  %v1606_v0 = vpop.f32.mrb[40].mxu0  ;;  %2215 = vst [vmem:[%s3543_s27 + $0x278] sm:$0xff] %v2087_v63  ;;  %v1799_v3 = vpop.f32.mrb[40].mxu1 }
 0x2b9   : > { %v1960_v1 = vmul.f32 %v3525_v40, %v1606_v0  ;;  %v1608_v2 = vpop.f32.mrb[41].mxu0  ;;  %v1962_v8 = vmul.f32 %v3529_v42, %v1799_v3  ;;  %v1801_v9 = vpop.f32.mrb[41].mxu1  ;;  %v2708_v0 = vld [vmem:[%s3186_s28 + $0x2f0] sm:$0xff] }
 0x2ba   : > { %v1961_v4 = vmul.f32 %v3527_v41, %v1608_v2  ;;  %v1610_v5 = vpop.f32.mrb[42].mxu0  ;;  %v1963_v14 = vmul.f32 %v3531_v44, %v1801_v9  ;;  %v1803_v15 = vpop.f32.mrb[42].mxu1  ;;  %v2709_v2 = vld [vmem:[%s3186_s28 + $0x2f8] sm:$0xff] }
 0x2bb   : > { %v2088_v7 = vadd.f32 %v2694_v6, %v1960_v1  ;;  %v1964_v10 = vmul.f32 %v3525_v40, %v1610_v5  ;;  %v1612_v11 = vpop.f32.mrb[43].mxu0  ;;  %v2090_v18 = vadd.f32 %v2696_v17, %v1962_v8  ;;  %v1966_v21 = vmul.f32 %v3529_v42, %v1803_v15  ;;  %v1805_v22 = vpop.f32.mrb[43].mxu1 }
 0x2bc   : > { %v2089_v13 = vadd.f32 %v2695_v12, %v1961_v4  ;;  %v1965_v16 = vmul.f32 %v3527_v41, %v1612_v11  ;;  %v2091_v24 = vadd.f32 %v2698_v23, %v1963_v14  ;;  %v1967_v27 = vmul.f32 %v3531_v44, %v1805_v22  ;;  %v2713_v23 = vld [vmem:[%s3186_s28 + $0x320] sm:$0xff] }
 0x2bd   : > { %2216 = vst [vmem:[%s3543_s27 + $0x280] sm:$0xff] %v2088_v7  ;;  %v2092_v20 = vadd.f32 %v2697_v19, %v1964_v10  ;;  %2218 = vst [vmem:[%s3543_s27 + $0x290] sm:$0xff] %v2090_v18  ;;  %v2094_v29 = vadd.f32 %v2700_v28, %v1966_v21  ;;  %v2710_v10 = vld [vmem:[%s3186_s28 + $0x300] sm:$0xff]  ;;  %v2712_v21 = vld [vmem:[%s3186_s28 + $0x310] sm:$0xff] }
 0x2be   : > { %2217 = vst [vmem:[%s3543_s27 + $0x288] sm:$0xff] %v2089_v13  ;;  %v2093_v26 = vadd.f32 %v2699_v25, %v1965_v16  ;;  %2219 = vst [vmem:[%s3543_s27 + $0x298] sm:$0xff] %v2091_v24  ;;  %v2095_v31 = vadd.f32 %v2701_v30, %v1967_v27  ;;  %v2711_v16 = vld [vmem:[%s3186_s28 + $0x308] sm:$0xff]  ;;  %v2714_v27 = vld [vmem:[%s3186_s28 + $0x318] sm:$0xff] }
 0x2bf   : > { %2220 = vst [vmem:[%s3543_s27 + $0x2a0] sm:$0xff] %v2092_v20  ;;  %2222 = vst [vmem:[%s3543_s27 + $0x2b0] sm:$0xff] %v2094_v29  ;;  %v2715_v29 = vld [vmem:[%s3186_s28 + $0x328] sm:$0xff] }
 0x2c0   : > { %2221 = vst [vmem:[%s3543_s27 + $0x2a8] sm:$0xff] %v2093_v26  ;;  %v1616_v32 = vpop.f32.mrb[44].mxu0  ;;  %2223 = vst [vmem:[%s3543_s27 + $0x2b8] sm:$0xff] %v2095_v31  ;;  %v1809_v35 = vpop.f32.mrb[44].mxu1 }
 0x2c1   : > { %v1968_v33 = vmul.f32 %v3525_v40, %v1616_v32  ;;  %v1618_v34 = vpop.f32.mrb[45].mxu0  ;;  %v1970_v43 = vmul.f32 %v3529_v42, %v1809_v35  ;;  %v1811_v45 = vpop.f32.mrb[45].mxu1  ;;  %v2716_v32 = vld [vmem:[%s3186_s28 + $0x330] sm:$0xff] }
 0x2c2   : > { %v1969_v36 = vmul.f32 %v3527_v41, %v1618_v34  ;;  %v1620_v37 = vpop.f32.mrb[46].mxu0  ;;  %v1971_v50 = vmul.f32 %v3531_v44, %v1811_v45  ;;  %v1813_v51 = vpop.f32.mrb[46].mxu1  ;;  %v2717_v34 = vld [vmem:[%s3186_s28 + $0x338] sm:$0xff] }
 0x2c3   : > { %v2096_v39 = vadd.f32 %v2702_v38, %v1968_v33  ;;  %v1972_v46 = vmul.f32 %v3525_v40, %v1620_v37  ;;  %v1622_v47 = vpop.f32.mrb[47].mxu0  ;;  %v2098_v54 = vadd.f32 %v2704_v53, %v1970_v43  ;;  %v1974_v57 = vmul.f32 %v3529_v42, %v1813_v51  ;;  %v1815_v58 = vpop.f32.mrb[47].mxu1 }
 0x2c4   : > { %v2097_v49 = vadd.f32 %v2703_v48, %v1969_v36  ;;  %v1973_v52 = vmul.f32 %v3527_v41, %v1622_v47  ;;  %v2099_v60 = vadd.f32 %v2706_v59, %v1971_v50  ;;  %v1975_v63 = vmul.f32 %v3531_v44, %v1815_v58  ;;  %v2721_v59 = vld [vmem:[%s3186_s28 + $0x360] sm:$0xff] }
 0x2c5   : > { %2224 = vst [vmem:[%s3543_s27 + $0x2c0] sm:$0xff] %v2096_v39  ;;  %v2100_v56 = vadd.f32 %v2705_v55, %v1972_v46  ;;  %2226 = vst [vmem:[%s3543_s27 + $0x2d0] sm:$0xff] %v2098_v54  ;;  %v2102_v1 = vadd.f32 %v2708_v0, %v1974_v57  ;;  %v2718_v46 = vld [vmem:[%s3186_s28 + $0x340] sm:$0xff]  ;;  %v2720_v57 = vld [vmem:[%s3186_s28 + $0x350] sm:$0xff] }
 0x2c6   : > { %2225 = vst [vmem:[%s3543_s27 + $0x2c8] sm:$0xff] %v2097_v49  ;;  %v2101_v62 = vadd.f32 %v2707_v61, %v1973_v52  ;;  %2227 = vst [vmem:[%s3543_s27 + $0x2d8] sm:$0xff] %v2099_v60  ;;  %v2103_v3 = vadd.f32 %v2709_v2, %v1975_v63  ;;  %v2719_v52 = vld [vmem:[%s3186_s28 + $0x348] sm:$0xff]  ;;  %v2722_v63 = vld [vmem:[%s3186_s28 + $0x358] sm:$0xff] }
 0x2c7   : > { %2228 = vst [vmem:[%s3543_s27 + $0x2e0] sm:$0xff] %v2100_v56  ;;  %2230 = vst [vmem:[%s3543_s27 + $0x2f0] sm:$0xff] %v2102_v1  ;;  %v2723_v1 = vld [vmem:[%s3186_s28 + $0x368] sm:$0xff] }
 0x2c8   : > { %2229 = vst [vmem:[%s3543_s27 + $0x2e8] sm:$0xff] %v2101_v62  ;;  %v1626_v4 = vpop.f32.mrb[48].mxu0  ;;  %2231 = vst [vmem:[%s3543_s27 + $0x2f8] sm:$0xff] %v2103_v3  ;;  %v1819_v7 = vpop.f32.mrb[48].mxu1 }
 0x2c9   : > { %v1976_v5 = vmul.f32 %v3525_v40, %v1626_v4  ;;  %v1628_v6 = vpop.f32.mrb[49].mxu0  ;;  %v1978_v12 = vmul.f32 %v3529_v42, %v1819_v7  ;;  %v1821_v13 = vpop.f32.mrb[49].mxu1  ;;  %v2724_v4 = vld [vmem:[%s3186_s28 + $0x370] sm:$0xff] }
 0x2ca   : > { %v1977_v8 = vmul.f32 %v3527_v41, %v1628_v6  ;;  %v1630_v9 = vpop.f32.mrb[50].mxu0  ;;  %v1979_v18 = vmul.f32 %v3531_v44, %v1821_v13  ;;  %v1823_v19 = vpop.f32.mrb[50].mxu1  ;;  %v2725_v6 = vld [vmem:[%s3186_s28 + $0x378] sm:$0xff] }
 0x2cb   : > { %v2104_v11 = vadd.f32 %v2710_v10, %v1976_v5  ;;  %v1980_v14 = vmul.f32 %v3525_v40, %v1630_v9  ;;  %v1632_v15 = vpop.f32.mrb[51].mxu0  ;;  %v2106_v22 = vadd.f32 %v2712_v21, %v1978_v12  ;;  %v1982_v25 = vmul.f32 %v3529_v42, %v1823_v19  ;;  %v1825_v26 = vpop.f32.mrb[51].mxu1 }
 0x2cc   : > { %v2105_v17 = vadd.f32 %v2711_v16, %v1977_v8  ;;  %v1981_v20 = vmul.f32 %v3527_v41, %v1632_v15  ;;  %v2107_v28 = vadd.f32 %v2714_v27, %v1979_v18  ;;  %v1983_v31 = vmul.f32 %v3531_v44, %v1825_v26  ;;  %v2729_v27 = vld [vmem:[%s3186_s28 + $0x3a0] sm:$0xff] }
 0x2cd   : > { %2232 = vst [vmem:[%s3543_s27 + $0x300] sm:$0xff] %v2104_v11  ;;  %v2108_v24 = vadd.f32 %v2713_v23, %v1980_v14  ;;  %2234 = vst [vmem:[%s3543_s27 + $0x310] sm:$0xff] %v2106_v22  ;;  %v2110_v33 = vadd.f32 %v2716_v32, %v1982_v25  ;;  %v2726_v14 = vld [vmem:[%s3186_s28 + $0x380] sm:$0xff]  ;;  %v2728_v25 = vld [vmem:[%s3186_s28 + $0x390] sm:$0xff] }
 0x2ce   : > { %2233 = vst [vmem:[%s3543_s27 + $0x308] sm:$0xff] %v2105_v17  ;;  %v2109_v30 = vadd.f32 %v2715_v29, %v1981_v20  ;;  %2235 = vst [vmem:[%s3543_s27 + $0x318] sm:$0xff] %v2107_v28  ;;  %v2111_v35 = vadd.f32 %v2717_v34, %v1983_v31  ;;  %v2727_v20 = vld [vmem:[%s3186_s28 + $0x388] sm:$0xff]  ;;  %v2730_v31 = vld [vmem:[%s3186_s28 + $0x398] sm:$0xff] }
 0x2cf   : > { %2236 = vst [vmem:[%s3543_s27 + $0x320] sm:$0xff] %v2108_v24  ;;  %2238 = vst [vmem:[%s3543_s27 + $0x330] sm:$0xff] %v2110_v33  ;;  %v2731_v33 = vld [vmem:[%s3186_s28 + $0x3a8] sm:$0xff] }
 0x2d0   : > { %2237 = vst [vmem:[%s3543_s27 + $0x328] sm:$0xff] %v2109_v30  ;;  %v1636_v36 = vpop.f32.mrb[52].mxu0  ;;  %2239 = vst [vmem:[%s3543_s27 + $0x338] sm:$0xff] %v2111_v35  ;;  %v1829_v39 = vpop.f32.mrb[52].mxu1 }
 0x2d1   : > { %v1984_v37 = vmul.f32 %v3525_v40, %v1636_v36  ;;  %v1638_v38 = vpop.f32.mrb[53].mxu0  ;;  %v1986_v48 = vmul.f32 %v3529_v42, %v1829_v39  ;;  %v1831_v49 = vpop.f32.mrb[53].mxu1  ;;  %v2732_v36 = vld [vmem:[%s3186_s28 + $0x3b0] sm:$0xff] }
 0x2d2   : > { %v1985_v43 = vmul.f32 %v3527_v41, %v1638_v38  ;;  %v1640_v45 = vpop.f32.mrb[54].mxu0  ;;  %v1987_v54 = vmul.f32 %v3531_v44, %v1831_v49  ;;  %v1833_v55 = vpop.f32.mrb[54].mxu1  ;;  %v2733_v38 = vld [vmem:[%s3186_s28 + $0x3b8] sm:$0xff] }
 0x2d3   : > { %v2112_v47 = vadd.f32 %v2718_v46, %v1984_v37  ;;  %v1988_v50 = vmul.f32 %v3525_v40, %v1640_v45  ;;  %v1642_v51 = vpop.f32.mrb[55].mxu0  ;;  %v2114_v58 = vadd.f32 %v2720_v57, %v1986_v48  ;;  %v1990_v61 = vmul.f32 %v3529_v42, %v1833_v55  ;;  %v1835_v62 = vpop.f32.mrb[55].mxu1 }
 0x2d4   : > { %v2113_v53 = vadd.f32 %v2719_v52, %v1985_v43  ;;  %v1989_v56 = vmul.f32 %v3527_v41, %v1642_v51  ;;  %v2115_v0 = vadd.f32 %v2722_v63, %v1987_v54  ;;  %v1991_v3 = vmul.f32 %v3531_v44, %v1835_v62 }
 0x2d5   : > { %2240 = vst [vmem:[%s3543_s27 + $0x340] sm:$0xff] %v2112_v47  ;;  %v2116_v60 = vadd.f32 %v2721_v59, %v1988_v50  ;;  %2242 = vst [vmem:[%s3543_s27 + $0x350] sm:$0xff] %v2114_v58  ;;  %v2118_v5 = vadd.f32 %v2724_v4, %v1990_v61  ;;  %v2734_v50 = vld [vmem:[%s3186_s28 + $0x3c0] sm:$0xff]  ;;  %v2736_v61 = vld [vmem:[%s3186_s28 + $0x3d0] sm:$0xff] }
 0x2d6   : > { %2241 = vst [vmem:[%s3543_s27 + $0x348] sm:$0xff] %v2113_v53  ;;  %v2117_v2 = vadd.f32 %v2723_v1, %v1989_v56  ;;  %2243 = vst [vmem:[%s3543_s27 + $0x358] sm:$0xff] %v2115_v0  ;;  %v2119_v7 = vadd.f32 %v2725_v6, %v1991_v3  ;;  %v2735_v56 = vld [vmem:[%s3186_s28 + $0x3c8] sm:$0xff] }
 0x2d7   : > { %2244 = vst [vmem:[%s3543_s27 + $0x360] sm:$0xff] %v2116_v60  ;;  %2246 = vst [vmem:[%s3543_s27 + $0x370] sm:$0xff] %v2118_v5  ;;  %v2739_v3 = vld [vmem:[%s3186_s28 + $0x3e8] sm:$0xff] }
 0x2d8   : > { %2245 = vst [vmem:[%s3543_s27 + $0x368] sm:$0xff] %v2117_v2  ;;  %v1646_v8 = vpop.f32.mrb[56].mxu0  ;;  %2247 = vst [vmem:[%s3543_s27 + $0x378] sm:$0xff] %v2119_v7  ;;  %v1839_v11 = vpop.f32.mrb[56].mxu1  ;;  %v2738_v2 = vld [vmem:[%s3186_s28 + $0x3d8] sm:$0xff] }
 0x2d9   : > { %v1992_v9 = vmul.f32 %v3525_v40, %v1646_v8  ;;  %v1648_v10 = vpop.f32.mrb[57].mxu0  ;;  %v1994_v16 = vmul.f32 %v3529_v42, %v1839_v11  ;;  %v1841_v17 = vpop.f32.mrb[57].mxu1  ;;  %v2741_v7 = vld [vmem:[%s3186_s28 + $0x3f8] sm:$0xff] }
 0x2da   : > { %v1993_v12 = vmul.f32 %v3527_v41, %v1648_v10  ;;  %v1650_v13 = vpop.f32.mrb[58].mxu0  ;;  %v1995_v22 = vmul.f32 %v3531_v44, %v1841_v17  ;;  %v1843_v23 = vpop.f32.mrb[58].mxu1 }
 0x2db   : > { %v2120_v15 = vadd.f32 %v2726_v14, %v1992_v9  ;;  %v1996_v18 = vmul.f32 %v3525_v40, %v1650_v13  ;;  %v1652_v19 = vpop.f32.mrb[59].mxu0  ;;  %v2122_v26 = vadd.f32 %v2728_v25, %v1994_v16  ;;  %v1998_v29 = vmul.f32 %v3529_v42, %v1843_v23  ;;  %v1845_v30 = vpop.f32.mrb[59].mxu1 }
 0x2dc   : > { %v2121_v21 = vadd.f32 %v2727_v20, %v1993_v12  ;;  %v1997_v24 = vmul.f32 %v3527_v41, %v1652_v19  ;;  %v2123_v32 = vadd.f32 %v2730_v31, %v1995_v22  ;;  %v1999_v35 = vmul.f32 %v3531_v44, %v1845_v30 }
 0x2dd   : > { %2248 = vst [vmem:[%s3543_s27 + $0x380] sm:$0xff] %v2120_v15  ;;  %v2124_v28 = vadd.f32 %v2729_v27, %v1996_v18  ;;  %2250 = vst [vmem:[%s3543_s27 + $0x390] sm:$0xff] %v2122_v26  ;;  %v2126_v37 = vadd.f32 %v2732_v36, %v1998_v29 }
 0x2de   : > { %2249 = vst [vmem:[%s3543_s27 + $0x388] sm:$0xff] %v2121_v21  ;;  %v2125_v34 = vadd.f32 %v2731_v33, %v1997_v24  ;;  %2251 = vst [vmem:[%s3543_s27 + $0x398] sm:$0xff] %v2123_v32  ;;  %v2127_v39 = vadd.f32 %v2733_v38, %v1999_v35 }
 0x2df   : > { %2252 = vst [vmem:[%s3543_s27 + $0x3a0] sm:$0xff] %v2124_v28  ;;  %2254 = vst [vmem:[%s3543_s27 + $0x3b0] sm:$0xff] %v2126_v37 }
 0x2e0   : > { %2253 = vst [vmem:[%s3543_s27 + $0x3a8] sm:$0xff] %v2125_v34  ;;  %v1656_v43 = vpop.f32.mrb[60].mxu0  ;;  %2255 = vst [vmem:[%s3543_s27 + $0x3b8] sm:$0xff] %v2127_v39  ;;  %v1849_v47 = vpop.f32.mrb[60].mxu1 }
 0x2e1   : > { %v2000_v45 = vmul.f32 %v3525_v40, %v1656_v43  ;;  %v1658_v46 = vpop.f32.mrb[61].mxu0  ;;  %v2002_v52 = vmul.f32 %v3529_v42, %v1849_v47  ;;  %v1851_v53 = vpop.f32.mrb[61].mxu1 }
 0x2e2   : > { %v2001_v48 = vmul.f32 %v3527_v41, %v1658_v46  ;;  %v1660_v49 = vpop.f32.mrb[62].mxu0  ;;  %v2003_v58 = vmul.f32 %v3531_v44, %v1851_v53  ;;  %v1853_v59 = vpop.f32.mrb[62].mxu1 }
 0x2e3   : > { %v2128_v51 = vadd.f32 %v2734_v50, %v2000_v45  ;;  %v2004_v54 = vmul.f32 %v3525_v40, %v1660_v49  ;;  %v1662_v55 = vpop.f32.mrb[63].mxu0  ;;  %v2130_v62 = vadd.f32 %v2736_v61, %v2002_v52  ;;  %v2737_v40 = vld [vmem:[%s3186_s28 + $0x3e0] sm:$0xff]  ;;  %v2006_v0 = vmul.f32 %v3529_v42, %v1853_v59  ;;  %v1855_v1 = vpop.f32.mrb[63].mxu1  ;;  %v2740_v42 = vld [vmem:[%s3186_s28 + $0x3f0] sm:$0xff] }
 0x2e4   : > { %v2129_v57 = vadd.f32 %v2735_v56, %v2001_v48  ;;  %v2005_v60 = vmul.f32 %v3527_v41, %v1662_v55  ;;  %v2131_v41 = vadd.f32 %v2738_v2, %v2003_v58  ;;  %v2007_v5 = vmul.f32 %v3531_v44, %v1855_v1 }
 0x2e5   : > { %2256 = vst [vmem:[%s3543_s27 + $0x3c0] sm:$0xff] %v2128_v51  ;;  %v2132_v63 = vadd.f32 %v2737_v40, %v2004_v54  ;;  %2258 = vst [vmem:[%s3543_s27 + $0x3d0] sm:$0xff] %v2130_v62  ;;  %v2134_v6 = vadd.f32 %v2740_v42, %v2006_v0 }
 0x2e6   : > { %2257 = vst [vmem:[%s3543_s27 + $0x3c8] sm:$0xff] %v2129_v57  ;;  %v2133_v4 = vadd.f32 %v2739_v3, %v2005_v60  ;;  %2259 = vst [vmem:[%s3543_s27 + $0x3d8] sm:$0xff] %v2131_v41  ;;  %v2135_v8 = vadd.f32 %v2741_v7, %v2007_v5 }
 0x2e7   : > { %2260 = vst [vmem:[%s3543_s27 + $0x3e0] sm:$0xff] %v2132_v63  ;;  %2262 = vst [vmem:[%s3543_s27 + $0x3f0] sm:$0xff] %v2134_v6 }
 0x2e8   : > { %2261 = vst [vmem:[%s3543_s27 + $0x3e8] sm:$0xff] %v2133_v4  ;;  %2263 = vst [vmem:[%s3543_s27 + $0x3f8] sm:$0xff] %v2135_v8 }
 0x2e9   : > { %2843 = shalt.err (!%p2840_p11)
}
 0x2ea   : > { %s2844_s28 = scalar_lea.hbm %s3927_s12, 16384  ;;  %s2848_s26 = scalar_lea.hbm %s4037_s8, 65536 }
 0x2eb   : > { %p2845_p5 = scmp.ne.s32.totalorder %s3927_s12, %s2844_s28  ;;  %p2849_p1 = scmp.lt.u32.totalorder %s3927_s12, %s4037_s8 }
 0x2ec   : > { %p2850_p12 = scmp.lt.u32.totalorder %s2848_s26, %s2844_s28  ;;  %p2852_p7 = scmp.lt.u32.totalorder %s2844_s28, %s3927_s12 }
 0x2ed   : > { %p2846_p0 = pnand %p2845_p5, %p4038_p8 }
 0x2ee   : > { %p2851_p3 = por %p2850_p12, %p2849_p1 }
 0x2ef   : > { %p2847_p13 = pneg %p2846_p0 }
 0x2f0   : > { %p2853_p9 = por %p2852_p7, %p2851_p3 }
 0x2f2   : > { %p2854_p2 = pnand %p2853_p9, %p2847_p13 }
 0x2f4   : > { %2857 = shalt.err (!%p2854_p2)
}
 0x2f5   : > { %s2948_s9 = smov 512   ;;  %s2949_s29 = smov 1024  }
 0x2f6   : > { %s2950_s16 = smov 32  }
 0x2f7   : > { %2469 = dma.vmem_to_hbm [thread:$0]  (%p4038_p8), %s3919_s0, 16384, %s3927_s12, %s2265_s7, %s2948_s9, %s2949_s29, %s2950_s16  }
 0x2f8 PF: > { %s4039_s10 = sld [smem:[#allocation13_spill]]  ;;  %s4040_s22 = sld [smem:[#allocation18_spill]] }
 0x2f9   : > { %p2489_p6 = scmp.ge.s32.totalorder %s2936_s25, 2 }
 0x2fe   : > { %s2295_s14 = sand.u32 1, %s4039_s10   ;;  %p4041_p10 = scmp.ne.s32.totalorder %s4040_s22, 0 }
 0x2ff   : > { %s2296_s18 = scalar_lea.sflag [#allocation4], %s2295_s14 }
 0x300   : > { %p2483_p4 = pnand %p2489_p6, %p4041_p10 }
 0x302   : > { %2903 = dma.done.wait (!%p2483_p4), %s2296_s18, 16384  }
 0x303   : > { %2905 = vsyncadd (!%p2483_p4), %s2296_s18, 4294950912  ;;  %s24_s25 = sadd.s32 1, %s2936_s25   ;;  %s4042_s20 = sld [smem:[#allocation14_spill]] }
 0x304   : > { %p21_p11 = scmp.ge.s32.totalorder %s24_s25, 6   ;;  %s4043_s6 = sld [smem:[#allocation21_spill]] }
 0x305   : > { %s4044_s0 = sld [smem:[#allocation19_spill]]  ;;  %s4045_s15 = sld [smem:[#allocation20_spill]] }
 0x306   : > { %s4046_s18 = smov %s2912_s19  ;;  %s4049_s21 = smov %s2928_s23 }
 0x307   : > { %s4050_s22 = smov %s2932_s24  ;;  %23 = sbr.rel (!%p21_p11) target bundleno = 13 (0xd), region = 102 }
 0x309   : > { %s4047_s19 = smov %s4042_s20 }
 0x30a   : > { %s4048_s20 = smov %s4043_s6 }
 0x30b   : > { %s4051_s23 = smov %s4044_s0  ;;  %s4052_s24 = smov %s4045_s15 }
 0x30e   :  { %2301 = vsyncpa [#allocation3], 1 }
 0x30f   :  { %2303 = vsyncpa [#allocation3 + $0x1], 1 }
 0x310   :  { %2304 = vsyncpa [#allocation6], 1 }
 0x311   :  { %2306 = vsyncpa [#allocation6 + $0x1], 1 }
 0x312   :  { %2307 = vsyncpa [#allocation4], 1 }
 0x313   :  { %2309 = vsyncpa [#allocation4 + $0x1], 1 }

</bundles_post_ra>
